<compile_context>
chip_gen: v6e
topology: v6e:2x2x1
jax: 0.10.0
libtpu: 0.0.40
codegen_flags: <defaults>
</compile_context>

<pallas_src>
import jax
import jax.numpy as jnp
import numpy as np
from jax import lax
from jax.experimental import pallas as pl
from jax.experimental.pallas import tpu as pltpu

C_IN = 256       # Bottleneck inplanes (= planes * expansion -> no downsample branch)
PL_C = 64        # Bottleneck planes
KH = KW = 3      # conv2 kernel
K_IM2COL = KH * KW * PL_C   # 576
N_REG = 4        # regressor outputs
N_PAD = 128      # lane-dense padded regressor width
BN_EPS = 1e-5

_VMEM_BUDGET = 32 * 1024 * 1024     # conservative (fits v7x 64 MiB w/ headroom)
_VMEM_LIMIT = 48 * 1024 * 1024


def _detector_kernel(x_ref, w1_ref, s1_ref, b1_ref,
                     w2_ref, s2_ref, b2_ref,
                     w3_ref, s3_ref, b3_ref,
                     wr_ref, br_ref,
                     out_ref, pad_ref, col_ref):
    Bb, H, W, C = x_ref.shape
    P = PL_C
    M = Bb * H * W

    x2d = x_ref[...].reshape(M, C)                                   # (M,256) f32

    # ---- conv1 (1x1, no bias) + folded BN1 + ReLU --------------------------
    h1 = jnp.dot(x2d.astype(jnp.bfloat16), w1_ref[...],
                 preferred_element_type=jnp.float32)
    h1 = jnp.maximum(h1 * s1_ref[...] + b1_ref[...], 0.0)            # (M,64) f32

    # ---- conv2 (3x3, stride 1, pad 1, no bias) as ONE im2col matmul --------
    # zero only the 1-px halo; the interior is fully rewritten each step
    zr = jnp.zeros((Bb, 1, W + 2, P), pad_ref.dtype)
    zc = jnp.zeros((Bb, H + 2, 1, P), pad_ref.dtype)
    pad_ref[:, 0:1, :, :] = zr
    pad_ref[:, H + 1:H + 2, :, :] = zr
    pad_ref[:, :, 0:1, :] = zc
    pad_ref[:, :, W + 1:W + 2, :] = zc
    pad_ref[:, 1:H + 1, 1:W + 1, :] = (
        h1.reshape(Bb, H, W, P).astype(pad_ref.dtype))

    # im2col: (M, 9*64) patch matrix in VMEM scratch (bf16)
    for ky in range(KH):                                             # unrolled taps
        for kx in range(KW):
            t = ky * KW + kx
            col_ref[:, t * P:(t + 1) * P] = (
                pad_ref[:, ky:ky + H, kx:kx + W, :].reshape(M, P))

    h2 = jnp.dot(col_ref[...], w2_ref[...],
                 preferred_element_type=jnp.float32)                 # (M,64)
    h2 = jnp.maximum(h2 * s2_ref[...] + b2_ref[...], 0.0)

    # ---- conv3 (1x1, no bias) + folded BN3 ---------------------------------
    h3 = jnp.dot(h2.astype(jnp.bfloat16), w3_ref[...],
                 preferred_element_type=jnp.float32)                 # (M,256)
    h3 = h3 * s3_ref[...] + b3_ref[...]

    # ---- residual add + ReLU (f32) -----------------------------------------
    feat = jnp.maximum(h3 + x2d, 0.0)                                # (M,256)

    # ---- F.adaptive_avg_pool2d(feat, 1): per-image spatial mean ------------
    pooled = jnp.mean(feat.reshape(Bb, H * W, C), axis=1)            # (Bb,256)

    # ---- regressor (1x1 conv 256->4, zero-padded to 128 lanes) -------------
    reg = jnp.dot(pooled.astype(jnp.bfloat16), wr_ref[...],
                  preferred_element_type=jnp.float32) + br_ref[...]  # (Bb,128)
    out_ref[...] = reg.reshape(1, Bb, N_PAD)


def _choose_b_blk(B, H, W, budget_bytes=_VMEM_BUDGET):
    """Largest divisor of B that keeps the VMEM footprint under budget."""
    def vmem_bytes(bb):
        m = bb * H * W
        x_bytes = 2 * bb * H * W * C_IN * 4            # x block, double-buffered f32
        pad = bb * (H + 2) * (W + 2) * PL_C * 2        # bf16 scratch
        col = m * K_IM2COL * 2                         # bf16 scratch
        act = m * (2 * C_IN + 2 * PL_C) * 4            # f32 intermediate headroom
        return x_bytes + pad + col + act + (1 << 20)   # + weights / misc

    best = 1
    for bb in range(1, B + 1):
        if B % bb != 0:
            continue
        if vmem_bytes(bb) > budget_bytes:
            break                                      # monotone in bb
        best = bb
        if bb * H * W >= 512:                          # enough MXU rows per step
            break

    # keep >=2 grid steps when possible (both v7x TensorCores fed), but only if
    # each step still has a decent number of matmul rows.
    if B // best == 1 and B > 1:
        for bb in range(best - 1, 0, -1):
            if B % bb == 0 and bb * H * W >= 256:
                best = bb
                break
    return best


def _prepare_params(params):
    """Cast matmul weights to bf16, flatten conv2 to (576,64), pad regressor to 128 lanes."""
    (w1, s1, b1, w2, s2, b2, w3, s3, b3, wr, br) = params
    w2_flat = w2.reshape(K_IM2COL, PL_C)
    wr_pad = jnp.zeros((C_IN, N_PAD), jnp.float32).at[:, :N_REG].set(wr)
    br_pad = jnp.zeros((1, N_PAD), jnp.float32).at[:, :N_REG].set(br)
    return (w1.astype(jnp.bfloat16), s1, b1,
            w2_flat.astype(jnp.bfloat16), s2, b2,
            w3.astype(jnp.bfloat16), s3, b3,
            wr_pad.astype(jnp.bfloat16), br_pad)


def faster_rcnn_detector(x, params, *, data_format="NCHW"):
    """x: (B, 256, H, W) NCHW (PyTorch) or (B, H, W, 256) NHWC  ->  (B, 4) f32."""
    if data_format == "NCHW":
        B, C, H, W = x.shape
        # one extra HBM pass; provide NHWC upstream (data_format="NHWC") to skip it.
        x = jnp.transpose(x, (0, 2, 3, 1))
    else:
        B, H, W, C = x.shape
    assert C == C_IN
    x = x.astype(jnp.float32)

    (w1, s1, b1, w2f, s2, b2, w3, s3, b3, wrp, brp) = _prepare_params(params)

    b_blk = _choose_b_blk(B, H, W)
    n_blk = B // b_blk
    M = b_blk * H * W

    out = pl.pallas_call(
        _detector_kernel,
        out_shape=jax.ShapeDtypeStruct((n_blk, b_blk, N_PAD), jnp.float32),
        grid_spec=pltpu.PrefetchScalarGridSpec(
            num_scalar_prefetch=0,
            grid=(n_blk,),
            in_specs=[
                pl.BlockSpec((b_blk, H, W, C_IN), lambda i: (i, 0, 0, 0)),  # x
                pl.BlockSpec((C_IN, PL_C), lambda i: (0, 0)),               # w1 (bf16)
                pl.BlockSpec((1, PL_C), lambda i: (0, 0)),                  # s1
                pl.BlockSpec((1, PL_C), lambda i: (0, 0)),                  # b1
                pl.BlockSpec((K_IM2COL, PL_C), lambda i: (0, 0)),           # w2 (bf16)
                pl.BlockSpec((1, PL_C), lambda i: (0, 0)),                  # s2
                pl.BlockSpec((1, PL_C), lambda i: (0, 0)),                  # b2
                pl.BlockSpec((PL_C, C_IN), lambda i: (0, 0)),               # w3 (bf16)
                pl.BlockSpec((1, C_IN), lambda i: (0, 0)),                  # s3
                pl.BlockSpec((1, C_IN), lambda i: (0, 0)),                  # b3
                pl.BlockSpec((C_IN, N_PAD), lambda i: (0, 0)),              # wr (bf16, padded)
                pl.BlockSpec((1, N_PAD), lambda i: (0, 0)),                 # br (padded)
            ],
            out_specs=pl.BlockSpec((1, b_blk, N_PAD), lambda i: (i, 0, 0)),
            scratch_shapes=[
                pltpu.VMEM((b_blk, H + 2, W + 2, PL_C), jnp.bfloat16),      # padded h1
                pltpu.VMEM((M, K_IM2COL), jnp.bfloat16),                    # im2col matrix
            ],
        ),
        compiler_params=pltpu.CompilerParams(
            dimension_semantics=("parallel",),
            vmem_limit_bytes=_VMEM_LIMIT),
    )(x, w1, s1, b1, w2f, s2, b2, w3, s3, b3, wrp, brp)

    return out.reshape(B, N_PAD)[:, :N_REG]


def init_params(key):
    ks = jax.random.split(key, 17)

    def nrm(k, shape, std=0.05):
        return std * jax.random.normal(k, shape, jnp.float32)

    def folded_bn(kg, kb, km, kv, c):
        gamma = 1.0 + 0.1 * jax.random.normal(kg, (c,), jnp.float32)
        beta = 0.1 * jax.random.normal(kb, (c,), jnp.float32)
        mean = 0.1 * jax.random.normal(km, (c,), jnp.float32)
        var = 1.0 + 0.1 * jnp.abs(jax.random.normal(kv, (c,), jnp.float32))
        scale = gamma / jnp.sqrt(var + BN_EPS)
        shift = beta - mean * scale
        return scale.reshape(1, c), shift.reshape(1, c)

    w1 = nrm(ks[0], (C_IN, PL_C))              # conv1: 1x1, in 256 -> out 64
    w2 = nrm(ks[1], (KH * KW, PL_C, PL_C))     # conv2: per-tap (in 64, out 64)
    w3 = nrm(ks[2], (PL_C, C_IN))              # conv3: 1x1, in 64 -> out 256
    wr = nrm(ks[3], (C_IN, N_REG))             # regressor: 1x1, in 256 -> out 4
    br = nrm(ks[4], (1, N_REG))                # regressor bias
    s1, b1 = folded_bn(ks[5], ks[6], ks[7], ks[8], PL_C)
    s2, b2 = folded_bn(ks[9], ks[10], ks[11], ks[12], PL_C)
    s3, b3 = folded_bn(ks[13], ks[14], ks[15], ks[16], C_IN)
    return (w1, s1, b1, w2, s2, b2, w3, s3, b3, wr, br)


def reference_forward(x_nchw, params):
    """Pure-JAX f32 (XLA conv) reference of the PyTorch forward, for validation."""
    (w1, s1, b1, w2, s2, b2, w3, s3, b3, wr, br) = params
    dn = ('NCHW', 'OIHW', 'NCHW')
    w1_oihw = w1.T.reshape(PL_C, C_IN, 1, 1)
    w2_oihw = jnp.transpose(w2.reshape(KH, KW, PL_C, PL_C), (3, 2, 0, 1))
    w3_oihw = w3.T.reshape(C_IN, PL_C, 1, 1)
    wr_oihw = wr.T.reshape(N_REG, C_IN, 1, 1)

    def bnorm(y, s, sh):
        return y * s.reshape(1, -1, 1, 1) + sh.reshape(1, -1, 1, 1)

    h = lax.conv_general_dilated(x_nchw, w1_oihw, (1, 1), 'VALID', dimension_numbers=dn)
    h = jax.nn.relu(bnorm(h, s1, b1))
    h = lax.conv_general_dilated(h, w2_oihw, (1, 1), ((1, 1), (1, 1)), dimension_numbers=dn)
    h = jax.nn.relu(bnorm(h, s2, b2))
    h = lax.conv_general_dilated(h, w3_oihw, (1, 1), 'VALID', dimension_numbers=dn)
    h = bnorm(h, s3, b3)
    h = jax.nn.relu(h + x_nchw)
    pooled = jnp.mean(h, axis=(2, 3), keepdims=True)
    reg = lax.conv_general_dilated(pooled, wr_oihw, (1, 1), 'VALID', dimension_numbers=dn)
    reg = reg + br.reshape(1, N_REG, 1, 1)
    return reg.reshape(reg.shape[0], N_REG)


if __name__ == "__main__":
    key = jax.random.PRNGKey(0)
    kx, kp = jax.random.split(key)
    B, H, W = 2, 8, 8
    x = jax.random.normal(kx, (B, C_IN, H, W), jnp.float32)   # NCHW, as in PyTorch
    params = init_params(kp)

    run = jax.jit(faster_rcnn_detector, static_argnames=("data_format",))
    out = jax.block_until_ready(run(x, params))

    ref = reference_forward(x, params)
    # bf16 MXU operands (f32 accumulation) -> relaxed tolerance vs the f32 reference.
    np.testing.assert_allclose(np.asarray(out), np.asarray(ref), rtol=2e-2, atol=2e-2)
    assert out.shape == (B, N_REG)
    print("KERNEL_OK")
</pallas_src>

<mosaic_0001>
module attributes {stable_mosaic.version = 11 : i64} {
  func.func @_detector_kernel(%arg0: i32, %arg1: memref<2x8x8x256xf32, #tpu.memory_space<vmem>>, %arg2: memref<256x64xbf16, #tpu.memory_space<vmem>>, %arg3: memref<1x64xf32, #tpu.memory_space<vmem>>, %arg4: memref<1x64xf32, #tpu.memory_space<vmem>>, %arg5: memref<576x64xbf16, #tpu.memory_space<vmem>>, %arg6: memref<1x64xf32, #tpu.memory_space<vmem>>, %arg7: memref<1x64xf32, #tpu.memory_space<vmem>>, %arg8: memref<64x256xbf16, #tpu.memory_space<vmem>>, %arg9: memref<1x256xf32, #tpu.memory_space<vmem>>, %arg10: memref<1x256xf32, #tpu.memory_space<vmem>>, %arg11: memref<256x128xbf16, #tpu.memory_space<vmem>>, %arg12: memref<1x128xf32, #tpu.memory_space<vmem>>, %arg13: memref<1x2x128xf32, #tpu.memory_space<vmem>>, %arg14: memref<2x10x10x64xbf16, #tpu.memory_space<vmem>>, %arg15: memref<128x576xbf16, #tpu.memory_space<vmem>>) attributes {dimension_semantics = [#tpu.dimension_semantics<parallel>], iteration_bounds = array<i64: 1>, scalar_prefetch = 0 : i64, scratch_operands = 2 : i64, tpu.core_type = #tpu.core_type<tc>, window_params = [{transform_indices = @transform_0, window_bounds = array<i64: 2, 8, 8, 256>}, {pipeline_mode = #tpu.pipeline_mode<synchronous>, transform_indices = @transform_1, window_bounds = array<i64: 256, 64>}, {pipeline_mode = #tpu.pipeline_mode<synchronous>, transform_indices = @transform_2, window_bounds = array<i64: 1, 64>}, {pipeline_mode = #tpu.pipeline_mode<synchronous>, transform_indices = @transform_3, window_bounds = array<i64: 1, 64>}, {pipeline_mode = #tpu.pipeline_mode<synchronous>, transform_indices = @transform_4, window_bounds = array<i64: 576, 64>}, {pipeline_mode = #tpu.pipeline_mode<synchronous>, transform_indices = @transform_5, window_bounds = array<i64: 1, 64>}, {pipeline_mode = #tpu.pipeline_mode<synchronous>, transform_indices = @transform_6, window_bounds = array<i64: 1, 64>}, {pipeline_mode = #tpu.pipeline_mode<synchronous>, transform_indices = @transform_7, window_bounds = array<i64: 64, 256>}, {pipeline_mode = #tpu.pipeline_mode<synchronous>, transform_indices = @transform_8, window_bounds = array<i64: 1, 256>}, {pipeline_mode = #tpu.pipeline_mode<synchronous>, transform_indices = @transform_9, window_bounds = array<i64: 1, 256>}, {pipeline_mode = #tpu.pipeline_mode<synchronous>, transform_indices = @transform_10, window_bounds = array<i64: 256, 128>}, {pipeline_mode = #tpu.pipeline_mode<synchronous>, transform_indices = @transform_11, window_bounds = array<i64: 1, 128>}, {transform_indices = @transform_12, window_bounds = array<i64: 1, 2, 128>}]} {
    %c0 = arith.constant 0 : index
    %c0_0 = arith.constant 0 : index
    %c0_1 = arith.constant 0 : index
    %c0_2 = arith.constant 0 : index
    %0 = vector.load %arg1[%c0, %c0_0, %c0_1, %c0_2] : memref<2x8x8x256xf32, #tpu.memory_space<vmem>>, vector<2x8x8x256xf32>
    %1 = vector.shape_cast %0 : vector<2x8x8x256xf32> to vector<128x256xf32>
    %2 = arith.truncf %1 : vector<128x256xf32> to vector<128x256xbf16>
    %c0_3 = arith.constant 0 : index
    %c0_4 = arith.constant 0 : index
    %3 = vector.load %arg2[%c0_3, %c0_4] : memref<256x64xbf16, #tpu.memory_space<vmem>>, vector<256x64xbf16>
    %cst = arith.constant dense<0.000000e+00> : vector<128x64xf32>
    %4 = tpu.matmul %2, %3, %cst {dimension_numbers = #tpu.dot_dimension_numbers<[1], [0], [0], [1], [0, 0, 1, 1], [], []>} : vector<128x256xbf16>, vector<256x64xbf16>, vector<128x64xf32> -> vector<128x64xf32>
    %c0_5 = arith.constant 0 : index
    %c0_6 = arith.constant 0 : index
    %5 = vector.load %arg3[%c0_5, %c0_6] : memref<1x64xf32, #tpu.memory_space<vmem>>, vector<1x64xf32>
    %6 = vector.broadcast %5 : vector<1x64xf32> to vector<128x64xf32>
    %7 = arith.mulf %4, %6 : vector<128x64xf32>
    %c0_7 = arith.constant 0 : index
    %c0_8 = arith.constant 0 : index
    %8 = vector.load %arg4[%c0_7, %c0_8] : memref<1x64xf32, #tpu.memory_space<vmem>>, vector<1x64xf32>
    %9 = vector.broadcast %8 : vector<1x64xf32> to vector<128x64xf32>
    %10 = arith.addf %7, %9 : vector<128x64xf32>
    %cst_9 = arith.constant 0.000000e+00 : f32
    %11 = vector.broadcast %cst_9 : f32 to vector<128x64xf32>
    %12 = arith.maximumf %10, %11 : vector<128x64xf32>
    %cst_10 = arith.constant 0.000000e+00 : bf16
    %13 = vector.broadcast %cst_10 : bf16 to vector<2x1x10x64xbf16>
    %cst_11 = arith.constant 0.000000e+00 : bf16
    %14 = vector.broadcast %cst_11 : bf16 to vector<2x10x1x64xbf16>
    %c0_12 = arith.constant 0 : index
    %c0_13 = arith.constant 0 : index
    %c0_14 = arith.constant 0 : index
    %c0_15 = arith.constant 0 : index
    %15 = vector.load %arg14[%c0_12, %c0_13, %c0_14, %c0_15] : memref<2x10x10x64xbf16, #tpu.memory_space<vmem>>, vector<2x1x10x64xbf16>
    tpu.vector_store %arg14[%c0_12, %c0_13, %c0_14, %c0_15], %13 {strides = array<i32>} : memref<2x10x10x64xbf16, #tpu.memory_space<vmem>>, vector<2x1x10x64xbf16>,
    %c0_16 = arith.constant 0 : index
    %c9 = arith.constant 9 : index
    %c0_17 = arith.constant 0 : index
    %c0_18 = arith.constant 0 : index
    %16 = vector.load %arg14[%c0_16, %c9, %c0_17, %c0_18] : memref<2x10x10x64xbf16, #tpu.memory_space<vmem>>, vector<2x1x10x64xbf16>
    tpu.vector_store %arg14[%c0_16, %c9, %c0_17, %c0_18], %13 {strides = array<i32>} : memref<2x10x10x64xbf16, #tpu.memory_space<vmem>>, vector<2x1x10x64xbf16>,
    %c0_19 = arith.constant 0 : index
    %c0_20 = arith.constant 0 : index
    %c0_21 = arith.constant 0 : index
    %c0_22 = arith.constant 0 : index
    %17 = vector.load %arg14[%c0_19, %c0_20, %c0_21, %c0_22] : memref<2x10x10x64xbf16, #tpu.memory_space<vmem>>, vector<2x10x1x64xbf16>
    tpu.vector_store %arg14[%c0_19, %c0_20, %c0_21, %c0_22], %14 {strides = array<i32>} : memref<2x10x10x64xbf16, #tpu.memory_space<vmem>>, vector<2x10x1x64xbf16>,
    %c0_23 = arith.constant 0 : index
    %c0_24 = arith.constant 0 : index
    %c9_25 = arith.constant 9 : index
    %c0_26 = arith.constant 0 : index
    %18 = vector.load %arg14[%c0_23, %c0_24, %c9_25, %c0_26] : memref<2x10x10x64xbf16, #tpu.memory_space<vmem>>, vector<2x10x1x64xbf16>
    tpu.vector_store %arg14[%c0_23, %c0_24, %c9_25, %c0_26], %14 {strides = array<i32>} : memref<2x10x10x64xbf16, #tpu.memory_space<vmem>>, vector<2x10x1x64xbf16>,
    %19 = vector.shape_cast %12 : vector<128x64xf32> to vector<2x8x8x64xf32>
    %20 = arith.truncf %19 : vector<2x8x8x64xf32> to vector<2x8x8x64xbf16>
    %c0_27 = arith.constant 0 : index
    %c1 = arith.constant 1 : index
    %c1_28 = arith.constant 1 : index
    %c0_29 = arith.constant 0 : index
    %21 = vector.load %arg14[%c0_27, %c1, %c1_28, %c0_29] : memref<2x10x10x64xbf16, #tpu.memory_space<vmem>>, vector<2x8x8x64xbf16>
    tpu.vector_store %arg14[%c0_27, %c1, %c1_28, %c0_29], %20 {strides = array<i32>} : memref<2x10x10x64xbf16, #tpu.memory_space<vmem>>, vector<2x8x8x64xbf16>,
    %c0_30 = arith.constant 0 : index
    %c0_31 = arith.constant 0 : index
    %c0_32 = arith.constant 0 : index
    %c0_33 = arith.constant 0 : index
    %22 = vector.load %arg14[%c0_30, %c0_31, %c0_32, %c0_33] : memref<2x10x10x64xbf16, #tpu.memory_space<vmem>>, vector<2x8x8x64xbf16>
    %23 = vector.shape_cast %22 : vector<2x8x8x64xbf16> to vector<128x64xbf16>
    %c0_34 = arith.constant 0 : index
    %c0_35 = arith.constant 0 : index
    %24 = vector.load %arg15[%c0_34, %c0_35] : memref<128x576xbf16, #tpu.memory_space<vmem>>, vector<128x64xbf16>
    tpu.vector_store %arg15[%c0_34, %c0_35], %23 {strides = array<i32>} : memref<128x576xbf16, #tpu.memory_space<vmem>>, vector<128x64xbf16>,
    %c0_36 = arith.constant 0 : index
    %c0_37 = arith.constant 0 : index
    %c1_38 = arith.constant 1 : index
    %c0_39 = arith.constant 0 : index
    %25 = vector.load %arg14[%c0_36, %c0_37, %c1_38, %c0_39] : memref<2x10x10x64xbf16, #tpu.memory_space<vmem>>, vector<2x8x8x64xbf16>
    %26 = vector.shape_cast %25 : vector<2x8x8x64xbf16> to vector<128x64xbf16>
    %c0_40 = arith.constant 0 : index
    %c64 = arith.constant 64 : index
    %27 = vector.load %arg15[%c0_40, %c64] : memref<128x576xbf16, #tpu.memory_space<vmem>>, vector<128x64xbf16>
    tpu.vector_store %arg15[%c0_40, %c64], %26 {strides = array<i32>} : memref<128x576xbf16, #tpu.memory_space<vmem>>, vector<128x64xbf16>,
    %c0_41 = arith.constant 0 : index
    %c0_42 = arith.constant 0 : index
    %c2 = arith.constant 2 : index
    %c0_43 = arith.constant 0 : index
    %28 = vector.load %arg14[%c0_41, %c0_42, %c2, %c0_43] : memref<2x10x10x64xbf16, #tpu.memory_space<vmem>>, vector<2x8x8x64xbf16>
    %29 = vector.shape_cast %28 : vector<2x8x8x64xbf16> to vector<128x64xbf16>
    %c0_44 = arith.constant 0 : index
    %c128 = arith.constant 128 : index
    %30 = vector.load %arg15[%c0_44, %c128] : memref<128x576xbf16, #tpu.memory_space<vmem>>, vector<128x64xbf16>
    tpu.vector_store %arg15[%c0_44, %c128], %29 {strides = array<i32>} : memref<128x576xbf16, #tpu.memory_space<vmem>>, vector<128x64xbf16>,
    %c0_45 = arith.constant 0 : index
    %c1_46 = arith.constant 1 : index
    %c0_47 = arith.constant 0 : index
    %c0_48 = arith.constant 0 : index
    %31 = vector.load %arg14[%c0_45, %c1_46, %c0_47, %c0_48] : memref<2x10x10x64xbf16, #tpu.memory_space<vmem>>, vector<2x8x8x64xbf16>
    %32 = vector.shape_cast %31 : vector<2x8x8x64xbf16> to vector<128x64xbf16>
    %c0_49 = arith.constant 0 : index
    %c192 = arith.constant 192 : index
    %33 = vector.load %arg15[%c0_49, %c192] : memref<128x576xbf16, #tpu.memory_space<vmem>>, vector<128x64xbf16>
    tpu.vector_store %arg15[%c0_49, %c192], %32 {strides = array<i32>} : memref<128x576xbf16, #tpu.memory_space<vmem>>, vector<128x64xbf16>,
    %c0_50 = arith.constant 0 : index
    %c1_51 = arith.constant 1 : index
    %c1_52 = arith.constant 1 : index
    %c0_53 = arith.constant 0 : index
    %34 = vector.load %arg14[%c0_50, %c1_51, %c1_52, %c0_53] : memref<2x10x10x64xbf16, #tpu.memory_space<vmem>>, vector<2x8x8x64xbf16>
    %35 = vector.shape_cast %34 : vector<2x8x8x64xbf16> to vector<128x64xbf16>
    %c0_54 = arith.constant 0 : index
    %c256 = arith.constant 256 : index
    %36 = vector.load %arg15[%c0_54, %c256] : memref<128x576xbf16, #tpu.memory_space<vmem>>, vector<128x64xbf16>
    tpu.vector_store %arg15[%c0_54, %c256], %35 {strides = array<i32>} : memref<128x576xbf16, #tpu.memory_space<vmem>>, vector<128x64xbf16>,
    %c0_55 = arith.constant 0 : index
    %c1_56 = arith.constant 1 : index
    %c2_57 = arith.constant 2 : index
    %c0_58 = arith.constant 0 : index
    %37 = vector.load %arg14[%c0_55, %c1_56, %c2_57, %c0_58] : memref<2x10x10x64xbf16, #tpu.memory_space<vmem>>, vector<2x8x8x64xbf16>
    %38 = vector.shape_cast %37 : vector<2x8x8x64xbf16> to vector<128x64xbf16>
    %c0_59 = arith.constant 0 : index
    %c320 = arith.constant 320 : index
    %39 = vector.load %arg15[%c0_59, %c320] : memref<128x576xbf16, #tpu.memory_space<vmem>>, vector<128x64xbf16>
    tpu.vector_store %arg15[%c0_59, %c320], %38 {strides = array<i32>} : memref<128x576xbf16, #tpu.memory_space<vmem>>, vector<128x64xbf16>,
    %c0_60 = arith.constant 0 : index
    %c2_61 = arith.constant 2 : index
    %c0_62 = arith.constant 0 : index
    %c0_63 = arith.constant 0 : index
    %40 = vector.load %arg14[%c0_60, %c2_61, %c0_62, %c0_63] : memref<2x10x10x64xbf16, #tpu.memory_space<vmem>>, vector<2x8x8x64xbf16>
    %41 = vector.shape_cast %40 : vector<2x8x8x64xbf16> to vector<128x64xbf16>
    %c0_64 = arith.constant 0 : index
    %c384 = arith.constant 384 : index
    %42 = vector.load %arg15[%c0_64, %c384] : memref<128x576xbf16, #tpu.memory_space<vmem>>, vector<128x64xbf16>
    tpu.vector_store %arg15[%c0_64, %c384], %41 {strides = array<i32>} : memref<128x576xbf16, #tpu.memory_space<vmem>>, vector<128x64xbf16>,
    %c0_65 = arith.constant 0 : index
    %c2_66 = arith.constant 2 : index
    %c1_67 = arith.constant 1 : index
    %c0_68 = arith.constant 0 : index
    %43 = vector.load %arg14[%c0_65, %c2_66, %c1_67, %c0_68] : memref<2x10x10x64xbf16, #tpu.memory_space<vmem>>, vector<2x8x8x64xbf16>
    %44 = vector.shape_cast %43 : vector<2x8x8x64xbf16> to vector<128x64xbf16>
    %c0_69 = arith.constant 0 : index
    %c448 = arith.constant 448 : index
    %45 = vector.load %arg15[%c0_69, %c448] : memref<128x576xbf16, #tpu.memory_space<vmem>>, vector<128x64xbf16>
    tpu.vector_store %arg15[%c0_69, %c448], %44 {strides = array<i32>} : memref<128x576xbf16, #tpu.memory_space<vmem>>, vector<128x64xbf16>,
    %c0_70 = arith.constant 0 : index
    %c2_71 = arith.constant 2 : index
    %c2_72 = arith.constant 2 : index
    %c0_73 = arith.constant 0 : index
    %46 = vector.load %arg14[%c0_70, %c2_71, %c2_72, %c0_73] : memref<2x10x10x64xbf16, #tpu.memory_space<vmem>>, vector<2x8x8x64xbf16>
    %47 = vector.shape_cast %46 : vector<2x8x8x64xbf16> to vector<128x64xbf16>
    %c0_74 = arith.constant 0 : index
    %c512 = arith.constant 512 : index
    %48 = vector.load %arg15[%c0_74, %c512] : memref<128x576xbf16, #tpu.memory_space<vmem>>, vector<128x64xbf16>
    tpu.vector_store %arg15[%c0_74, %c512], %47 {strides = array<i32>} : memref<128x576xbf16, #tpu.memory_space<vmem>>, vector<128x64xbf16>,
    %c0_75 = arith.constant 0 : index
    %c0_76 = arith.constant 0 : index
    %49 = vector.load %arg15[%c0_75, %c0_76] : memref<128x576xbf16, #tpu.memory_space<vmem>>, vector<128x576xbf16>
    %c0_77 = arith.constant 0 : index
    %c0_78 = arith.constant 0 : index
    %50 = vector.load %arg5[%c0_77, %c0_78] : memref<576x64xbf16, #tpu.memory_space<vmem>>, vector<576x64xbf16>
    %cst_79 = arith.constant dense<0.000000e+00> : vector<128x64xf32>
    %51 = tpu.matmul %49, %50, %cst_79 {dimension_numbers = #tpu.dot_dimension_numbers<[1], [0], [0], [1], [0, 0, 1, 1], [], []>} : vector<128x576xbf16>, vector<576x64xbf16>, vector<128x64xf32> -> vector<128x64xf32>
    %c0_80 = arith.constant 0 : index
    %c0_81 = arith.constant 0 : index
    %52 = vector.load %arg6[%c0_80, %c0_81] : memref<1x64xf32, #tpu.memory_space<vmem>>, vector<1x64xf32>
    %53 = vector.broadcast %52 : vector<1x64xf32> to vector<128x64xf32>
    %54 = arith.mulf %51, %53 : vector<128x64xf32>
    %c0_82 = arith.constant 0 : index
    %c0_83 = arith.constant 0 : index
    %55 = vector.load %arg7[%c0_82, %c0_83] : memref<1x64xf32, #tpu.memory_space<vmem>>, vector<1x64xf32>
    %56 = vector.broadcast %55 : vector<1x64xf32> to vector<128x64xf32>
    %57 = arith.addf %54, %56 : vector<128x64xf32>
    %cst_84 = arith.constant 0.000000e+00 : f32
    %58 = vector.broadcast %cst_84 : f32 to vector<128x64xf32>
    %59 = arith.maximumf %57, %58 : vector<128x64xf32>
    %60 = arith.truncf %59 : vector<128x64xf32> to vector<128x64xbf16>
    %c0_85 = arith.constant 0 : index
    %c0_86 = arith.constant 0 : index
    %61 = vector.load %arg8[%c0_85, %c0_86] : memref<64x256xbf16, #tpu.memory_space<vmem>>, vector<64x256xbf16>
    %cst_87 = arith.constant dense<0.000000e+00> : vector<128x256xf32>
    %62 = tpu.matmul %60, %61, %cst_87 {dimension_numbers = #tpu.dot_dimension_numbers<[1], [0], [0], [1], [0, 0, 1, 1], [], []>} : vector<128x64xbf16>, vector<64x256xbf16>, vector<128x256xf32> -> vector<128x256xf32>
    %c0_88 = arith.constant 0 : index
    %c0_89 = arith.constant 0 : index
    %63 = vector.load %arg9[%c0_88, %c0_89] : memref<1x256xf32, #tpu.memory_space<vmem>>, vector<1x256xf32>
    %64 = vector.broadcast %63 : vector<1x256xf32> to vector<128x256xf32>
    %65 = arith.mulf %62, %64 : vector<128x256xf32>
    %c0_90 = arith.constant 0 : index
    %c0_91 = arith.constant 0 : index
    %66 = vector.load %arg10[%c0_90, %c0_91] : memref<1x256xf32, #tpu.memory_space<vmem>>, vector<1x256xf32>
    %67 = vector.broadcast %66 : vector<1x256xf32> to vector<128x256xf32>
    %68 = arith.addf %65, %67 : vector<128x256xf32>
    %69 = arith.addf %68, %1 : vector<128x256xf32>
    %cst_92 = arith.constant 0.000000e+00 : f32
    %70 = vector.broadcast %cst_92 : f32 to vector<128x256xf32>
    %71 = arith.maximumf %69, %70 : vector<128x256xf32>
    %72 = vector.shape_cast %71 : vector<128x256xf32> to vector<2x64x256xf32>
    %cst_93 = arith.constant dense<0.000000e+00> : vector<2x256xf32>
    %73 = vector.multi_reduction <add>, %72, %cst_93 [1] : vector<2x64x256xf32> to vector<2x256xf32>
    %cst_94 = arith.constant 6.400000e+01 : f32
    %74 = vector.broadcast %cst_94 : f32 to vector<2x256xf32>
    %75 = arith.divf %73, %74 : vector<2x256xf32>
    %76 = arith.truncf %75 : vector<2x256xf32> to vector<2x256xbf16>
    %c0_95 = arith.constant 0 : index
    %c0_96 = arith.constant 0 : index
    %77 = vector.load %arg11[%c0_95, %c0_96] : memref<256x128xbf16, #tpu.memory_space<vmem>>, vector<256x128xbf16>
    %cst_97 = arith.constant dense<0.000000e+00> : vector<2x128xf32>
    %78 = tpu.matmul %76, %77, %cst_97 {dimension_numbers = #tpu.dot_dimension_numbers<[1], [0], [0], [1], [0, 0, 1, 1], [], []>} : vector<2x256xbf16>, vector<256x128xbf16>, vector<2x128xf32> -> vector<2x128xf32>
    %c0_98 = arith.constant 0 : index
    %c0_99 = arith.constant 0 : index
    %79 = vector.load %arg12[%c0_98, %c0_99] : memref<1x128xf32, #tpu.memory_space<vmem>>, vector<1x128xf32>
    %80 = vector.broadcast %79 : vector<1x128xf32> to vector<2x128xf32>
    %81 = arith.addf %78, %80 : vector<2x128xf32>
    %82 = vector.shape_cast %81 : vector<2x128xf32> to vector<1x2x128xf32>
    %c0_100 = arith.constant 0 : index
    %c0_101 = arith.constant 0 : index
    %c0_102 = arith.constant 0 : index
    %83 = vector.load %arg13[%c0_100, %c0_101, %c0_102] : memref<1x2x128xf32, #tpu.memory_space<vmem>>, vector<1x2x128xf32>
    tpu.vector_store %arg13[%c0_100, %c0_101, %c0_102], %82 {strides = array<i32>} : memref<1x2x128xf32, #tpu.memory_space<vmem>>, vector<1x2x128xf32>,
    return
  }
  func.func @transform_0(%arg0: i32) -> (i32, i32, i32, i32) {
    %c0_i32 = arith.constant 0 : i32
    %c0_i32_0 = arith.constant 0 : i32
    %c0_i32_1 = arith.constant 0 : i32
    %c0_i32_2 = arith.constant 0 : i32
    return %arg0, %c0_i32, %c0_i32_0, %c0_i32_1 : i32, i32, i32, i32
  }
  func.func @transform_1(%arg0: i32) -> (i32, i32) {
    %c0_i32 = arith.constant 0 : i32
    %c0_i32_0 = arith.constant 0 : i32
    %c0_i32_1 = arith.constant 0 : i32
    return %c0_i32, %c0_i32_0 : i32, i32
  }
  func.func @transform_2(%arg0: i32) -> (i32, i32) {
    %c0_i32 = arith.constant 0 : i32
    %c0_i32_0 = arith.constant 0 : i32
    %c0_i32_1 = arith.constant 0 : i32
    return %c0_i32, %c0_i32_0 : i32, i32
  }
  func.func @transform_3(%arg0: i32) -> (i32, i32) {
    %c0_i32 = arith.constant 0 : i32
    %c0_i32_0 = arith.constant 0 : i32
    %c0_i32_1 = arith.constant 0 : i32
    return %c0_i32, %c0_i32_0 : i32, i32
  }
  func.func @transform_4(%arg0: i32) -> (i32, i32) {
    %c0_i32 = arith.constant 0 : i32
    %c0_i32_0 = arith.constant 0 : i32
    %c0_i32_1 = arith.constant 0 : i32
    return %c0_i32, %c0_i32_0 : i32, i32
  }
  func.func @transform_5(%arg0: i32) -> (i32, i32) {
    %c0_i32 = arith.constant 0 : i32
    %c0_i32_0 = arith.constant 0 : i32
    %c0_i32_1 = arith.constant 0 : i32
    return %c0_i32, %c0_i32_0 : i32, i32
  }
  func.func @transform_6(%arg0: i32) -> (i32, i32) {
    %c0_i32 = arith.constant 0 : i32
    %c0_i32_0 = arith.constant 0 : i32
    %c0_i32_1 = arith.constant 0 : i32
    return %c0_i32, %c0_i32_0 : i32, i32
  }
  func.func @transform_7(%arg0: i32) -> (i32, i32) {
    %c0_i32 = arith.constant 0 : i32
    %c0_i32_0 = arith.constant 0 : i32
    %c0_i32_1 = arith.constant 0 : i32
    return %c0_i32, %c0_i32_0 : i32, i32
  }
  func.func @transform_8(%arg0: i32) -> (i32, i32) {
    %c0_i32 = arith.constant 0 : i32
    %c0_i32_0 = arith.constant 0 : i32
    %c0_i32_1 = arith.constant 0 : i32
    return %c0_i32, %c0_i32_0 : i32, i32
  }
  func.func @transform_9(%arg0: i32) -> (i32, i32) {
    %c0_i32 = arith.constant 0 : i32
    %c0_i32_0 = arith.constant 0 : i32
    %c0_i32_1 = arith.constant 0 : i32
    return %c0_i32, %c0_i32_0 : i32, i32
  }
  func.func @transform_10(%arg0: i32) -> (i32, i32) {
    %c0_i32 = arith.constant 0 : i32
    %c0_i32_0 = arith.constant 0 : i32
    %c0_i32_1 = arith.constant 0 : i32
    return %c0_i32, %c0_i32_0 : i32, i32
  }
  func.func @transform_11(%arg0: i32) -> (i32, i32) {
    %c0_i32 = arith.constant 0 : i32
    %c0_i32_0 = arith.constant 0 : i32
    %c0_i32_1 = arith.constant 0 : i32
    return %c0_i32, %c0_i32_0 : i32, i32
  }
  func.func @transform_12(%arg0: i32) -> (i32, i32, i32) {
    %c0_i32 = arith.constant 0 : i32
    %c0_i32_0 = arith.constant 0 : i32
    %c0_i32_1 = arith.constant 0 : i32
    return %arg0, %c0_i32, %c0_i32_0 : i32, i32, i32
  }
}

</mosaic_0001>

<bundles_post_ra>
// kernel: faster_rcnn_detector.1
= control target key start
LH: loop header
LB: loop body
LE: loop exit
PB: predicated region body
PF: predicated region fallthrough
CT: control target
= control target key end

     0   :  { %s6328_s0 = inlined_call_operand.vmem [shape: f32[2,8,8,256], index: 0, kind: input, shape index: {}]   ;;  %s6329_s1 = inlined_call_operand.vmem [shape: bf16[256,64], index: 1, kind: input, shape index: {}]   ;;  %s6330_s2 = inlined_call_operand.vmem [shape: f32[1,64], index: 2, kind: input, shape index: {}]   ;;  %s6331_s3 = inlined_call_operand.vmem [shape: f32[1,64], index: 3, kind: input, shape index: {}]   ;;  %s6332_s4 = inlined_call_operand.vmem [shape: bf16[576,64], index: 4, kind: input, shape index: {}]   ;;  %s6333_s5 = inlined_call_operand.vmem [shape: f32[1,64], index: 5, kind: input, shape index: {}]   ;;  %s6334_s6 = inlined_call_operand.vmem [shape: f32[1,64], index: 6, kind: input, shape index: {}]   ;;  %s6335_s7 = inlined_call_operand.vmem [shape: bf16[64,256], index: 7, kind: input, shape index: {}]   ;;  %s6336_s8 = inlined_call_operand.vmem [shape: f32[1,256], index: 8, kind: input, shape index: {}]   ;;  %s6337_s9 = inlined_call_operand.vmem [shape: f32[1,256], index: 9, kind: input, shape index: {}]   ;;  %s6338_s10 = inlined_call_operand.vmem [shape: bf16[256,128], index: 10, kind: input, shape index: {}]   ;;  %s6339_s11 = inlined_call_operand.vmem [shape: f32[1,128], index: 11, kind: input, shape index: {}]   ;;  %s6340_s12 = inlined_call_operand.hbm [shape: f32[1,2,128], index: 12, kind: output, shape index: {}]  }
   0x1   :  { %v4440_v0 = vld [vmem:[%s6329_s1 + $0x78] sm:$0xff]   ;;  %v4442_v2 = vld [vmem:[%s6329_s1 + $0x70] sm:$0xff]   ;;  %v4444_v4 = vld [vmem:[%s6329_s1 + $0x68] sm:$0xff]  }
   0x2   :  { %v4441_v1 = vld [vmem:[%s6329_s1 + $0x38] sm:$0xff]   ;;  %4187 = vmatprep.subr.bf16.mxu0 %v4440_v0  ;;  %v4443_v3 = vld [vmem:[%s6329_s1 + $0x30] sm:$0xff]   ;;  %v4445_v5 = vld [vmem:[%s6329_s1 + $0x28] sm:$0xff]  }
   0x3   :  { %4188 = vmatpush3.bf16.msra.mxu0 %v4441_v1  ;;  %v4446_v6 = vld [vmem:[%s6329_s1 + $0x60] sm:$0xff]   ;;  %v4448_v8 = vld [vmem:[%s6329_s1 + $0x58] sm:$0xff]   ;;  %v4450_v10 = vld [vmem:[%s6329_s1 + $0x50] sm:$0xff]  }
   0x4   :  { %4189 = vmatprep.subr.bf16.mxu0 %v4442_v2  ;;  %v4447_v7 = vld [vmem:[%s6329_s1 + $0x20] sm:$0xff]   ;;  %v4449_v9 = vld [vmem:[%s6329_s1 + $0x18] sm:$0xff]   ;;  %v44_v11 = vld [vmem:[%s6328_s0 + $0x8] sm:$0xff] }
   0x5   :  { %v46_v12 = vld [vmem:[%s6328_s0 + $0x18] sm:$0xff]  ;;  %v4451_v14 = vld [vmem:[%s6329_s1 + $0x10] sm:$0xff]   ;;  %v4452_v15 = vld [vmem:[%s6329_s1 + $0x48] sm:$0xff]  }
   0x6   :  { %v76_v13 = vpack.c.bf16 %v46_v12, %v44_v11  ;;  %v4453_v16 = vld [vmem:[%s6329_s1 + $0x8] sm:$0xff]   ;;  %v4454_v17 = vld [vmem:[%s6329_s1 + $0x40] sm:$0xff]   ;;  %v45_v20 = vld [vmem:[%s6328_s0 + $0x10] sm:$0xff] }
   0x7   :  { %4190 = vmatpush3.bf16.msra.mxu0 %v4443_v3  ;;  %v4455_v18 = vld [vmem:[%s6329_s1] sm:$0xff]   ;;  %v48_v21 = vld [vmem:[%s6328_s0 + $0x28] sm:$0xff]  ;;  %v50_v22 = vld [vmem:[%s6328_s0 + $0x38] sm:$0xff] }
   0x8   :  { %4191 = vmatprep.subr.bf16.mxu0 %v4444_v4  ;;  %251 = vmatprep.mubr.bf16.mxu0 %v76_v13  ;;  %v43_v19 = vld [vmem:[%s6328_s0] sm:$0xff]  ;;  %v78_v24 = vpack.c.bf16 %v50_v22, %v48_v21  ;;  %v49_v26 = vld [vmem:[%s6328_s0 + $0x30] sm:$0xff]  ;;  %v52_v27 = vld [vmem:[%s6328_s0 + $0x48] sm:$0xff] }
   0x9   :  { %v75_v23 = vpack.c.bf16 %v45_v20, %v43_v19  ;;  %v47_v25 = vld [vmem:[%s6328_s0 + $0x20] sm:$0xff]  ;;  %v54_v28 = vld [vmem:[%s6328_s0 + $0x58] sm:$0xff]  ;;  %v53_v32 = vld [vmem:[%s6328_s0 + $0x50] sm:$0xff] }
   0xa   :  { %v77_v29 = vpack.c.bf16 %v49_v26, %v47_v25  ;;  %v80_v30 = vpack.c.bf16 %v54_v28, %v52_v27  ;;  %v51_v31 = vld [vmem:[%s6328_s0 + $0x40] sm:$0xff]  ;;  %v56_v33 = vld [vmem:[%s6328_s0 + $0x68] sm:$0xff]  ;;  %v58_v34 = vld [vmem:[%s6328_s0 + $0x78] sm:$0xff] }
   0xb   :  { %4192 = vmatpush3.bf16.msra.mxu0 %v4445_v5  ;;  %v79_v35 = vpack.c.bf16 %v53_v32, %v51_v31  ;;  %v82_v36 = vpack.c.bf16 %v58_v34, %v56_v33  ;;  %v55_v37 = vld [vmem:[%s6328_s0 + $0x60] sm:$0xff]  ;;  %v57_v38 = vld [vmem:[%s6328_s0 + $0x70] sm:$0xff]  ;;  %v60_v39 = vld [vmem:[%s6328_s0 + $0x88] sm:$0xff] }
   0xc   :  { %4193 = vmatprep.subr.bf16.mxu0 %v4446_v6  ;;  %v62_v40 = vld [vmem:[%s6328_s0 + $0x98] sm:$0xff]  ;;  %v81_v41 = vpack.c.bf16 %v57_v38, %v55_v37  ;;  %v59_v43 = vld [vmem:[%s6328_s0 + $0x80] sm:$0xff]  ;;  %v61_v44 = vld [vmem:[%s6328_s0 + $0x90] sm:$0xff] }
   0xd   :  { %v84_v42 = vpack.c.bf16 %v62_v40, %v60_v39  ;;  %v64_v45 = vld [vmem:[%s6328_s0 + $0xa8] sm:$0xff]  ;;  %v66_v46 = vld [vmem:[%s6328_s0 + $0xb8] sm:$0xff]  ;;  %v83_v47 = vpack.c.bf16 %v61_v44, %v59_v43 }
   0xe   :  { %v86_v48 = vpack.c.bf16 %v66_v46, %v64_v45 }
   0xf   :  { %4194 = vmatpush3.bf16.msra.mxu0 %v4447_v7 }
  0x10   :  { %4195 = vmatprep.subr.bf16.mxu0 %v4448_v8 }
  0x13   :  { %4196 = vmatpush3.bf16.msra.mxu0 %v4449_v9 }
  0x14   :  { %4197 = vmatprep.subr.bf16.mxu0 %v4450_v10 }
  0x17   :  { %4198 = vmatpush3.bf16.msra.mxu0 %v4451_v14 }
  0x18   :  { %4199 = vmatprep.subr.bf16.mxu0 %v4452_v15 }
  0x1b   :  { %4200 = vmatpush3.bf16.msra.mxu0 %v4453_v16 }
  0x1c   :  { %4201 = vmatprep.subr.bf16.mxu0 %v4454_v17 }
  0x1f   :  { %4202 = vmatpush3.bf16.msra.mxu0 %v4455_v18 }
  0x22   :  { %252 = vmatmul.mubr.bf16.vlgmr.msra.gmra.mxu0 %v75_v23 }
  0x23   :  { %259 = vmatprep.mubr.bf16.mxu0 %v78_v24 }
  0x2a   :  { %260 = vmatmul.mubr.bf16.gmra.mxu0 %v77_v29 }
  0x2b   :  { %267 = vmatprep.mubr.bf16.mxu0 %v80_v30 }
  0x32   :  { %268 = vmatmul.mubr.bf16.gmra.mxu0 %v79_v35 }
  0x33   :  { %275 = vmatprep.mubr.bf16.mxu0 %v82_v36 }
  0x3a   :  { %276 = vmatmul.mubr.bf16.gmra.mxu0 %v81_v41 }
  0x3b   :  { %283 = vmatprep.mubr.bf16.mxu0 %v84_v42 }
  0x3c   :  { %17 = vsyncpa [#allocation5], 0  ;;  %v63_v49 = vld [vmem:[%s6328_s0 + $0xa0] sm:$0xff]  ;;  %v65_v50 = vld [vmem:[%s6328_s0 + $0xb0] sm:$0xff]  ;;  %vm378_vm0 = vcmask 519168   ;;  %v6341_v0 = vmov 0  }
  0x3d   :  { %v68_v51 = vld [vmem:[%s6328_s0 + $0xc8] sm:$0xff]  ;;  %v70_v52 = vld [vmem:[%s6328_s0 + $0xd8] sm:$0xff]  ;;  %v85_v53 = vpack.c.bf16 %v65_v50, %v63_v49  ;;  %v67_v55 = vld [vmem:[%s6328_s0 + $0xc0] sm:$0xff]  ;;  %379 = vst.msk [vmem:[#allocation2] sm:$0xf] %vm378_vm0, %v6341_v0  ;;  %vm380_vm1 = vcmask 516096  }
  0x3e   :  { %v88_v54 = vpack.c.bf16 %v70_v52, %v68_v51  ;;  %v69_v56 = vld [vmem:[%s6328_s0 + $0xd0] sm:$0xff]  ;;  %v72_v57 = vld [vmem:[%s6328_s0 + $0xe8] sm:$0xff]  ;;  %v74_v58 = vld [vmem:[%s6328_s0 + $0xf8] sm:$0xff]  ;;  %382 = vst.msk [vmem:[#allocation2 + $0x50] sm:$0xf] %vm378_vm0, %v6341_v0  ;;  %s4620_s24 = smov 64  }
  0x3f   :  { %v87_v59 = vpack.c.bf16 %v69_v56, %v67_v55  ;;  %v90_v60 = vpack.c.bf16 %v74_v58, %v72_v57  ;;  %v71_v61 = vld [vmem:[%s6328_s0 + $0xe0] sm:$0xff]  ;;  %v73_v62 = vld [vmem:[%s6328_s0 + $0xf0] sm:$0xff]  ;;  %385 = vst.msk [vmem:[#allocation2 + $0x48] sm:$0xf] %vm378_vm0, %v6341_v0  ;;  %387 = vst.msk [vmem:[#allocation2 + $0x98] sm:$0xf] %vm378_vm0, %v6341_v0 }
  0x40   :  { %v89_v63 = vpack.c.bf16 %v73_v62, %v71_v61  ;;  %381 = vst.msk [vmem:[#allocation2 + $0x4] sm:$0x1] %vm380_vm1, %v6341_v0  ;;  %383 = vst.msk [vmem:[#allocation2 + $0x54] sm:$0x1] %vm380_vm1, %v6341_v0  ;;  %vm390_vm2 = vsmask.f32 256 }
  0x41   :  { %386 = vst.msk [vmem:[#allocation2 + $0x4c] sm:$0x1] %vm380_vm1, %v6341_v0  ;;  %388 = vst.msk [vmem:[#allocation2 + $0x9c] sm:$0x1] %vm380_vm1, %v6341_v0  ;;  %vm452_vm3 = vsmask.f32 7938 }
  0x42   :  { %284 = vmatmul.mubr.bf16.gmra.mxu0 %v83_v47  ;;  %vm4843_vm4 = vmand %vm380_vm1, %vm390_vm2  ;;  %v395_v2 = vld [vmem:[#allocation2 + $0x8] sm:$0x1]  ;;  %v457_v3 = vld [vmem:[#allocation2 + $0xc] sm:$0x1]  ;;  %vm901_vm6 = vsmask.f32 3328 }
  0x43   :  { %291 = vmatprep.mubr.bf16.mxu0 %v86_v48  ;;  %v396_v4 = vsel %vm4843_vm4, 0, %v395_v2  ;;  %vm4850_vm5 = vmand %vm380_vm1, %vm452_vm3  ;;  %v398_v9 = vld [vmem:[#allocation2 + $0x10] sm:$0x1]  ;;  %v460_v10 = vld [vmem:[#allocation2 + $0x14] sm:$0x1]  ;;  %vm1257_vm10 = vcmask 1042432  }
  0x44   :  { %v392_v6 = vld [vmem:[#allocation2] sm:$0x1]  ;;  %397 = vst [vmem:[#allocation2 + $0x8] sm:$0x1] %v396_v4  ;;  %v458_v7 = vsel %vm4850_vm5, 0, %v457_v3  ;;  %v399_v11 = vsel %vm4843_vm4, 0, %v398_v9  ;;  %vm4953_vm9 = vmand %vm378_vm0, %vm452_vm3 }
  0x45   :  { %v393_v8 = vsel %vm4843_vm4, 0, %v392_v6  ;;  %459 = vst [vmem:[#allocation2 + $0xc] sm:$0x1] %v458_v7  ;;  %v461_v12 = vsel %vm4850_vm5, 0, %v460_v10  ;;  %400 = vst [vmem:[#allocation2 + $0x10] sm:$0x1] %v399_v11 }
  0x46   :  { %394 = vst [vmem:[#allocation2] sm:$0x1] %v393_v8  ;;  %462 = vst [vmem:[#allocation2 + $0x14] sm:$0x1] %v461_v12  ;;  %v401_v15 = vld [vmem:[#allocation2 + $0x18] sm:$0x1] }
  0x47   :  { %v454_v13 = vld [vmem:[#allocation2 + $0x4] sm:$0x1]  ;;  %v463_v16 = vld [vmem:[#allocation2 + $0x1c] sm:$0x1]  ;;  %v402_v17 = vsel %vm4843_vm4, 0, %v401_v15  ;;  %vm1258_vm11 = vcmask 1046532  }
  0x48   :  { %v455_v14 = vsel %vm4850_vm5, 0, %v454_v13  ;;  %v464_v18 = vsel %vm4850_vm5, 0, %v463_v16  ;;  %403 = vst [vmem:[#allocation2 + $0x18] sm:$0x1] %v402_v17  ;;  %v404_v22 = vld [vmem:[#allocation2 + $0x20] sm:$0x1]  ;;  %vm5174_vm12 = vmor %vm1257_vm10, %vm1258_vm11 }
  0x49   :  { %456 = vst [vmem:[#allocation2 + $0x4] sm:$0x1] %v455_v14  ;;  %465 = vst [vmem:[#allocation2 + $0x1c] sm:$0x1] %v464_v18  ;;  %v405_v23 = vsel %vm4843_vm4, 0, %v404_v22  ;;  %vm1176_vm13 = vcmask 1043968  }
  0x4a   :  { %292 = vmatmul.mubr.bf16.gmra.mxu0 %v85_v53  ;;  %v466_v24 = vld [vmem:[#allocation2 + $0x24] sm:$0x1]  ;;  %406 = vst [vmem:[#allocation2 + $0x20] sm:$0x1] %v405_v23  ;;  %v407_v30 = vld [vmem:[#allocation2 + $0x28] sm:$0x1] }
  0x4b   :  { %299 = vmatprep.mubr.bf16.mxu0 %v88_v54  ;;  %v467_v27 = vsel %vm4850_vm5, 0, %v466_v24  ;;  %v469_v31 = vld [vmem:[#allocation2 + $0x2c] sm:$0x1]  ;;  %v408_v33 = vsel %vm4843_vm4, 0, %v407_v30  ;;  %vm902_vm7 = vsmask.f32 7440 }
  0x4c   :  { %468 = vst [vmem:[#allocation2 + $0x24] sm:$0x1] %v467_v27  ;;  %v470_v34 = vsel %vm4850_vm5, 0, %v469_v31  ;;  %409 = vst [vmem:[#allocation2 + $0x28] sm:$0x1] %v408_v33  ;;  %vm2981_vm14 = vcmask 523264  }
  0x4d   :  { %v869_v19 = vld [vmem:[#allocation2] sm:$0xf]  ;;  %471 = vst [vmem:[#allocation2 + $0x2c] sm:$0x1] %v470_v34  ;;  %vm4876_vm8 = vmor %vm901_vm6, %vm902_vm7  ;;  %v422_v38 = vld [vmem:[#allocation2 + $0x50] sm:$0x1] }
  0x4e   :  { %v905_v20 = vshrl.u32 %v869_v19, 16  ;;  %v908_v21 = vshll.u32 %v869_v19, 16  ;;  %v410_v39 = vld [vmem:[#allocation2 + $0x30] sm:$0x1]  ;;  %v472_v40 = vld [vmem:[#allocation2 + $0x34] sm:$0x1] }
  0x4f   :  { %v423_v42 = vsel %vm4843_vm4, 0, %v422_v38  ;;  %v411_v43 = vsel %vm4843_vm4, 0, %v410_v39  ;;  %v473_v44 = vsel %vm4850_vm5, 0, %v472_v40  ;;  %v484_v45 = vld [vmem:[#allocation2 + $0x54] sm:$0x1]  ;;  %vm3812_vm15 = vcmask 1041409  }
  0x50   :  { %v870_v25 = vld [vmem:[#allocation2 + $0x4] sm:$0x1]  ;;  %v907_v26 = vrot.slane %v905_v20, 4  ;;  %v910_v28 = vrot.slane %v908_v21, 5  ;;  %424 = vst [vmem:[#allocation2 + $0x50] sm:$0x1] %v423_v42 }
  0x51   :  { %v914_v29 = vshll.u32 %v870_v25, 16  ;;  %412 = vst [vmem:[#allocation2 + $0x30] sm:$0x1] %v411_v43  ;;  %474 = vst [vmem:[#allocation2 + $0x34] sm:$0x1] %v473_v44  ;;  %v485_v48 = vsel %vm4850_vm5, 0, %v484_v45 }
  0x52   :  { %300 = vmatmul.mubr.bf16.gmra.mxu0 %v87_v59  ;;  %v911_v32 = vor.u32 %v910_v28, %v907_v26  ;;  %v413_v46 = vld [vmem:[#allocation2 + $0x38] sm:$0x1]  ;;  %v475_v47 = vld [vmem:[#allocation2 + $0x3c] sm:$0x1]  ;;  %486 = vst [vmem:[#allocation2 + $0x54] sm:$0x1] %v485_v48 }
  0x53   :  { %307 = vmatprep.mubr.bf16.mxu0 %v90_v60  ;;  %v916_v36 = vrot.slane %v914_v29, 5  ;;  %v414_v49 = vsel %vm4843_vm4, 0, %v413_v46  ;;  %v476_v50 = vsel %vm4850_vm5, 0, %v475_v47  ;;  %v416_v51 = vld [vmem:[#allocation2 + $0x40] sm:$0x1]  ;;  %s4621_s30 = smov [#allocation4]  }
  0x54   :  { %v912_v35 = vrot.slane %v911_v32, 4  ;;  %415 = vst [vmem:[#allocation2 + $0x38] sm:$0x1] %v414_v49  ;;  %477 = vst [vmem:[#allocation2 + $0x3c] sm:$0x1] %v476_v50  ;;  %v417_v53 = vsel %vm4843_vm4, 0, %v416_v51 }
  0x55   :  { %v478_v52 = vld [vmem:[#allocation2 + $0x44] sm:$0x1]  ;;  %418 = vst [vmem:[#allocation2 + $0x40] sm:$0x1] %v417_v53  ;;  %v425_v55 = vld [vmem:[#allocation2 + $0x58] sm:$0x1] }
  0x56   :  { %v917_v41 = vsel %vm4876_vm8, %v912_v35, %v916_v36  ;;  %v479_v54 = vsel %vm4850_vm5, 0, %v478_v52  ;;  %v426_v56 = vsel %vm4843_vm4, 0, %v425_v55  ;;  %v487_v57 = vld [vmem:[#allocation2 + $0x5c] sm:$0x1]  ;;  %v428_v59 = vld [vmem:[#allocation2 + $0x60] sm:$0x1] }
  0x57   :  { %1128 = vrot.lane.b32.xlu0 %v917_v41, %s4620_s24  ;;  %480 = vst [vmem:[#allocation2 + $0x44] sm:$0x1] %v479_v54  ;;  %427 = vst [vmem:[#allocation2 + $0x58] sm:$0x1] %v426_v56  ;;  %v488_v58 = vsel %vm4850_vm5, 0, %v487_v57  ;;  %v429_v61 = vsel %vm4843_vm4, 0, %v428_v59 }
  0x58   :  { %489 = vst [vmem:[#allocation2 + $0x5c] sm:$0x1] %v488_v58  ;;  %v490_v60 = vld [vmem:[#allocation2 + $0x64] sm:$0x1]  ;;  %430 = vst [vmem:[#allocation2 + $0x60] sm:$0x1] %v429_v61 }
  0x59   :  { %v491_v62 = vsel %vm4850_vm5, 0, %v490_v60  ;;  %v493_v2 = vld [vmem:[#allocation2 + $0x6c] sm:$0x1]  ;;  %v434_v6 = vld [vmem:[#allocation2 + $0x70] sm:$0x1]  ;;  %s3962_s13 = sshll.u32 %s4621_s30, 4  ;;  %s3963_s13 = int_to_ptr.vmem [resolvable:$true] %s3962_s13 }
  0x5a   :  { %308 = vmatmul.mubr.bf16.gmra.mxu0 %v89_v63  ;;  %492 = vst [vmem:[#allocation2 + $0x64] sm:$0x1] %v491_v62  ;;  %v431_v63 = vld [vmem:[#allocation2 + $0x68] sm:$0x1]  ;;  %v494_v4 = vsel %vm4850_vm5, 0, %v493_v2  ;;  %v435_v8 = vsel %vm4843_vm4, 0, %v434_v6  ;;  %p4602_p1 = scmp.lt.s32.totalorder %s3963_s13, %s3963_s13 }
  0x5b   :  { %v432_v3 = vsel %vm4843_vm4, 0, %v431_v63  ;;  %495 = vst [vmem:[#allocation2 + $0x6c] sm:$0x1] %v494_v4  ;;  %v496_v7 = vld [vmem:[#allocation2 + $0x74] sm:$0x1]  ;;  %s4597_s14 = scalar_lea.vmem %s3963_s13, 32 }
  0x5c   :  { %433 = vst [vmem:[#allocation2 + $0x68] sm:$0x1] %v432_v3  ;;  %v497_v9 = vsel %vm4850_vm5, 0, %v496_v7  ;;  %436 = vst [vmem:[#allocation2 + $0x70] sm:$0x1] %v435_v8  ;;  %p4598_p0 = scmp.ne.s32.totalorder %s3963_s13, %s4597_s14  ;;  %p4603_p2 = scmp.lt.s32.totalorder %s4597_s14, %s4597_s14 }
  0x5d   :  { %498 = vst [vmem:[#allocation2 + $0x74] sm:$0x1] %v497_v9  ;;  %v437_v10 = vld [vmem:[#allocation2 + $0x78] sm:$0x1]  ;;  %v499_v11 = vld [vmem:[#allocation2 + $0x7c] sm:$0x1] }
  0x5e   :  { %v438_v12 = vsel %vm4843_vm4, 0, %v437_v10  ;;  %v500_v13 = vsel %vm4850_vm5, 0, %v499_v11  ;;  %v440_v14 = vld [vmem:[#allocation2 + $0x80] sm:$0x1]  ;;  %v502_v16 = vld [vmem:[#allocation2 + $0x84] sm:$0x1]  ;;  %p4604_p3 = por %p4603_p2, %p4602_p1 }
  0x5f   :  { %439 = vst [vmem:[#allocation2 + $0x78] sm:$0x1] %v438_v12  ;;  %501 = vst [vmem:[#allocation2 + $0x7c] sm:$0x1] %v500_v13  ;;  %v441_v15 = vsel %vm4843_vm4, 0, %v440_v14  ;;  %v503_v17 = vsel %vm4850_vm5, 0, %v502_v16 }
  0x60   :  { %442 = vst [vmem:[#allocation2 + $0x80] sm:$0x1] %v441_v15  ;;  %504 = vst [vmem:[#allocation2 + $0x84] sm:$0x1] %v503_v17  ;;  %v443_v18 = vld [vmem:[#allocation2 + $0x88] sm:$0x1]  ;;  %p4605_p4 = pnand %p4604_p3, %p4598_p0 }
  0x61   :  { %v505_v19 = vld [vmem:[#allocation2 + $0x8c] sm:$0x1]  ;;  %v444_v20 = vsel %vm4843_vm4, 0, %v443_v18  ;;  %v446_v22 = vld [vmem:[#allocation2 + $0x90] sm:$0x1] }
  0x62   :  { %v506_v21 = vsel %vm4850_vm5, 0, %v505_v19  ;;  %445 = vst [vmem:[#allocation2 + $0x88] sm:$0x1] %v444_v20  ;;  %v508_v23 = vld [vmem:[#allocation2 + $0x94] sm:$0x1]  ;;  %v447_v24 = vsel %vm4843_vm4, 0, %v446_v22 }
  0x63   :  { %507 = vst [vmem:[#allocation2 + $0x8c] sm:$0x1] %v506_v21  ;;  %v509_v25 = vsel %vm4850_vm5, 0, %v508_v23  ;;  %448 = vst [vmem:[#allocation2 + $0x90] sm:$0x1] %v447_v24 }
  0x64   :  { %510 = vst [vmem:[#allocation2 + $0x94] sm:$0x1] %v509_v25  ;;  %v481_v26 = vld [vmem:[#allocation2 + $0x4c] sm:$0x1]  ;;  %v4936_v30 = vld [vmem:[%s6330_s2] ss:$0 sm:$0xff] }
  0x65   :  { %v482_v27 = vsel %vm4850_vm5, 0, %v481_v26  ;;  %v4941_v32 = vld [vmem:[%s6331_s3] ss:$0 sm:$0xff]  ;;  %v419_v47 = vld [vmem:[#allocation2 + $0x48] sm:$0x1] }
  0x66   :  { %483 = vst [vmem:[#allocation2 + $0x4c] sm:$0x1] %v482_v27  ;;  %v885_v51 = vld [vmem:[#allocation2 + $0x50] sm:$0xf]  ;;  %v420_v54 = vsel %vm4843_vm4, 0, %v419_v47 }
  0x67   :  { %421 = vst [vmem:[#allocation2 + $0x48] sm:$0x1] %v420_v54  ;;  %v741_v60 = vld [vmem:[#allocation2 + $0x8] sm:$0xf]  ;;  %v744_v61 = vld [vmem:[#allocation2 + $0xc] sm:$0x1] }
  0x68   :  { %v1017_v63 = vshrl.u32 %v885_v51, 16  ;;  %v1020_v6 = vshll.u32 %v885_v51, 16  ;;  %v747_v15 = vld [vmem:[#allocation2 + $0x10] sm:$0xf]  ;;  %v750_v16 = vld [vmem:[#allocation2 + $0x14] sm:$0x1] }
  0x6a   :  { %v4963_v20 = vrot.slane %v1017_v63, 4  ;;  %v4966_v24 = vrot.slane %v1020_v6, 5 }
  0xe2   :  { %v4203_v28 = vpop.f32.mrf.mxu0 }
  0xe4   :  { %v4204_v29 = vpop.f32.mrf.mxu0 }
  0xe5   :  { %v4205_v31 = vadd.f32 %v4204_v29, %v4203_v28  ;;  %v4456_v28 = vld [vmem:[%s6332_s4 + $0x78] sm:$0xff]  }
  0xe6   :  { %v4206_v33 = vpop.f32.mrf.mxu0  ;;  %4251 = vmatprep.subr.bf16.mxu1 %v4456_v28  ;;  %v768_v28 = vld [vmem:[#allocation2 + $0x2c] sm:$0x1] }
  0xe7   :  { %v323_v34 = vmul.f32 %v4205_v31, %v4936_v30 }
  0xe8   :  { %v4207_v35 = vpop.f32.mrf.mxu0 }
  0xe9   :  { %v346_v36 = vadd.f32 %v4941_v32, %v323_v34  ;;  %v4208_v38 = vadd.f32 %v4207_v35, %v4206_v33  ;;  %v4976_v35 = vld [vmem:[#allocation2 + $0x54] sm:$0x1] }
  0xea   :  { %v4209_v39 = vpop.f32.mrf.mxu0  ;;  %v1026_v51 = vshll.u32 %v4976_v35, 16  ;;  %v4463_v35 = vld [vmem:[%s6332_s4 + $0x20] sm:$0xff]  }
  0xeb   :  { %v362_v40 = vmax.f32 %v346_v36, 0.0  ;;  %v324_v41 = vmul.f32 %v4208_v38, %v4936_v30  ;;  %v4457_v36 = vld [vmem:[%s6332_s4 + $0x38] sm:$0xff]  }
  0xec   :  { %v4210_v42 = vpop.f32.mrf.mxu0  ;;  %4252 = vmatpush3.bf16.msra.mxu1 %v4457_v36 }
  0xed   :  { %v4171_v43 = vpack.c.bf16 %v362_v40, %v362_v40  ;;  %v347_v44 = vadd.f32 %v4941_v32, %v324_v41  ;;  %v4211_v45 = vadd.f32 %v4210_v42, %v4209_v39  ;;  %v753_v42 = vld [vmem:[#allocation2 + $0x18] sm:$0xf] }
  0xee   :  { %v4212_v46 = vpop.f32.mrf.mxu0 }
  0xef   :  { %v579_v48 = vshrl.u32 %v4171_v43, 16  ;;  %v363_v49 = vmax.f32 %v347_v44, 0.0  ;;  %v325_v50 = vmul.f32 %v4211_v45, %v4936_v30  ;;  %v582_v52 = vshll.u32 %v4171_v43, 16  ;;  %v756_v43 = vld [vmem:[#allocation2 + $0x1c] sm:$0x1] }
  0xf0   :  { %v4213_v53 = vpop.f32.mrf.mxu0 }
  0xf1   :  { %v581_v55 = vrot.slane %v579_v48, 7  ;;  %v4172_v56 = vpack.c.bf16 %v363_v49, %v363_v49  ;;  %v348_v57 = vadd.f32 %v4941_v32, %v325_v50  ;;  %v4214_v58 = vadd.f32 %v4213_v53, %v4212_v46  ;;  %v4459_v53 = vld [vmem:[%s6332_s4 + $0x30] sm:$0xff]  }
  0xf2   :  { %v4215_v62 = vpop.f32.mrf.mxu0  ;;  %v1023_v46 = vor.u32 %v4966_v24, %v4963_v20  ;;  %v4461_v24 = vld [vmem:[%s6332_s4 + $0x28] sm:$0xff]  }
  0xf3   :  { %v584_v2 = vor.u32 %v582_v52, %v581_v55  ;;  %v585_v3 = vrot.slane %v581_v55, 4  ;;  %v587_v4 = vshrl.u32 %v4172_v56, 16  ;;  %v590_v7 = vshll.u32 %v4172_v56, 16  ;;  %v4458_v52 = vld [vmem:[%s6332_s4 + $0x70] sm:$0xff]  }
  0xf4   :  { %v364_v8 = vmax.f32 %v348_v57, 0.0  ;;  %v326_v9 = vmul.f32 %v4214_v58, %v4936_v30  ;;  %v4216_v10 = vpop.f32.mrf.mxu0  ;;  %4253 = vmatprep.subr.bf16.mxu1 %v4458_v52 }
  0xf5   :  { %v742_v11 = vsel %vm4953_vm9, %v584_v2, %v741_v60  ;;  %v745_v12 = vsel %vm4843_vm4, %v585_v3, %v744_v61  ;;  %v589_v13 = vrot.slane %v587_v4, 7  ;;  %v4217_v14 = vadd.f32 %v4216_v10, %v4215_v62  ;;  %v759_v2 = vld [vmem:[#allocation2 + $0x20] sm:$0xf]  ;;  %v762_v3 = vld [vmem:[#allocation2 + $0x24] sm:$0x1]  ;;  %4254 = vmatpush3.bf16.msra.mxu1 %v4459_v53 }
  0xf6   :  { %743 = vst [vmem:[#allocation2 + $0x8] sm:$0xf] %v742_v11  ;;  %746 = vst [vmem:[#allocation2 + $0xc] sm:$0x1] %v745_v12  ;;  %v4173_v17 = vpack.c.bf16 %v364_v8, %v364_v8  ;;  %v349_v18 = vadd.f32 %v4941_v32, %v326_v9  ;;  %v4218_v19 = vpop.f32.mrf.mxu0  ;;  %v4462_v53 = vld [vmem:[%s6332_s4 + $0x60] sm:$0xff]  }
  0xf7   :  { %v592_v21 = vor.u32 %v590_v7, %v589_v13  ;;  %v593_v22 = vrot.slane %v589_v13, 4  ;;  %v327_v23 = vmul.f32 %v4217_v14, %v4936_v30 }
  0xf8   :  { %v595_v25 = vshrl.u32 %v4173_v17, 16  ;;  %v365_v26 = vmax.f32 %v349_v18, 0.0  ;;  %v4219_v27 = vpop.f32.mrf.mxu0  ;;  %v598_v39 = vshll.u32 %v4173_v17, 16  ;;  %v4460_v17 = vld [vmem:[%s6332_s4 + $0x68] sm:$0xff]   ;;  %v837_v18 = vld [vmem:[#allocation2] sm:$0xf] }
  0xf9   :  { %v748_v29 = vsel %vm4953_vm9, %v592_v21, %v747_v15  ;;  %v751_v31 = vsel %vm4843_vm4, %v593_v22, %v750_v16  ;;  %v350_v33 = vadd.f32 %v4941_v32, %v327_v23  ;;  %v4220_v34 = vadd.f32 %v4219_v27, %v4218_v19  ;;  %853 = vst.msk [vmem:[#allocation3] sm:$0xf] %vm378_vm0, %v837_v18  ;;  %v765_v27 = vld [vmem:[#allocation2 + $0x28] sm:$0xf] }
  0xfa   :  { %749 = vst [vmem:[#allocation2 + $0x10] sm:$0xf] %v748_v29  ;;  %752 = vst [vmem:[#allocation2 + $0x14] sm:$0x1] %v751_v31  ;;  %v597_v38 = vrot.slane %v595_v25, 7  ;;  %v4174_v40 = vpack.c.bf16 %v365_v26, %v365_v26  ;;  %v4221_v41 = vpop.f32.mrf.mxu0  ;;  %4255 = vmatprep.subr.bf16.mxu1 %v4460_v17 }
  0xfb   :  { %v366_v44 = vmax.f32 %v350_v33, 0.0  ;;  %v328_v45 = vmul.f32 %v4220_v34, %v4936_v30  ;;  %v5013_v33 = vrot.slane %v1023_v46, 4  ;;  %4256 = vmatpush3.bf16.msra.mxu1 %v4461_v24  ;;  %v780_v17 = vld [vmem:[#allocation2 + $0x3c] sm:$0x1] }
  0xfc   :  { %v600_v47 = vor.u32 %v598_v39, %v597_v38  ;;  %v601_v48 = vrot.slane %v597_v38, 4  ;;  %v603_v49 = vshrl.u32 %v4174_v40, 16  ;;  %v4222_v50 = vpop.f32.mrf.mxu0  ;;  %v606_v54 = vshll.u32 %v4174_v40, 16  ;;  %4257 = vmatprep.subr.bf16.mxu1 %v4462_v53 }
  0xfd   :  { %v4175_v55 = vpack.c.bf16 %v366_v44, %v366_v44  ;;  %v351_v56 = vadd.f32 %v4941_v32, %v328_v45  ;;  %v4223_v57 = vadd.f32 %v4222_v50, %v4221_v41  ;;  %v1356_v58 = vld [vmem:[#allocation2 + $0x8] sm:$0xf]  ;;  %v4998_v11 = vld [vmem:[#allocation2 + $0xc] sm:$0x1]  ;;  %v774_v50 = vld [vmem:[#allocation2 + $0x34] sm:$0x1] }
  0xfe   :  { %v871_v60 = vld [vmem:[#allocation2 + $0x8] sm:$0xf]  ;;  %v754_v61 = vsel %vm4953_vm9, %v600_v47, %v753_v42  ;;  %v757_v62 = vsel %vm4843_vm4, %v601_v48, %v756_v43  ;;  %v605_v63 = vrot.slane %v603_v49, 7  ;;  %v4224_v4 = vpop.f32.mrf.mxu0  ;;  %1388 = vrot.lane.b32.xlu1 %v1356_v58, %s4620_s24  ;;  %v928_v39 = vshll.u32 %v4998_v11, 16  ;;  %v1980_v45 = vld [vmem:[#allocation2 + $0x4c] sm:$0x1] }
  0xff   :  { %v919_v6 = vshrl.u32 %v871_v60, 16  ;;  %755 = vst [vmem:[#allocation2 + $0x18] sm:$0xf] %v754_v61  ;;  %758 = vst [vmem:[#allocation2 + $0x1c] sm:$0x1] %v757_v62  ;;  %v611_v7 = vshrl.u32 %v4175_v55, 16  ;;  %v329_v10 = vmul.f32 %v4223_v57, %v4936_v30  ;;  %4258 = vmatpush3.bf16.msra.mxu1 %v4463_v35 }
 0x100   :  { %v614_v8 = vshll.u32 %v4175_v55, 16  ;;  %v367_v9 = vmax.f32 %v351_v56, 0.0  ;;  %v608_v12 = vor.u32 %v606_v54, %v605_v63  ;;  %v609_v13 = vrot.slane %v605_v63, 4  ;;  %v4225_v14 = vpop.f32.mrf.mxu0  ;;  %v771_v49 = vld [vmem:[#allocation2 + $0x30] sm:$0xf] }
 0x101   :  { %v921_v15 = vrot.slane %v919_v6, 4  ;;  %v922_v16 = vshll.u32 %v871_v60, 16  ;;  %v613_v19 = vrot.slane %v611_v7, 7  ;;  %v352_v21 = vadd.f32 %v4941_v32, %v329_v10  ;;  %v1357_v23 = vld [vmem:[#allocation2 + $0x10] sm:$0xf] }
 0x102   :  { %v4176_v20 = vpack.c.bf16 %v367_v9, %v367_v9  ;;  %v4226_v22 = vadd.f32 %v4225_v14, %v4224_v4  ;;  %v760_v25 = vsel %vm4953_vm9, %v608_v12, %v759_v2  ;;  %v763_v26 = vsel %vm4843_vm4, %v609_v13, %v762_v3  ;;  %v4227_v29 = vpop.f32.mrf.mxu0  ;;  %1390 = vrot.lane.b32.xlu1 %v1357_v23, %s4620_s24  ;;  %v5042_v13 = vld [vmem:[#allocation2 + $0x10] sm:$0xf] }
 0x103   :  { %v924_v31 = vrot.slane %v922_v16, 5  ;;  %761 = vst [vmem:[#allocation2 + $0x20] sm:$0xf] %v760_v25  ;;  %764 = vst [vmem:[#allocation2 + $0x24] sm:$0x1] %v763_v26  ;;  %v616_v34 = vor.u32 %v614_v8, %v613_v19  ;;  %v617_v36 = vrot.slane %v613_v19, 4 }
 0x104   :  { %v619_v38 = vshrl.u32 %v4176_v20, 16  ;;  %v622_v40 = vshll.u32 %v4176_v20, 16  ;;  %v368_v41 = vmax.f32 %v352_v21, 0.0  ;;  %v330_v42 = vmul.f32 %v4226_v22, %v4936_v30  ;;  %v4228_v43 = vpop.f32.mrf.mxu0  ;;  %v777_v16 = vld [vmem:[#allocation2 + $0x38] sm:$0xf] }
 0x105   :  { %v925_v44 = vor.u32 %v924_v31, %v921_v15  ;;  %v766_v46 = vsel %vm4953_vm9, %v616_v34, %v765_v27  ;;  %v769_v47 = vsel %vm4843_vm4, %v617_v36, %v768_v28  ;;  %v4229_v52 = vadd.f32 %v4228_v43, %v4227_v29  ;;  %v4464_v26 = vld [vmem:[%s6332_s4 + $0x58] sm:$0xff]  }
 0x106   :  { %v621_v48 = vrot.slane %v619_v38, 7  ;;  %767 = vst [vmem:[#allocation2 + $0x28] sm:$0xf] %v766_v46  ;;  %770 = vst [vmem:[#allocation2 + $0x2c] sm:$0x1] %v769_v47  ;;  %v4177_v54 = vpack.c.bf16 %v368_v41, %v368_v41  ;;  %v353_v55 = vadd.f32 %v4941_v32, %v330_v42  ;;  %v4230_v56 = vpop.f32.mrf.mxu0  ;;  %v5027_v60 = vrot.slane %v1026_v51, 5  ;;  %4259 = vmatprep.subr.bf16.mxu1 %v4464_v26 }
 0x107   :  { %v1358_v57 = vld [vmem:[#allocation2 + $0x18] sm:$0xf]  ;;  %v926_v58 = vrot.slane %v925_v44, 4  ;;  %v331_v2 = vmul.f32 %v4229_v52, %v4936_v30  ;;  %v2105_v3 = vshll.u32 %v1980_v45, 16  ;;  %v930_v8 = vrot.slane %v928_v39, 5  ;;  %v4466_v42 = vld [vmem:[%s6332_s4 + $0x50] sm:$0xff]  }
 0x108   :  { %v5029_v61 = vld [vmem:[#allocation2 + $0x18] sm:$0xf]  ;;  %v624_v62 = vor.u32 %v622_v40, %v621_v48  ;;  %v625_v63 = vrot.slane %v621_v48, 4  ;;  %1392 = vrot.lane.b32.xlu0 %v1358_v57, %s4620_s24  ;;  %v627_v4 = vshrl.u32 %v4177_v54, 16  ;;  %v369_v6 = vmax.f32 %v353_v55, 0.0  ;;  %v4231_v7 = vpop.f32.mrf.mxu0 }
 0x109   :  { %v947_v9 = vshrl.u32 %v5029_v61, 16  ;;  %v354_v11 = vadd.f32 %v4941_v32, %v331_v2  ;;  %v4232_v12 = vadd.f32 %v4231_v7, %v4230_v56  ;;  %v630_v15 = vshll.u32 %v4177_v54, 16  ;;  %v4465_v36 = vld [vmem:[%s6332_s4 + $0x18] sm:$0xff]   ;;  %v786_v54 = vld [vmem:[#allocation2 + $0x44] sm:$0x1] }
 0x10a   :  { %v772_v51 = vsel %vm4953_vm9, %v624_v62, %v771_v49  ;;  %v775_v10 = vsel %vm4843_vm4, %v625_v63, %v774_v50  ;;  %v629_v14 = vrot.slane %v627_v4, 7  ;;  %v4178_v18 = vpack.c.bf16 %v369_v6, %v369_v6  ;;  %v4233_v19 = vpop.f32.mrf.mxu0  ;;  %v1359_v23 = vld [vmem:[#allocation2 + $0x20] sm:$0xf]  ;;  %v876_v40 = vld [vmem:[#allocation2 + $0x1c] sm:$0x1]  ;;  %4260 = vmatpush3.bf16.msra.mxu1 %v4465_v36 }
 0x10b   :  { %773 = vst [vmem:[#allocation2 + $0x30] sm:$0xf] %v772_v51  ;;  %776 = vst [vmem:[#allocation2 + $0x34] sm:$0x1] %v775_v10  ;;  %v931_v20 = vsel %vm4876_vm8, %v926_v58, %v930_v8  ;;  %v370_v21 = vmax.f32 %v354_v11, 0.0  ;;  %v332_v22 = vmul.f32 %v4232_v12, %v4936_v30  ;;  %v1029_v24 = vsel %vm4876_vm8, %v5013_v33, %v5027_v60  ;;  %v4468_v10 = vld [vmem:[%s6332_s4 + $0x48] sm:$0xff]  }
 0x10c   :  { %1130 = vrot.lane.b32.xlu0 %v931_v20, %s4620_s24  ;;  %v5052_v25 = vrot.slane %v2105_v3, 5  ;;  %v632_v27 = vor.u32 %v630_v15, %v629_v14  ;;  %v633_v28 = vrot.slane %v629_v14, 4  ;;  %v635_v29 = vshrl.u32 %v4178_v18, 16  ;;  %1394 = vrot.lane.b32.xlu1 %v1359_v23, %s4620_s24  ;;  %v4234_v31 = vpop.f32.mrf.mxu0  ;;  %v783_v49 = vld [vmem:[#allocation2 + $0x40] sm:$0xf] }
 0x10d   :  { %v933_v34 = vshrl.u32 %v5042_v13, 16  ;;  %v4179_v38 = vpack.c.bf16 %v370_v21, %v370_v21  ;;  %v355_v33 = vadd.f32 %v4941_v32, %v332_v22  ;;  %v4235_v39 = vadd.f32 %v4234_v31, %v4233_v19  ;;  %4261 = vmatprep.subr.bf16.mxu1 %v4466_v42  ;;  %v789_v4 = vld [vmem:[#allocation2 + $0x58] sm:$0xf]  ;;  %v792_v6 = vld [vmem:[#allocation2 + $0x5c] sm:$0x1] }
 0x10e   :  { %v950_v41 = vshll.u32 %v5029_v61, 16  ;;  %v778_v43 = vsel %vm4953_vm9, %v632_v27, %v777_v16  ;;  %v781_v44 = vsel %vm4843_vm4, %v633_v28, %v780_v17  ;;  %v638_v45 = vshll.u32 %v4178_v18, 16  ;;  %v4236_v46 = vpop.f32.mrf.mxu0  ;;  %v4467_v61 = vld [vmem:[%s6332_s4 + $0x10] sm:$0xff]   ;;  %v4469_v17 = vld [vmem:[%s6332_s4 + $0x8] sm:$0xff]  }
 0x10f   :  { %v949_v47 = vrot.slane %v947_v9, 4  ;;  %779 = vst [vmem:[#allocation2 + $0x38] sm:$0xf] %v778_v43  ;;  %782 = vst [vmem:[#allocation2 + $0x3c] sm:$0x1] %v781_v44  ;;  %v637_v48 = vrot.slane %v635_v29, 7  ;;  %v333_v55 = vmul.f32 %v4235_v39, %v4936_v30  ;;  %4262 = vmatpush3.bf16.msra.mxu1 %v4467_v61 }
 0x110   :  { %v643_v50 = vshrl.u32 %v4179_v38, 16  ;;  %v646_v52 = vshll.u32 %v4179_v38, 16  ;;  %v371_v53 = vmax.f32 %v355_v33, 0.0  ;;  %1144 = vrot.lane.b32.xlu0 %v1029_v24, %s4620_s24  ;;  %v952_v56 = vrot.slane %v950_v41, 5  ;;  %v4237_v58 = vpop.f32.mrf.mxu0  ;;  %v874_v16 = vld [vmem:[#allocation2 + $0x14] sm:$0x1]  ;;  %4263 = vmatprep.subr.bf16.mxu1 %v4468_v10 }
 0x111   :  { %v956_v57 = vshll.u32 %v876_v40, 16  ;;  %v5073_v60 = vrot.slane %v933_v34, 4  ;;  %v640_v62 = vor.u32 %v638_v45, %v637_v48  ;;  %v641_v63 = vrot.slane %v637_v48, 4  ;;  %v5089_v23 = vld [vmem:[#allocation2 + $0x28] sm:$0xf]  ;;  %v4470_v29 = vld [vmem:[%s6332_s4 + $0x40] sm:$0xff]  }
 0x112   :  { %v645_v2 = vrot.slane %v643_v50, 7  ;;  %v4180_v3 = vpack.c.bf16 %v371_v53, %v371_v53  ;;  %v356_v7 = vadd.f32 %v4941_v32, %v333_v55  ;;  %v953_v8 = vor.u32 %v952_v56, %v949_v47  ;;  %v4239_v51 = vpop.f32.mrf.mxu0  ;;  %v795_v39 = vld [vmem:[#allocation2 + $0x60] sm:$0xf]  ;;  %v798_v40 = vld [vmem:[#allocation2 + $0x64] sm:$0x1]  ;;  %v4471_v50 = vld [vmem:[%s6332_s4 + $0xf8] sm:$0xff]  }
 0x113   :  { %v958_v9 = vrot.slane %v956_v57, 5  ;;  %v4238_v35 = vadd.f32 %v4237_v58, %v4236_v46  ;;  %v784_v11 = vsel %vm4953_vm9, %v640_v62, %v783_v49  ;;  %v787_v12 = vsel %vm4843_vm4, %v641_v63, %v786_v54  ;;  %4264 = vmatpush3.bf16.msra.mxu1 %v4469_v17  ;;  %v1361_v48 = vld [vmem:[#allocation2 + $0x30] sm:$0xf]  ;;  %v880_v56 = vld [vmem:[#allocation2 + $0x2c] sm:$0x1]  ;;  %4315 = vmatprep.subr.bf16.mxu0 %v4471_v50  ;;  %v4477_v50 = vld [vmem:[%s6332_s4 + $0x118] sm:$0xff]  }
 0x114   :  { %v648_v14 = vor.u32 %v646_v52, %v645_v2  ;;  %v649_v15 = vrot.slane %v645_v2, 4  ;;  %785 = vst [vmem:[#allocation2 + $0x40] sm:$0xf] %v784_v11  ;;  %788 = vst [vmem:[#allocation2 + $0x44] sm:$0x1] %v787_v12  ;;  %v651_v18 = vshrl.u32 %v4180_v3, 16  ;;  %v4240_v22 = vpop.f32.mrf.mxu0  ;;  %4265 = vmatprep.subr.bf16.mxu1 %v4470_v29 }
 0x115   :  { %v654_v19 = vshll.u32 %v4180_v3, 16  ;;  %v372_v20 = vmax.f32 %v356_v7, 0.0  ;;  %v954_v21 = vrot.slane %v953_v8, 4  ;;  %v334_v27 = vmul.f32 %v4238_v35, %v4936_v30  ;;  %v801_v2 = vld [vmem:[#allocation2 + $0x68] sm:$0xf] }
 0x116   :  { %v790_v24 = vsel %vm4953_vm9, %v648_v14, %v789_v4  ;;  %v793_v26 = vsel %vm4843_vm4, %v649_v15, %v792_v6  ;;  %v936_v28 = vshll.u32 %v5042_v13, 16  ;;  %v653_v31 = vrot.slane %v651_v18, 7  ;;  %v4242_v33 = vpop.f32.mrf.mxu0  ;;  %v804_v3 = vld [vmem:[#allocation2 + $0x6c] sm:$0x1]  ;;  %v877_v10 = vld [vmem:[#allocation2 + $0x20] sm:$0xf] }
 0x117   :  { %791 = vst [vmem:[#allocation2 + $0x58] sm:$0xf] %v790_v24  ;;  %794 = vst [vmem:[#allocation2 + $0x5c] sm:$0x1] %v793_v26  ;;  %v4181_v34 = vpack.c.bf16 %v372_v20, %v372_v20  ;;  %v959_v36 = vsel %vm4876_vm8, %v954_v21, %v958_v9  ;;  %v942_v38 = vshll.u32 %v874_v16, 16  ;;  %v357_v13 = vadd.f32 %v4941_v32, %v334_v27  ;;  %v4472_v18 = vld [vmem:[%s6332_s4] sm:$0xff]  }
 0x118   :  { %1134 = vrot.lane.b32.xlu1 %v959_v36, %s4620_s24  ;;  %v938_v41 = vrot.slane %v936_v28, 5  ;;  %v4241_v42 = vadd.f32 %v4240_v22, %v4239_v51  ;;  %v975_v43 = vshrl.u32 %v5089_v23, 16  ;;  %v656_v44 = vor.u32 %v654_v19, %v653_v31  ;;  %v4243_v49 = vpop.f32.mrf.mxu0  ;;  %v878_v17 = vld [vmem:[#allocation2 + $0x24] sm:$0x1]  ;;  %v807_v24 = vld [vmem:[#allocation2 + $0x70] sm:$0xf]  ;;  %4266 = vmatpush3.bf16.msra.mxu1 %v4472_v18 }
 0x119   :  { %v657_v45 = vrot.slane %v653_v31, 4  ;;  %v659_v46 = vshrl.u32 %v4181_v34, 16  ;;  %v662_v47 = vshll.u32 %v4181_v34, 16  ;;  %v373_v52 = vmax.f32 %v357_v13, 0.0  ;;  %v810_v31 = vld [vmem:[#allocation2 + $0x74] sm:$0x1]  ;;  %4413 = vmatprep.subr.bf16.mxu1 %v4477_v50 }
 0x11a   :  { %v939_v53 = vor.u32 %v938_v41, %v5073_v60  ;;  %v944_v54 = vrot.slane %v942_v38, 5  ;;  %v335_v55 = vmul.f32 %v4241_v42, %v4936_v30  ;;  %v796_v57 = vsel %vm4953_vm9, %v656_v44, %v795_v39  ;;  %v4245_v63 = vpop.f32.mrf.mxu0  ;;  %v5128_v39 = vld [vmem:[#allocation2 + $0x48] sm:$0xf]  ;;  %v4473_v44 = vld [vmem:[%s6332_s4 + $0xb8] sm:$0xff]   ;;  %v1205_v0 = vld [vmem:[#allocation2 + $0x30] sm:$0xe] }
 0x11b   :  { %v799_v58 = vsel %vm4843_vm4, %v657_v45, %v798_v40  ;;  %v661_v61 = vrot.slane %v659_v46, 7  ;;  %v977_v62 = vrot.slane %v975_v43, 4  ;;  %797 = vst [vmem:[#allocation2 + $0x60] sm:$0xf] %v796_v57  ;;  %v4182_v4 = vpack.c.bf16 %v373_v52, %v373_v52  ;;  %v1360_v43 = vld [vmem:[#allocation2 + $0x28] sm:$0xf]  ;;  %4316 = vmatpush3.bf16.msra.mxu0 %v4473_v44 }
 0x11c   :  { %800 = vst [vmem:[#allocation2 + $0x64] sm:$0x1] %v799_v58  ;;  %v940_v60 = vrot.slane %v939_v53, 4  ;;  %1398 = vrot.lane.b32.xlu1 %v1361_v48, %s4620_s24  ;;  %v358_v6 = vadd.f32 %v4941_v32, %v335_v55  ;;  %v978_v7 = vshll.u32 %v5089_v23, 16  ;;  %v984_v35 = vshll.u32 %v880_v56, 16  ;;  %v4246_v11 = vpop.f32.mrf.mxu0 }
 0x11d   :  { %v664_v8 = vor.u32 %v662_v47, %v661_v61  ;;  %v665_v9 = vrot.slane %v661_v61, 4  ;;  %v4244_v51 = vadd.f32 %v4243_v49, %v4242_v33  ;;  %v667_v12 = vshrl.u32 %v4182_v4, 16  ;;  %v5135_v49 = vld [vmem:[#allocation2 + $0x10] sm:$0xe]  ;;  %v813_v55 = vld [vmem:[#allocation2 + $0x78] sm:$0xf] }
 0x11e   :  { %v670_v14 = vshll.u32 %v4182_v4, 16  ;;  %v945_v15 = vsel %vm4876_vm8, %v940_v60, %v944_v54  ;;  %v374_v16 = vmax.f32 %v358_v6, 0.0  ;;  %v980_v21 = vrot.slane %v978_v7, 5  ;;  %v4248_v29 = vpop.f32.mrf.mxu0  ;;  %v816_v56 = vld [vmem:[#allocation2 + $0x7c] sm:$0x1]  ;;  %v4478_v60 = vld [vmem:[%s6332_s4 + $0xf0] sm:$0xff]  }
 0x11f   :  { %v802_v19 = vsel %vm4953_vm9, %v664_v8, %v801_v2  ;;  %v805_v20 = vsel %vm4843_vm4, %v665_v9, %v804_v3  ;;  %1132 = vrot.lane.b32.xlu0 %v945_v15, %s4620_s24  ;;  %v986_v22 = vrot.slane %v984_v35, 5  ;;  %v669_v23 = vrot.slane %v667_v12, 7  ;;  %v1743_v3 = vld [vmem:[#allocation2 + $0x14] sm:$0x1]  ;;  %v881_v4 = vld [vmem:[#allocation2 + $0x30] sm:$0xf]  ;;  %4317 = vmatprep.subr.bf16.mxu0 %v4478_v60 }
 0x120   :  { %803 = vst [vmem:[#allocation2 + $0x68] sm:$0xf] %v802_v19  ;;  %806 = vst [vmem:[#allocation2 + $0x6c] sm:$0x1] %v805_v20  ;;  %v4183_v26 = vpack.c.bf16 %v374_v16, %v374_v16  ;;  %v336_v27 = vmul.f32 %v4244_v51, %v4936_v30  ;;  %v961_v28 = vshrl.u32 %v877_v10, 16  ;;  %v981_v34 = vor.u32 %v980_v21, %v977_v62  ;;  %v4249_v57 = vpop.f32.mrf.mxu0  ;;  %v4479_v35 = vld [vmem:[%s6332_s4 + $0xb0] sm:$0xff]  }
 0x121   :  { %v964_v36 = vshll.u32 %v877_v10, 16  ;;  %v970_v38 = vshll.u32 %v878_v17, 16  ;;  %v4247_v33 = vadd.f32 %v4246_v11, %v4245_v63  ;;  %v672_v40 = vor.u32 %v670_v14, %v669_v23  ;;  %v1363_v11 = vld [vmem:[#allocation2 + $0x40] sm:$0xf]  ;;  %v882_v15 = vld [vmem:[#allocation2 + $0x34] sm:$0x1]  ;;  %4318 = vmatpush3.bf16.msra.mxu0 %v4479_v35 }
 0x122   :  { %v673_v13 = vrot.slane %v669_v23, 4  ;;  %v675_v41 = vshrl.u32 %v4183_v26, 16  ;;  %v678_v42 = vshll.u32 %v4183_v26, 16  ;;  %v982_v45 = vrot.slane %v981_v34, 4  ;;  %v4482_v16 = vld [vmem:[%s6332_s4 + $0xe8] sm:$0xff]  }
 0x123   :  { %1396 = vrot.lane.b32.xlu0 %v1360_v43, %s4620_s24  ;;  %v359_v46 = vadd.f32 %v4941_v32, %v336_v27  ;;  %v963_v47 = vrot.slane %v961_v28, 4  ;;  %v966_v48 = vrot.slane %v964_v36, 5  ;;  %v808_v52 = vsel %vm4953_vm9, %v672_v40, %v807_v24  ;;  %v883_v21 = vld [vmem:[#allocation2 + $0x38] sm:$0xf]  ;;  %v884_v28 = vld [vmem:[#allocation2 + $0x3c] sm:$0x1]  ;;  %4319 = vmatprep.subr.bf16.mxu0 %v4482_v16 }
 0x124   :  { %v811_v53 = vsel %vm4843_vm4, %v673_v13, %v810_v31  ;;  %v677_v54 = vrot.slane %v675_v41, 7  ;;  %v2096_v58 = vshrl.u32 %v5128_v39, 16  ;;  %809 = vst [vmem:[#allocation2 + $0x70] sm:$0xf] %v808_v52  ;;  %v987_v61 = vsel %vm4876_vm8, %v982_v45, %v986_v22  ;;  %v4483_v22 = vld [vmem:[%s6332_s4 + $0xa8] sm:$0xff]  }
 0x125   :  { %812 = vst [vmem:[#allocation2 + $0x74] sm:$0x1] %v811_v53  ;;  %v375_v62 = vmax.f32 %v359_v46, 0.0  ;;  %v967_v63 = vor.u32 %v966_v48, %v963_v47  ;;  %v337_v2 = vmul.f32 %v4247_v33, %v4936_v30  ;;  %1138 = vrot.lane.b32.xlu1 %v987_v61, %s4620_s24  ;;  %v972_v8 = vrot.slane %v970_v38, 5  ;;  %v822_v31 = vld [vmem:[#allocation2 + $0x84] sm:$0x1]  ;;  %4320 = vmatpush3.bf16.msra.mxu0 %v4483_v22 }
 0x126   :  { %v680_v6 = vor.u32 %v678_v42, %v677_v54  ;;  %v681_v7 = vrot.slane %v677_v54, 4  ;;  %v4021_v9 = vrot.slane %v5135_v49, 9  ;;  %v4250_v14 = vadd.f32 %v4249_v57, %v4248_v29  ;;  %v819_v29 = vld [vmem:[#allocation2 + $0x80] sm:$0xf]  ;;  %v5178_v44 = vld [vmem:[#allocation2 + $0x8] sm:$0xe] }
 0x127   :  { %v4184_v51 = vpack.c.bf16 %v375_v62, %v375_v62  ;;  %v968_v10 = vrot.slane %v967_v63, 4  ;;  %v360_v12 = vadd.f32 %v4941_v32, %v337_v2  ;;  %v1810_v19 = vrot.slane %v1743_v3, 5  ;;  %v1741_v48 = vld [vmem:[#allocation2 + $0xc] sm:$0x1]  ;;  %v4487_v49 = vld [vmem:[%s6332_s4 + $0xe0] sm:$0xff]  }
 0x128   :  { %v814_v17 = vsel %vm4953_vm9, %v680_v6, %v813_v55  ;;  %v817_v18 = vsel %vm4843_vm4, %v681_v7, %v816_v56  ;;  %v989_v20 = vshrl.u32 %v881_v4, 16  ;;  %v338_v34 = vmul.f32 %v4250_v14, %v4936_v30  ;;  %v1362_v55 = vld [vmem:[#allocation2 + $0x38] sm:$0xf]  ;;  %v4488_v63 = vld [vmem:[%s6332_s4 + $0xa0] sm:$0xff]   ;;  %4321 = vmatprep.subr.bf16.mxu0 %v4487_v49  ;;  %v825_v6 = vld [vmem:[#allocation2 + $0x88] sm:$0xf] }
 0x129   :  { %815 = vst [vmem:[#allocation2 + $0x78] sm:$0xf] %v814_v17  ;;  %818 = vst [vmem:[#allocation2 + $0x7c] sm:$0x1] %v817_v18  ;;  %v683_v23 = vshrl.u32 %v4184_v51, 16  ;;  %v686_v24 = vshll.u32 %v4184_v51, 16  ;;  %v973_v26 = vsel %vm4876_vm8, %v968_v10, %v972_v8  ;;  %1402 = vrot.lane.b32.xlu1 %v1363_v11, %s4620_s24  ;;  %v1811_v45 = vsel %vm5174_vm12, %v4021_v9, %v1810_v19 }
 0x12a   :  { %v376_v27 = vmax.f32 %v360_v12, 0.0  ;;  %1136 = vrot.lane.b32.xlu0 %v973_v26, %s4620_s24  ;;  %v991_v36 = vrot.slane %v989_v20, 4  ;;  %v992_v38 = vshll.u32 %v881_v4, 16  ;;  %v998_v33 = vshll.u32 %v882_v15, 16  ;;  %v887_v62 = vld [vmem:[#allocation2 + $0x58] sm:$0xf]  ;;  %4322 = vmatpush3.bf16.msra.mxu0 %v4488_v63 }
 0x12b   :  { %v685_v40 = vrot.slane %v683_v23, 7  ;;  %v1003_v42 = vshrl.u32 %v883_v21, 16  ;;  %v1006_v43 = vshll.u32 %v883_v21, 16  ;;  %v361_v30 = vadd.f32 %v4941_v32, %v338_v34  ;;  %v828_v7 = vld [vmem:[#allocation2 + $0x8c] sm:$0x1]  ;;  %v4492_v49 = vld [vmem:[%s6332_s4 + $0x98] sm:$0xff]  }
 0x12c   :  { %v4185_v13 = vpack.c.bf16 %v376_v27, %v376_v27  ;;  %v994_v46 = vrot.slane %v992_v38, 5  ;;  %v1012_v47 = vshll.u32 %v884_v28, 16  ;;  %v1000_v60 = vrot.slane %v998_v33, 5  ;;  %v889_v15 = vld [vmem:[#allocation2 + $0x60] sm:$0xf]  ;;  %v4491_v33 = vld [vmem:[%s6332_s4 + $0xd8] sm:$0xff]  }
 0x12d   :  { %v688_v50 = vor.u32 %v686_v24, %v685_v40  ;;  %v689_v52 = vrot.slane %v685_v40, 4  ;;  %1870 = vrot.lane.b32.xlu1 %v1811_v45, %s4620_s24  ;;  %v377_v56 = vmax.f32 %v361_v30, 0.0  ;;  %v1005_v32 = vrot.slane %v1003_v42, 4  ;;  %v891_v20 = vld [vmem:[#allocation2 + $0x68] sm:$0xf]  ;;  %4323 = vmatprep.subr.bf16.mxu0 %v4491_v33 }
 0x12e   :  { %v691_v53 = vshrl.u32 %v4185_v13, 16  ;;  %v694_v54 = vshll.u32 %v4185_v13, 16  ;;  %1400 = vrot.lane.b32.xlu0 %v1362_v55, %s4620_s24  ;;  %v995_v57 = vor.u32 %v994_v46, %v991_v36  ;;  %v1008_v61 = vrot.slane %v1006_v43, 5  ;;  %v831_v24 = vld [vmem:[#allocation2 + $0x90] sm:$0xf]  ;;  %4324 = vmatpush3.bf16.msra.mxu0 %v4492_v49 }
 0x12f   :  { %v820_v2 = vsel %vm4953_vm9, %v688_v50, %v819_v29  ;;  %v823_v3 = vsel %vm4843_vm4, %v689_v52, %v822_v31  ;;  %v4186_v8 = vpack.c.bf16 %v377_v56, %v377_v56  ;;  %v4020_v51 = vrot.slane %v5178_v44, 9  ;;  %v834_v26 = vld [vmem:[#allocation2 + $0x94] sm:$0x1]  ;;  %v888_v27 = vld [vmem:[#allocation2 + $0x5c] sm:$0x1] }
 0x130   :  { %v693_v4 = vrot.slane %v691_v53, 7  ;;  %821 = vst [vmem:[#allocation2 + $0x80] sm:$0xf] %v820_v2  ;;  %824 = vst [vmem:[#allocation2 + $0x84] sm:$0x1] %v823_v3  ;;  %v996_v9 = vrot.slane %v995_v57, 4  ;;  %v1009_v35 = vor.u32 %v1008_v61, %v1005_v32 }
 0x131   :  { %v1806_v12 = vrot.slane %v1741_v48, 5  ;;  %v1031_v14 = vshrl.u32 %v887_v62, 16  ;;  %v699_v16 = vshrl.u32 %v4186_v8, 16  ;;  %v1014_v19 = vrot.slane %v1012_v47, 5  ;;  %v5204_v29 = vld [vmem:[#allocation2 + $0x20] sm:$0xe] }
 0x132   :  { %v696_v10 = vor.u32 %v694_v54, %v693_v4  ;;  %v697_v11 = vrot.slane %v693_v4, 4  ;;  %v1001_v17 = vsel %vm4876_vm8, %v996_v9, %v1000_v60  ;;  %v1010_v18 = vrot.slane %v1009_v35, 4  ;;  %v890_v13 = vld [vmem:[#allocation2 + $0x64] sm:$0x1]  ;;  %v893_v48 = vld [vmem:[#allocation2 + $0x70] sm:$0xf] }
 0x133   :  { %v702_v23 = vshll.u32 %v4186_v8, 16  ;;  %1140 = vrot.lane.b32.xlu0 %v1001_v17, %s4620_s24  ;;  %v2099_v28 = vshll.u32 %v5128_v39, 16  ;;  %v701_v31 = vrot.slane %v699_v16, 7  ;;  %v1033_v36 = vrot.slane %v1031_v14, 4  ;;  %v5217_v50 = vld [vmem:[#allocation2 + $0x24] sm:$0x1] }
 0x134   :  { %v826_v21 = vsel %vm4953_vm9, %v696_v10, %v825_v6  ;;  %v829_v22 = vsel %vm4843_vm4, %v697_v11, %v828_v7  ;;  %v1015_v34 = vsel %vm4876_vm8, %v1010_v18, %v1014_v19  ;;  %v1034_v38 = vshll.u32 %v887_v62, 16  ;;  %v5220_v53 = vld [vmem:[#allocation2 + $0x28] sm:$0xe]  ;;  %v895_v57 = vld [vmem:[#allocation2 + $0x78] sm:$0xf] }
 0x135   :  { %827 = vst [vmem:[#allocation2 + $0x88] sm:$0xf] %v826_v21  ;;  %830 = vst [vmem:[#allocation2 + $0x8c] sm:$0x1] %v829_v22  ;;  %1142 = vrot.lane.b32.xlu1 %v1015_v34, %s4620_s24  ;;  %v1807_v40 = vsel %vm5174_vm12, %v4020_v51, %v1806_v12  ;;  %v1045_v42 = vshrl.u32 %v889_v15, 16  ;;  %v1048_v43 = vshll.u32 %v889_v15, 16  ;;  %v704_v45 = vor.u32 %v702_v23, %v701_v31 }
 0x136   :  { %v1059_v44 = vshrl.u32 %v891_v20, 16  ;;  %v705_v30 = vrot.slane %v701_v31, 4  ;;  %v1036_v46 = vrot.slane %v1034_v38, 5  ;;  %v1040_v47 = vshll.u32 %v888_v27, 16  ;;  %v5223_v32 = vld [vmem:[#allocation2 + $0x2c] sm:$0x1] }
 0x137   :  { %v4038_v52 = vrot.slane %v5204_v29, 9  ;;  %1868 = vrot.lane.b32.xlu0 %v1807_v40, %s4620_s24  ;;  %v1047_v54 = vrot.slane %v1045_v42, 4  ;;  %v1050_v55 = vrot.slane %v1048_v43, 5  ;;  %v832_v61 = vsel %vm4953_vm9, %v704_v45, %v831_v24  ;;  %v1365_v63 = vld [vmem:[#allocation2 + $0x60] sm:$0xf] }
 0x138   :  { %v1061_v56 = vrot.slane %v1059_v44, 4  ;;  %v835_v62 = vsel %vm4843_vm4, %v705_v30, %v834_v26  ;;  %v1037_v2 = vor.u32 %v1036_v46, %v1033_v36  ;;  %v892_v3 = vld [vmem:[#allocation2 + $0x6c] sm:$0x1]  ;;  %v1062_v4 = vshll.u32 %v891_v20, 16  ;;  %833 = vst [vmem:[#allocation2 + $0x90] sm:$0xf] %v832_v61 }
 0x139   :  { %836 = vst [vmem:[#allocation2 + $0x94] sm:$0x1] %v835_v62  ;;  %1406 = vrot.lane.b32.xlu1 %v1365_v63, %s4620_s24  ;;  %v1364_v60 = vld [vmem:[#allocation2 + $0x58] sm:$0xf]  ;;  %v1051_v6 = vor.u32 %v1050_v55, %v1047_v54  ;;  %v1054_v7 = vshll.u32 %v890_v13, 16  ;;  %v1073_v8 = vshrl.u32 %v893_v48, 16 }
 0x13a   :  { %v1076_v9 = vshll.u32 %v893_v48, 16  ;;  %v1038_v35 = vrot.slane %v1037_v2, 4  ;;  %v1042_v59 = vrot.slane %v1040_v47, 5  ;;  %v1064_v51 = vrot.slane %v1062_v4, 5  ;;  %v894_v10 = vld [vmem:[#allocation2 + $0x74] sm:$0x1] }
 0x13b   :  { %v1087_v11 = vshrl.u32 %v895_v57, 16  ;;  %1404 = vrot.lane.b32.xlu0 %v1364_v60, %s4620_s24  ;;  %v1052_v12 = vrot.slane %v1051_v6, 4  ;;  %v1068_v14 = vshll.u32 %v892_v3, 16  ;;  %v1075_v15 = vrot.slane %v1073_v8, 4  ;;  %v897_v17 = vld [vmem:[#allocation2 + $0x80] sm:$0xf] }
 0x13c   :  { %v1078_v16 = vrot.slane %v1076_v9, 5  ;;  %v2359_v18 = vrot.slane %v5217_v50, 5  ;;  %v1043_v20 = vsel %vm4876_vm8, %v1038_v35, %v1042_v59  ;;  %v1366_v21 = vld [vmem:[#allocation2 + $0x68] sm:$0xf]  ;;  %v1065_v22 = vor.u32 %v1064_v51, %v1061_v56  ;;  %v896_v27 = vld [vmem:[#allocation2 + $0x7c] sm:$0x1] }
 0x13d   :  { %v899_v23 = vld [vmem:[#allocation2 + $0x88] sm:$0xf]  ;;  %v2363_v24 = vrot.slane %v5223_v32, 5  ;;  %1146 = vrot.lane.b32.xlu1 %v1043_v20, %s4620_s24  ;;  %v1056_v26 = vrot.slane %v1054_v7, 5  ;;  %v1089_v31 = vrot.slane %v1087_v11, 4  ;;  %v1090_v34 = vshll.u32 %v895_v57, 16 }
 0x13e   :  { %v1965_v36 = vld [vmem:[#allocation2 + $0x10] sm:$0xf]  ;;  %v1079_v38 = vor.u32 %v1078_v16, %v1075_v15  ;;  %v1082_v33 = vshll.u32 %v894_v10, 16  ;;  %v898_v40 = vld [vmem:[#allocation2 + $0x84] sm:$0x1]  ;;  %v1101_v13 = vshrl.u32 %v897_v17, 16 }
 0x13f   :  { %v1104_v42 = vshll.u32 %v897_v17, 16  ;;  %v1967_v43 = vld [vmem:[#allocation2 + $0x18] sm:$0xf]  ;;  %1408 = vrot.lane.b32.xlu0 %v1366_v21, %s4620_s24  ;;  %v1367_v44 = vld [vmem:[#allocation2 + $0x70] sm:$0xf]  ;;  %v1057_v45 = vsel %vm4876_vm8, %v1052_v12, %v1056_v26  ;;  %v1070_v30 = vrot.slane %v1068_v14, 5 }
 0x140   :  { %v1092_v46 = vrot.slane %v1090_v34, 5  ;;  %v1115_v47 = vshrl.u32 %v899_v23, 16  ;;  %v1066_v48 = vrot.slane %v1065_v22, 4  ;;  %v1096_v49 = vshll.u32 %v896_v27, 16  ;;  %v900_v56 = vld [vmem:[#allocation2 + $0x8c] sm:$0x1] }
 0x141   :  { %v1103_v54 = vrot.slane %v1101_v13, 4  ;;  %v1106_v55 = vrot.slane %v1104_v42, 5  ;;  %1410 = vrot.lane.b32.xlu1 %v1367_v44, %s4620_s24  ;;  %v1110_v61 = vshll.u32 %v898_v40, 16  ;;  %v1118_v63 = vshll.u32 %v899_v23, 16  ;;  %v1966_v2 = vld [vmem:[#allocation2 + $0x14] sm:$0x1] }
 0x142   :  { %v1093_v57 = vor.u32 %v1092_v46, %v1089_v31  ;;  %v1117_v62 = vrot.slane %v1115_v47, 4  ;;  %v1080_v3 = vrot.slane %v1079_v38, 4  ;;  %v1998_v60 = vshrl.u32 %v1965_v36, 16  ;;  %v1968_v7 = vld [vmem:[#allocation2 + $0x1c] sm:$0x1]  ;;  %v4496_v8 = vld [vmem:[%s6332_s4 + $0xd0] sm:$0xff]  }
 0x143   :  { %v1107_v4 = vor.u32 %v1106_v55, %v1103_v54  ;;  %v2001_v6 = vshll.u32 %v1965_v36, 16  ;;  %1148 = vrot.lane.b32.xlu0 %v1057_v45, %s4620_s24  ;;  %v1120_v35 = vrot.slane %v1118_v63, 5  ;;  %v1124_v59 = vshll.u32 %v900_v56, 16  ;;  %v1744_v10 = vld [vmem:[#allocation2 + $0x18] sm:$0xe]  ;;  %4325 = vmatprep.subr.bf16.mxu0 %v4496_v8 }
 0x144   :  { %v5245_v9 = vrot.slane %v1093_v57, 4  ;;  %v2012_v51 = vshrl.u32 %v1967_v43, 16  ;;  %v1071_v11 = vsel %vm4876_vm8, %v1066_v48, %v1070_v30  ;;  %v1084_v12 = vrot.slane %v1082_v33, 5  ;;  %v1745_v16 = vld [vmem:[#allocation2 + $0x1c] sm:$0x1] }
 0x145   :  { %v2000_v14 = vrot.slane %v1998_v60, 4  ;;  %v2003_v15 = vrot.slane %v2001_v6, 5  ;;  %1150 = vrot.lane.b32.xlu1 %v1071_v11, %s4620_s24  ;;  %v1098_v17 = vrot.slane %v1096_v49, 5  ;;  %v5250_v20 = vrot.slane %v1107_v4, 4  ;;  %v5252_v23 = vld [vmem:[#allocation2 + $0x20] sm:$0xe] }
 0x146   :  { %v1121_v21 = vor.u32 %v1120_v35, %v1117_v62  ;;  %v2007_v22 = vshll.u32 %v1966_v2, 16  ;;  %v1969_v26 = vld [vmem:[#allocation2 + $0x20] sm:$0xf]  ;;  %v1368_v27 = vld [vmem:[#allocation2 + $0x78] sm:$0xf]  ;;  %v2014_v34 = vrot.slane %v2012_v51, 4  ;;  %v1085_v33 = vsel %vm4876_vm8, %v1080_v3, %v1084_v12 }
 0x147   :  { %v2004_v31 = vor.u32 %v2003_v15, %v2000_v14  ;;  %v2015_v36 = vshll.u32 %v1967_v43, 16  ;;  %v2021_v38 = vshll.u32 %v1968_v7, 16  ;;  %1412 = vrot.lane.b32.xlu0 %v1368_v27, %s4620_s24  ;;  %v1099_v40 = vsel %vm4876_vm8, %v5245_v9, %v1098_v17  ;;  %v5264_v44 = vld [vmem:[#allocation2 + $0x24] sm:$0x1]  ;;  %v1971_v30 = vld [vmem:[#allocation2 + $0x28] sm:$0xf] }
 0x148   :  { %v5260_v13 = vrot.slane %v1110_v61, 5  ;;  %v5262_v42 = vrot.slane %v1124_v59, 5  ;;  %v5266_v45 = vld [vmem:[#allocation2 + $0x24] sm:$0x1]  ;;  %v1369_v43 = vld [vmem:[#allocation2 + $0x80] sm:$0xf] }
 0x149   :  { %v5268_v46 = vrot.slane %v1121_v21, 4  ;;  %v2017_v47 = vrot.slane %v2015_v36, 5  ;;  %v4022_v48 = vrot.slane %v1744_v10, 9  ;;  %v1814_v49 = vrot.slane %v1745_v16, 5  ;;  %1414 = vrot.lane.b32.xlu1 %v1369_v43, %s4620_s24  ;;  %v5277_v61 = vld [vmem:[#allocation2 + $0x2c] sm:$0x1] }
 0x14a   :  { %v1113_v54 = vsel %vm4876_vm8, %v5250_v20, %v5260_v13  ;;  %v5275_v55 = vrot.slane %v2007_v22, 5  ;;  %v2026_v56 = vshrl.u32 %v1969_v26, 16  ;;  %v2029_v57 = vshll.u32 %v1969_v26, 16  ;;  %v5279_v62 = vld [vmem:[#allocation2 + $0x28] sm:$0xe]  ;;  %v4497_v35 = vld [vmem:[%s6332_s4 + $0x90] sm:$0xff]  }
 0x14b   :  { %v5281_v63 = vld [vmem:[#allocation2 + $0x2c] sm:$0x1]  ;;  %v838_v2 = vld [vmem:[#allocation2 + $0x8] sm:$0xf]  ;;  %v5283_v3 = vrot.slane %v2004_v31, 4  ;;  %v2018_v4 = vor.u32 %v2017_v47, %v2014_v34  ;;  %v5285_v60 = vrot.slane %v2021_v38, 5  ;;  %1152 = vrot.lane.b32.xlu0 %v1085_v33, %s4620_s24  ;;  %v1127_v15 = vsel %vm4876_vm8, %v5268_v46, %v5262_v42  ;;  %4326 = vmatpush3.bf16.msra.mxu0 %v4497_v35 }
 0x14c   :  { %v4023_v6 = vrot.slane %v5252_v23, 9  ;;  %v5288_v7 = vld [vmem:[#allocation2 + $0x30] sm:$0xe]  ;;  %v5290_v8 = vld [vmem:[#allocation2 + $0x34] sm:$0x1]  ;;  %v2028_v59 = vrot.slane %v2026_v56, 4  ;;  %v5303_v16 = vsel %vm5174_vm12, %v4022_v48, %v1814_v49 }
 0x14d   :  { %v1973_v9 = vld [vmem:[#allocation2 + $0x30] sm:$0xf]  ;;  %854 = vst.msk [vmem:[#allocation3 + $0x14] sm:$0xf] %vm378_vm0, %v838_v2  ;;  %v2031_v51 = vrot.slane %v2029_v57, 5  ;;  %v2040_v10 = vshrl.u32 %v1971_v30, 16  ;;  %1154 = vrot.lane.b32.xlu1 %v1099_v40, %s4620_s24  ;;  %v2010_v33 = vsel %vm4876_vm8, %v5283_v3, %v5275_v55 }
 0x14e   :  { %v2043_v11 = vshll.u32 %v1971_v30, 16  ;;  %v1975_v12 = vld [vmem:[#allocation2 + $0x38] sm:$0xf]  ;;  %v1370_v14 = vld [vmem:[#allocation2 + $0x88] sm:$0xf]  ;;  %v1818_v17 = vrot.slane %v5264_v44, 5 }
 0x14f   :  { %v2035_v21 = vshll.u32 %v5266_v45, 16  ;;  %v845_v22 = vld [vmem:[#allocation2 + $0x50] sm:$0xf]  ;;  %v5308_v23 = vrot.slane %v2018_v4, 4  ;;  %v2032_v26 = vor.u32 %v2031_v51, %v2028_v59  ;;  %v2042_v27 = vrot.slane %v2040_v10, 4  ;;  %v4500_v38 = vld [vmem:[%s6332_s4 + $0xc8] sm:$0xff]   ;;  %1416 = vrot.lane.b32.xlu0 %v1370_v14, %s4620_s24 }
 0x150   :  { %v2045_v31 = vrot.slane %v2043_v11, 5  ;;  %v5310_v34 = vld [vmem:[#allocation2 + $0x34] sm:$0x1]  ;;  %861 = vst.msk [vmem:[#allocation3 + $0xa0] sm:$0xf] %vm378_vm0, %v845_v22  ;;  %v2049_v40 = vshll.u32 %v5277_v61, 16  ;;  %4327 = vmatprep.subr.bf16.mxu0 %v4500_v38 }
 0x151   :  { %v840_v36 = vld [vmem:[#allocation2 + $0x18] sm:$0xf]  ;;  %v4024_v44 = vrot.slane %v5279_v62, 9  ;;  %v1822_v45 = vrot.slane %v5281_v63, 5  ;;  %v839_v30 = vld [vmem:[#allocation2 + $0x10] sm:$0xf]  ;;  %v5335_v63 = vsel %vm5174_vm12, %v4023_v6, %v1818_v17 }
 0x152   :  { %856 = vst.msk [vmem:[#allocation3 + $0x3c] sm:$0xf] %vm378_vm0, %v840_v36  ;;  %v4501_v43 = vld [vmem:[%s6332_s4 + $0x88] sm:$0xff]   ;;  %v2046_v47 = vor.u32 %v2045_v31, %v2042_v27  ;;  %v4025_v48 = vrot.slane %v5288_v7, 9  ;;  %v1826_v49 = vrot.slane %v5290_v8, 5  ;;  %v2054_v56 = vshrl.u32 %v1973_v9, 16 }
 0x153   :  { %v1976_v57 = vld [vmem:[#allocation2 + $0x3c] sm:$0x1]  ;;  %v5330_v61 = vld [vmem:[#allocation2 + $0x38] sm:$0xe]  ;;  %855 = vst.msk [vmem:[#allocation3 + $0x28] sm:$0xf] %vm378_vm0, %v839_v30  ;;  %4328 = vmatpush3.bf16.msra.mxu0 %v4501_v43  ;;  %v2024_v7 = vsel %vm4876_vm8, %v5308_v23, %v5285_v60  ;;  %1156 = vrot.lane.b32.xlu0 %v1113_v54, %s4620_s24 }
 0x154   :  { %v1371_v62 = vld [vmem:[#allocation2 + $0x90] sm:$0xf]  ;;  %v5337_v2 = vrot.slane %v2032_v26, 4  ;;  %v2057_v4 = vshll.u32 %v1973_v9, 16  ;;  %v2068_v35 = vshrl.u32 %v1975_v12, 16  ;;  %v5344_v8 = vrot.slane %v2035_v21, 5 }
 0x155   :  { %v1753_v59 = vld [vmem:[#allocation2 + $0x3c] sm:$0x1]  ;;  %1418 = vrot.lane.b32.xlu1 %v1371_v62, %s4620_s24  ;;  %v2056_v51 = vrot.slane %v2054_v56, 4  ;;  %v2071_v10 = vshll.u32 %v1975_v12, 16  ;;  %v1754_v11 = vld [vmem:[#allocation2 + $0x40] sm:$0xe]  ;;  %v5362_v12 = vsel %vm5174_vm12, %v4024_v44, %v1822_v45  ;;  %v5366_v21 = vsel %vm5174_vm12, %v4025_v48, %v1826_v49 }
 0x156   :  { %v1755_v6 = vld [vmem:[#allocation2 + $0x44] sm:$0x1]  ;;  %v1977_v14 = vld [vmem:[#allocation2 + $0x40] sm:$0xf]  ;;  %v5349_v17 = vrot.slane %v2049_v40, 5  ;;  %v2059_v22 = vrot.slane %v2057_v4, 5  ;;  %v2038_v13 = vsel %vm4876_vm8, %v5337_v2, %v5344_v8 }
 0x157   :  { %v4505_v9 = vld [vmem:[%s6332_s4 + $0xc0] sm:$0xff]   ;;  %v2063_v26 = vshll.u32 %v5310_v34, 16  ;;  %v2070_v27 = vrot.slane %v2068_v35, 4  ;;  %v842_v31 = vld [vmem:[#allocation2 + $0x28] sm:$0xf]  ;;  %v5358_v60 = vrot.slane %v2046_v47, 4  ;;  %2221 = vrot.lane.b32.xlu0 %v2010_v33, %s4620_s24 }
 0x158   :  { %v2073_v23 = vrot.slane %v2071_v10, 5  ;;  %858 = vst.msk [vmem:[#allocation3 + $0x64] sm:$0xf] %vm378_vm0, %v842_v31  ;;  %v841_v34 = vld [vmem:[#allocation2 + $0x20] sm:$0xf]  ;;  %4329 = vmatprep.subr.bf16.mxu0 %v4505_v9  ;;  %v2060_v54 = vor.u32 %v2059_v22, %v2056_v51  ;;  %v2077_v36 = vshll.u32 %v1976_v57, 16 }
 0x159   :  { %v4506_v20 = vld [vmem:[%s6332_s4 + $0x80] sm:$0xff]   ;;  %v4026_v38 = vrot.slane %v5330_v61, 9  ;;  %v1756_v44 = vld [vmem:[#allocation2 + $0x58] sm:$0xe]  ;;  %857 = vst.msk [vmem:[#allocation3 + $0x50] sm:$0xf] %vm378_vm0, %v841_v34  ;;  %1158 = vrot.lane.b32.xlu1 %v1127_v15, %s4620_s24  ;;  %v2052_v42 = vsel %vm4876_vm8, %v5358_v60, %v5349_v17 }
 0x15a   :  { %v1978_v40 = vld [vmem:[#allocation2 + $0x44] sm:$0x1]  ;;  %v2074_v45 = vor.u32 %v2073_v23, %v2070_v27  ;;  %v1830_v30 = vrot.slane %v1753_v59, 5  ;;  %v2082_v43 = vshrl.u32 %v1977_v14, 16  ;;  %v2085_v47 = vshll.u32 %v1977_v14, 16  ;;  %4330 = vmatpush3.bf16.msra.mxu0 %v4506_v20 }
 0x15b   :  { %v1757_v48 = vld [vmem:[#allocation2 + $0x5c] sm:$0x1]  ;;  %v5384_v49 = vrot.slane %v2063_v26, 5  ;;  %v4027_v56 = vrot.slane %v1754_v11, 9  ;;  %v1834_v57 = vrot.slane %v1755_v6, 5  ;;  %v2098_v61 = vrot.slane %v2096_v58, 4  ;;  %1872 = vrot.lane.b32.xlu0 %v5303_v16, %s4620_s24 }
 0x15c   :  { %v1758_v62 = vld [vmem:[#allocation2 + $0x60] sm:$0xe]  ;;  %v1759_v4 = vld [vmem:[#allocation2 + $0x64] sm:$0x1]  ;;  %v2084_v46 = vrot.slane %v2082_v43, 4  ;;  %v2087_v15 = vrot.slane %v2085_v47, 5  ;;  %v5409_v3 = vsel %vm5174_vm12, %v4026_v38, %v1830_v30 }
 0x15d   :  { %v2101_v35 = vrot.slane %v2099_v28, 5  ;;  %v1981_v58 = vld [vmem:[#allocation2 + $0x60] sm:$0xf]  ;;  %v5400_v59 = vrot.slane %v2060_v54, 4  ;;  %v5402_v51 = vrot.slane %v2074_v45, 4  ;;  %v5404_v10 = vrot.slane %v2077_v36, 5  ;;  %2223 = vrot.lane.b32.xlu1 %v2024_v7, %s4620_s24 }
 0x15e   :  { %v2091_v11 = vshll.u32 %v1978_v40, 16  ;;  %v1983_v55 = vld [vmem:[#allocation2 + $0x68] sm:$0xf]  ;;  %v2088_v33 = vor.u32 %v2087_v15, %v2084_v46  ;;  %v4028_v6 = vrot.slane %v1756_v44, 9  ;;  %v1838_v14 = vrot.slane %v1757_v48, 5 }
 0x15f   :  { %v843_v39 = vld [vmem:[#allocation2 + $0x30] sm:$0xf]  ;;  %v844_v28 = vld [vmem:[#allocation2 + $0x38] sm:$0xf]  ;;  %v5413_v9 = vsel %vm5174_vm12, %v4027_v56, %v1834_v57  ;;  %v2102_v22 = vor.u32 %v2101_v35, %v2098_v61  ;;  %v1982_v26 = vld [vmem:[#allocation2 + $0x64] sm:$0x1]  ;;  %v2066_v40 = vsel %vm4876_vm8, %v5400_v59, %v5384_v49  ;;  %v2080_v16 = vsel %vm4876_vm8, %v5402_v51, %v5404_v10  ;;  %2225 = vrot.lane.b32.xlu0 %v2038_v13, %s4620_s24 }
 0x160   :  { %v2110_v27 = vshrl.u32 %v1981_v58, 16  ;;  %v2113_v31 = vshll.u32 %v1981_v58, 16  ;;  %v1984_v23 = vld [vmem:[#allocation2 + $0x6c] sm:$0x1]  ;;  %859 = vst.msk [vmem:[#allocation3 + $0x78] sm:$0xf] %vm378_vm0, %v843_v39  ;;  %v5439_v48 = vsel %vm5174_vm12, %v4028_v6, %v1838_v14 }
 0x161   :  { %860 = vst.msk [vmem:[#allocation3 + $0x8c] sm:$0xf] %vm378_vm0, %v844_v28  ;;  %v5419_v7 = vrot.slane %v2088_v33, 4  ;;  %v4029_v34 = vrot.slane %v1758_v62, 9  ;;  %v1842_v20 = vrot.slane %v1759_v4, 5  ;;  %v2124_v54 = vshrl.u32 %v1983_v55, 16  ;;  %1874 = vrot.lane.b32.xlu1 %v5335_v63, %s4620_s24 }
 0x162   :  { %v5421_v36 = vld [vmem:[#allocation2 + $0x68] sm:$0xe]  ;;  %v5423_v38 = vld [vmem:[#allocation2 + $0x6c] sm:$0x1]  ;;  %v2112_v44 = vrot.slane %v2110_v27, 4  ;;  %v2115_v45 = vrot.slane %v2113_v31, 5 }
 0x163   :  { %v2127_v30 = vshll.u32 %v1983_v55, 16  ;;  %v1985_v43 = vld [vmem:[#allocation2 + $0x70] sm:$0xf]  ;;  %v5435_v47 = vrot.slane %v2091_v11, 5  ;;  %v2126_v56 = vrot.slane %v2124_v54, 4  ;;  %v5441_v62 = vrot.slane %v2102_v22, 4  ;;  %1876 = vrot.lane.b32.xlu0 %v5362_v12, %s4620_s24 }
 0x164   :  { %v1762_v57 = vld [vmem:[#allocation2 + $0x70] sm:$0xe]  ;;  %v1763_v61 = vld [vmem:[#allocation2 + $0x74] sm:$0x1]  ;;  %v2116_v4 = vor.u32 %v2115_v45, %v2112_v44  ;;  %v2119_v46 = vshll.u32 %v1982_v26, 16  ;;  %v5455_v58 = vsel %vm5174_vm12, %v4029_v34, %v1842_v20  ;;  %v2133_v11 = vshll.u32 %v1984_v23, 16  ;;  %v1129_v34 = vpop.permute.xlu0 %1128 }
 0x165   :  { %v2129_v15 = vrot.slane %v2127_v30, 5  ;;  %v1986_v63 = vld [vmem:[#allocation2 + $0x74] sm:$0x1]  ;;  %v2094_v35 = vsel %vm4876_vm8, %v5419_v7, %v5435_v47  ;;  %v2138_v55 = vshrl.u32 %v1985_v43, 16  ;;  %v1987_v33 = vld [vmem:[#allocation2 + $0x78] sm:$0xf]  ;;  %2227 = vrot.lane.b32.xlu1 %v2052_v42, %s4620_s24 }
 0x166   :  { %v1193_v6 = vld [vmem:[#allocation2] sm:$0xe]  ;;  %v846_v14 = vld [vmem:[#allocation2 + $0x58] sm:$0xf]  ;;  %v4030_v28 = vrot.slane %v5421_v36, 9  ;;  %v1846_v2 = vrot.slane %v5423_v38, 5 }
 0x167   :  { %v2130_v39 = vor.u32 %v2129_v15, %v2126_v56  ;;  %v2141_v8 = vshll.u32 %v1985_v43, 16  ;;  %v1194_v13 = vld [vmem:[#allocation2 + $0x4] sm:$0x1]  ;;  %862 = vst.msk [vmem:[#allocation3 + $0xb4] sm:$0xf] %vm378_vm0, %v846_v14  ;;  %v5466_v22 = vrot.slane %v2116_v4, 4  ;;  %2229 = vrot.lane.b32.xlu0 %v2066_v40, %s4620_s24 }
 0x168   :  { %v4031_v26 = vrot.slane %v1762_v57, 9  ;;  %v1850_v27 = vrot.slane %v1763_v61, 5  ;;  %v2140_v31 = vrot.slane %v2138_v55, 4  ;;  %v1988_v23 = vld [vmem:[#allocation2 + $0x7c] sm:$0x1]  ;;  %v2147_v36 = vshll.u32 %v1986_v63, 16 }
 0x169   :  { %v5468_v20 = vrot.slane %v2130_v39, 4  ;;  %v2143_v54 = vrot.slane %v2141_v8, 5  ;;  %v2152_v38 = vshrl.u32 %v1987_v33, 16  ;;  %v1196_v44 = vld [vmem:[#allocation2 + $0xc] sm:$0x1]  ;;  %v5472_v30 = vrot.slane %v2119_v46, 5  ;;  %1878 = vrot.lane.b32.xlu1 %v5366_v21, %s4620_s24 }
 0x16a   :  { %v1195_v45 = vld [vmem:[#allocation2 + $0x8] sm:$0xe]  ;;  %v5474_v17 = vrot.slane %v2133_v11, 5  ;;  %v2155_v60 = vshll.u32 %v1987_v33, 16  ;;  %v5476_v42 = vld [vmem:[#allocation2 + $0x78] sm:$0xe]  ;;  %v2108_v46 = vsel %vm4876_vm8, %v5441_v62, %v5052_v25  ;;  %v5492_v11 = vsel %vm5174_vm12, %v4030_v28, %v1846_v2 }
 0x16b   :  { %v847_v43 = vld [vmem:[#allocation2 + $0x60] sm:$0xf]  ;;  %v2144_v56 = vor.u32 %v2143_v54, %v2140_v31  ;;  %v2154_v57 = vrot.slane %v2152_v38, 4  ;;  %v2161_v61 = vshll.u32 %v1988_v23, 16  ;;  %1177 = vst.msk [vmem:[#allocation3] sm:$0xf] %vm1176_vm13, %v1129_v34  ;;  %v2122_v21 = vsel %vm4876_vm8, %v5466_v22, %v5472_v30  ;;  %1880 = vrot.lane.b32.xlu0 %v5409_v3, %s4620_s24 }
 0x16c   :  { %v4004_v4 = vrot.slane %v1193_v6, 9  ;;  %v5479_v15 = vld [vmem:[#allocation2 + $0x7c] sm:$0x1]  ;;  %v5481_v63 = vld [vmem:[#allocation2 + $0x80] sm:$0xe]  ;;  %v2157_v55 = vrot.slane %v2155_v60, 5  ;;  %v2136_v39 = vsel %vm4876_vm8, %v5468_v20, %v5474_v17  ;;  %v5507_v28 = vsel %vm5174_vm12, %v4031_v26, %v1850_v27 }
 0x16d   :  { %863 = vst.msk [vmem:[#allocation3 + $0xc8] sm:$0xf] %vm378_vm0, %v847_v43  ;;  %v848_v12 = vld [vmem:[#allocation2 + $0x68] sm:$0xf]  ;;  %v1262_v33 = vrot.slane %v1194_v13, 5  ;;  %v5509_v2 = vrot.slane %v2147_v36, 5  ;;  %2231 = vrot.lane.b32.xlu1 %v2080_v16, %s4620_s24 }
 0x16e   :  { %v5494_v6 = vld [vmem:[#allocation2 + $0x84] sm:$0x1]  ;;  %v1989_v14 = vld [vmem:[#allocation2 + $0x80] sm:$0xf]  ;;  %864 = vst.msk [vmem:[#allocation3 + $0xdc] sm:$0xf] %vm378_vm0, %v848_v12  ;;  %v2158_v23 = vor.u32 %v2157_v55, %v2154_v57 }
 0x16f   :  { %v5511_v8 = vld [vmem:[#allocation2 + $0x84] sm:$0x1]  ;;  %v1991_v13 = vld [vmem:[#allocation2 + $0x88] sm:$0xf]  ;;  %v1197_v31 = vld [vmem:[#allocation2 + $0x10] sm:$0xe]  ;;  %v1263_v34 = vsel %vm5174_vm12, %v4004_v4, %v1262_v33  ;;  %2233 = vrot.lane.b32.xlu0 %v2094_v35, %s4620_s24 }
 0x170   :  { %v1266_v54 = vrot.slane %v1196_v44, 5  ;;  %v4005_v26 = vrot.slane %v1195_v45, 9  ;;  %v5521_v27 = vld [vmem:[#allocation2 + $0x8c] sm:$0x1]  ;;  %v1198_v36 = vld [vmem:[#allocation2 + $0x14] sm:$0x1] }
 0x171   :  { %v849_v38 = vld [vmem:[#allocation2 + $0x70] sm:$0xf]  ;;  %v5523_v60 = vrot.slane %v2144_v56, 4  ;;  %v5525_v43 = vrot.slane %v2161_v61, 5  ;;  %1340 = vst.msk [vmem:[#allocation3 + $0x4] sm:$0xf] %vm378_vm0, %v1263_v34  ;;  %1882 = vrot.lane.b32.xlu1 %v5413_v9, %s4620_s24 }
 0x172   :  { %v4032_v12 = vrot.slane %v5476_v42, 9  ;;  %v2166_v49 = vshrl.u32 %v1989_v14, 16  ;;  %v5529_v59 = vld [vmem:[#allocation2 + $0x88] sm:$0xe]  ;;  %865 = vst.msk [vmem:[#allocation3 + $0xf0] sm:$0xf] %vm378_vm0, %v849_v38  ;;  %v1267_v42 = vsel %vm5174_vm12, %v4005_v26, %v1266_v54 }
 0x173   :  { %v850_v40 = vld [vmem:[#allocation2 + $0x78] sm:$0xf]  ;;  %v1854_v44 = vrot.slane %v5479_v15, 5  ;;  %v4033_v45 = vrot.slane %v5481_v63, 9  ;;  %v2169_v56 = vshll.u32 %v1989_v14, 16  ;;  %v1858_v4 = vrot.slane %v5494_v6, 5  ;;  %1884 = vrot.lane.b32.xlu0 %v5439_v48, %s4620_s24 }
 0x174   :  { %v5542_v57 = vld [vmem:[#allocation2 + $0x8c] sm:$0x1]  ;;  %v5544_v61 = vld [vmem:[#allocation2 + $0x18] sm:$0xe]  ;;  %866 = vst.msk [vmem:[#allocation3 + $0x104] sm:$0xf] %vm378_vm0, %v850_v40 }
 0x175   :  { %1341 = vst.msk [vmem:[#allocation3 + $0x18] sm:$0xf] %vm378_vm0, %v1267_v42  ;;  %v2168_v51 = vrot.slane %v2166_v49, 4  ;;  %v2180_v10 = vshrl.u32 %v1991_v13, 16  ;;  %v2183_v16 = vshll.u32 %v1991_v13, 16  ;;  %v5551_v63 = vrot.slane %v2158_v23, 4  ;;  %2235 = vrot.lane.b32.xlu1 %v2108_v46, %s4620_s24 }
 0x176   :  { %v1200_v15 = vld [vmem:[#allocation2 + $0x1c] sm:$0x1]  ;;  %v2171_v55 = vrot.slane %v2169_v56, 5  ;;  %v2175_v33 = vshll.u32 %v5511_v8, 16  ;;  %v4006_v14 = vrot.slane %v1197_v31, 9  ;;  %v2189_v38 = vshll.u32 %v5521_v27, 16 }
 0x177   :  { %v5554_v34 = vld [vmem:[#allocation2 + $0x90] sm:$0xe]  ;;  %v5556_v26 = vrot.slane %v2180_v10, 4  ;;  %v5558_v6 = vrot.slane %v2183_v16, 5  ;;  %v1270_v13 = vrot.slane %v1198_v36, 5  ;;  %v2150_v8 = vsel %vm4876_vm8, %v5523_v60, %v5509_v2  ;;  %2237 = vrot.lane.b32.xlu0 %v2122_v21, %s4620_s24 }
 0x178   :  { %v1993_v54 = vld [vmem:[#allocation2 + $0x90] sm:$0xf]  ;;  %v5561_v49 = vld [vmem:[#allocation2 + $0x94] sm:$0x1]  ;;  %v449_v40 = vld [vmem:[#allocation2 + $0x98] sm:$0x1]  ;;  %v5571_v31 = vsel %vm5174_vm12, %v4032_v12, %v1854_v44  ;;  %v2172_v23 = vor.u32 %v2171_v55, %v2168_v51  ;;  %v5577_v56 = vsel %vm5174_vm12, %v4033_v45, %v1858_v4  ;;  %v2164_v45 = vsel %vm4876_vm8, %v5551_v63, %v5525_v43 }
 0x179   :  { %v851_v3 = vld [vmem:[#allocation2 + $0x80] sm:$0xf]  ;;  %v4034_v27 = vrot.slane %v5529_v59, 9  ;;  %v511_v36 = vld [vmem:[#allocation2 + $0x9c] sm:$0x1]  ;;  %v1271_v9 = vsel %vm5174_vm12, %v4006_v14, %v1270_v13  ;;  %v1862_v10 = vrot.slane %v5542_v57, 5  ;;  %v2186_v7 = vor.u32 %v5558_v6, %v5556_v26  ;;  %1886 = vrot.lane.b32.xlu1 %v5455_v58, %s4620_s24 }
 0x17a   :  { %867 = vst.msk [vmem:[#allocation3 + $0x118] sm:$0xf] %vm378_vm0, %v851_v3  ;;  %v852_v42 = vld [vmem:[#allocation2 + $0x88] sm:$0xf]  ;;  %v4007_v16 = vrot.slane %v5544_v61, 9  ;;  %v5594_v57 = vrot.slane %v2175_v33, 5 }
 0x17b   :  { %v1203_v12 = vld [vmem:[#allocation2 + $0x28] sm:$0xe]  ;;  %v1204_v44 = vld [vmem:[#allocation2 + $0x2c] sm:$0x1]  ;;  %v1201_v51 = vld [vmem:[#allocation2 + $0x20] sm:$0xe]  ;;  %1888 = vrot.lane.b32.xlu0 %v5492_v11, %s4620_s24 }
 0x17c   :  { %v1202_v55 = vld [vmem:[#allocation2 + $0x24] sm:$0x1]  ;;  %868 = vst.msk [vmem:[#allocation3 + $0x12c] sm:$0xf] %vm378_vm0, %v852_v42  ;;  %v1933_v59 = vld [vmem:[#allocation2 + $0x10] sm:$0xf] }
 0x17d   :  { %v1934_v3 = vld [vmem:[#allocation2 + $0x18] sm:$0xf]  ;;  %1342 = vst.msk [vmem:[#allocation3 + $0x2c] sm:$0xf] %vm378_vm0, %v1271_v9  ;;  %v1274_v61 = vrot.slane %v1200_v15, 5  ;;  %v2194_v14 = vshrl.u32 %v1993_v54, 16  ;;  %2239 = vrot.lane.b32.xlu1 %v2136_v39, %s4620_s24 }
 0x17e   :  { %v5597_v4 = vld [vmem:[#allocation2 + $0x94] sm:$0x1]  ;;  %v1207_v13 = vld [vmem:[#allocation2 + $0x38] sm:$0xe]  ;;  %v1208_v42 = vld [vmem:[#allocation2 + $0x3c] sm:$0x1] }
 0x17f   :  { %1949 = vst.msk [vmem:[#allocation3 + $0xc] sm:$0xf] %vm378_vm0, %v1933_v59  ;;  %1950 = vst.msk [vmem:[#allocation3 + $0x20] sm:$0xf] %vm378_vm0, %v1934_v3  ;;  %v5603_v47 = vrot.slane %v2189_v38, 5  ;;  %v4035_v35 = vrot.slane %v5554_v34, 9  ;;  %v1389_v59 = vpop.permute.xlu1 %1388  ;;  %v1275_v26 = vsel %vm5174_vm12, %v4007_v16, %v1274_v61  ;;  %v5624_v38 = vsel %vm5174_vm12, %v4034_v27, %v1862_v10  ;;  %2241 = vrot.lane.b32.xlu0 %v2150_v8, %s4620_s24 }
 0x180   :  { %v2197_v33 = vshll.u32 %v1993_v54, 16  ;;  %v1206_v9 = vld [vmem:[#allocation2 + $0x34] sm:$0x1]  ;;  %v1454_v15 = vld [vmem:[#allocation2 + $0x10] sm:$0xf]  ;;  %v5612_v19 = vrot.slane %v2172_v23, 4 }
 0x181   :  { %v1866_v3 = vrot.slane %v5561_v49, 5  ;;  %v450_v54 = vsel %vm4843_vm4, 0, %v449_v40  ;;  %v5619_v6 = vld [vmem:[#allocation2 + $0x14] sm:$0x1]  ;;  %1436 = vst.msk [vmem:[#allocation3 + $0x4] sm:$0xf] %vm1176_vm13, %v1389_v59  ;;  %1890 = vrot.lane.b32.xlu1 %v5507_v28, %s4620_s24 }
 0x182   :  { %1343 = vst.msk [vmem:[#allocation3 + $0x40] sm:$0xf] %vm378_vm0, %v1275_v26  ;;  %v2196_v25 = vrot.slane %v2194_v14, 4  ;;  %v2199_v62 = vrot.slane %v2197_v33, 5  ;;  %451 = vst [vmem:[#allocation2 + $0x98] sm:$0x1] %v450_v54 }
 0x183   :  { %v512_v46 = vsel %vm4850_vm5, 0, %v511_v36  ;;  %v1935_v23 = vld [vmem:[#allocation2 + $0x20] sm:$0xf]  ;;  %v4009_v1 = vrot.slane %v1203_v12, 9  ;;  %v1282_v40 = vrot.slane %v1204_v44, 5  ;;  %v4008_v16 = vrot.slane %v1201_v51, 9  ;;  %v1391_v5 = vpop.permute.xlu1 %1390  ;;  %1892 = vrot.lane.b32.xlu0 %v5571_v31, %s4620_s24 }
 0x184   :  { %513 = vst [vmem:[#allocation2 + $0x9c] sm:$0x1] %v512_v46  ;;  %v1278_v61 = vrot.slane %v1202_v55, 5  ;;  %1951 = vst.msk [vmem:[#allocation3 + $0x34] sm:$0xf] %vm378_vm0, %v1935_v23  ;;  %v2203_v10 = vshll.u32 %v5597_v4, 16 }
 0x185   :  { %v1936_v27 = vld [vmem:[#allocation2 + $0x28] sm:$0xf]  ;;  %v4011_v14 = vrot.slane %v1207_v13, 9  ;;  %v1290_v33 = vrot.slane %v1208_v42, 5  ;;  %v4010_v59 = vrot.slane %v1205_v0, 9  ;;  %v1283_v48 = vsel %vm5174_vm12, %v4009_v1, %v1282_v40  ;;  %2243 = vrot.lane.b32.xlu1 %v2164_v45, %s4620_s24 }
 0x186   :  { %v1452_v26 = vld [vmem:[#allocation2 + $0x8] sm:$0xf]  ;;  %1952 = vst.msk [vmem:[#allocation3 + $0x48] sm:$0xf] %vm378_vm0, %v1936_v27  ;;  %v1279_v36 = vsel %vm5174_vm12, %v4008_v16, %v1278_v61  ;;  %v1286_v12 = vrot.slane %v1206_v9, 5  ;;  %v1499_v44 = vshrl.u32 %v1454_v15, 16  ;;  %v2200_v0 = vor.u32 %v2199_v62, %v2196_v25 }
 0x187   :  { %v1453_v51 = vld [vmem:[#allocation2 + $0xc] sm:$0x1]  ;;  %v1211_v55 = vld [vmem:[#allocation2 + $0x58] sm:$0xe]  ;;  %1437 = vst.msk [vmem:[#allocation3 + $0x18] sm:$0xf] %vm1176_vm13, %v1391_v5  ;;  %v1291_v58 = vsel %vm5174_vm12, %v4011_v14, %v1290_v33  ;;  %v2360_v27 = vsel %vm5174_vm12, %v4038_v52, %v2359_v18 }
 0x188   :  { %1345 = vst.msk [vmem:[#allocation3 + $0x68] sm:$0xf] %vm378_vm0, %v1283_v48  ;;  %1344 = vst.msk [vmem:[#allocation3 + $0x54] sm:$0xf] %vm378_vm0, %v1279_v36  ;;  %v1502_v4 = vshll.u32 %v1454_v15, 16  ;;  %v1508_v13 = vshll.u32 %v5619_v6, 16  ;;  %v1287_v9 = vsel %vm5174_vm12, %v4010_v59, %v1286_v12 }
 0x189   :  { %v1212_v42 = vld [vmem:[#allocation2 + $0x5c] sm:$0x1]  ;;  %v1209_v54 = vld [vmem:[#allocation2 + $0x50] sm:$0xe]  ;;  %1347 = vst.msk [vmem:[#allocation3 + $0x90] sm:$0xf] %vm378_vm0, %v1291_v58  ;;  %1894 = vrot.lane.b32.xlu1 %v5577_v56, %s4620_s24 }
 0x18a   :  { %v1501_v25 = vrot.slane %v1499_v44, 4  ;;  %v1485_v62 = vshrl.u32 %v1452_v26, 16  ;;  %v1488_v46 = vshll.u32 %v1452_v26, 16  ;;  %v1210_v15 = vld [vmem:[#allocation2 + $0x54] sm:$0x1]  ;;  %v5655_v23 = vrot.slane %v2186_v7, 4 }
 0x18b   :  { %v5657_v6 = vrot.slane %v2203_v10, 5  ;;  %1346 = vst.msk [vmem:[#allocation3 + $0x7c] sm:$0xf] %vm378_vm0, %v1287_v9  ;;  %v1504_v1 = vrot.slane %v1502_v4, 5  ;;  %v1494_v40 = vshll.u32 %v1453_v51, 16  ;;  %v4013_v7 = vrot.slane %v1211_v55, 9  ;;  %v1393_v10 = vpop.permute.xlu0 %1392 }
 0x18c   :  { %v5660_v16 = vld [vmem:[#allocation2 + $0x60] sm:$0xe]  ;;  %v1995_v22 = vld [vmem:[#allocation2 + $0x98] sm:$0xf]  ;;  %v1487_v30 = vrot.slane %v1485_v62, 4  ;;  %v1490_v21 = vrot.slane %v1488_v46, 5  ;;  %v2192_v56 = vsel %vm4876_vm8, %v5655_v23, %v5603_v47 }
 0x18d   :  { %v1214_v61 = vld [vmem:[#allocation2 + $0x64] sm:$0x1]  ;;  %v5674_v14 = vrot.slane %v2200_v0, 4  ;;  %v2208_v33 = vshrl.u32 %v1995_v22, 16  ;;  %v2211_v59 = vshll.u32 %v1995_v22, 16  ;;  %v1505_v26 = vor.u32 %v1504_v1, %v1501_v25  ;;  %2247 = vrot.lane.b32.xlu1 %v2192_v56, %s4620_s24 }
 0x18e   :  { %v1215_v20 = vld [vmem:[#allocation2 + $0x68] sm:$0xe]  ;;  %v1216_v17 = vld [vmem:[#allocation2 + $0x6c] sm:$0x1]  ;;  %v5676_v39 = vld [vmem:[#allocation2 + $0x70] sm:$0xe]  ;;  %v1491_v52 = vor.u32 %v1490_v21, %v1487_v30 }
 0x18f   :  { %2431 = vst.msk [vmem:[#allocation3 + $0x38] sm:$0xf] %vm378_vm0, %v2360_v27  ;;  %v1996_v29 = vld [vmem:[#allocation2 + $0x9c] sm:$0x1]  ;;  %v1510_v50 = vrot.slane %v1508_v13, 5  ;;  %v1298_v18 = vrot.slane %v1212_v42, 5  ;;  %v1131_v46 = vpop.permute.xlu0 %1130 }
 0x190   :  { %1438 = vst.msk [vmem:[#allocation3 + $0x2c] sm:$0xf] %vm1176_vm13, %v1393_v10  ;;  %v4012_v5 = vrot.slane %v1209_v54, 9  ;;  %v1218_v48 = vld [vmem:[#allocation2 + $0x74] sm:$0x1]  ;;  %v5682_v12 = vrot.slane %v2208_v33, 4 }
 0x191   :  { %v1219_v36 = vld [vmem:[#allocation2 + $0x78] sm:$0xe]  ;;  %v5684_v44 = vrot.slane %v2211_v59, 5  ;;  %v1506_v51 = vrot.slane %v1505_v26, 4  ;;  %v1294_v55 = vrot.slane %v1210_v15, 5  ;;  %v1492_v11 = vrot.slane %v1491_v52, 4 }
 0x192   :  { %v1220_v0 = vld [vmem:[#allocation2 + $0x7c] sm:$0x1]  ;;  %v1221_v58 = vld [vmem:[#allocation2 + $0x80] sm:$0xe]  ;;  %v1222_v4 = vld [vmem:[#allocation2 + $0x84] sm:$0x1]  ;;  %v1299_v13 = vsel %vm5174_vm12, %v4013_v7, %v1298_v18 }
 0x193   :  { %v1496_v9 = vrot.slane %v1494_v40, 5  ;;  %v4014_v42 = vrot.slane %v5660_v16, 9  ;;  %v1223_v54 = vld [vmem:[#allocation2 + $0x88] sm:$0xe]  ;;  %v1224_v25 = vld [vmem:[#allocation2 + $0x8c] sm:$0x1]  ;;  %v1511_v15 = vsel %vm4876_vm8, %v1506_v51, %v1510_v50  ;;  %v1295_v28 = vsel %vm5174_vm12, %v4012_v5, %v1294_v55  ;;  %v1395_v16 = vpop.permute.xlu1 %1394  ;;  %v1145_v52 = vpop.permute.xlu0 %1144 }
 0x194   :  { %v1937_v62 = vld [vmem:[#allocation2 + $0x30] sm:$0xf]  ;;  %v2217_v1 = vshll.u32 %v1996_v29, 16  ;;  %1349 = vst.msk [vmem:[#allocation3 + $0xb8] sm:$0xf] %vm378_vm0, %v1299_v13  ;;  %v1302_v22 = vrot.slane %v1214_v61, 5  ;;  %v2214_v2 = vor.u32 %v5684_v44, %v5682_v12 }
 0x195   :  { %v1456_v40 = vld [vmem:[#allocation2 + $0x18] sm:$0xf]  ;;  %1953 = vst.msk [vmem:[#allocation3 + $0x5c] sm:$0xf] %vm378_vm0, %v1937_v62  ;;  %1725 = vst.msk [vmem:[#allocation3 + $0x1c] sm:$0xf] %vm378_vm0, %v1511_v15  ;;  %v1497_v21 = vsel %vm4876_vm8, %v1492_v11, %v1496_v9 }
 0x196   :  { %v1938_v30 = vld [vmem:[#allocation2 + $0x38] sm:$0xf]  ;;  %1178 = vst.msk [vmem:[#allocation3 + $0x14] sm:$0xf] %vm1176_vm13, %v1131_v46  ;;  %v4015_v7 = vrot.slane %v1215_v20, 9  ;;  %v1306_v61 = vrot.slane %v1216_v17, 5  ;;  %v1303_v60 = vsel %vm5174_vm12, %v4014_v42, %v1302_v22 }
 0x197   :  { %1348 = vst.msk [vmem:[#allocation3 + $0xa4] sm:$0xf] %vm378_vm0, %v1295_v28  ;;  %v4016_v27 = vrot.slane %v5676_v39, 9  ;;  %v1457_v10 = vld [vmem:[#allocation2 + $0x1c] sm:$0x1]  ;;  %v1310_v8 = vrot.slane %v1218_v48, 5 }
 0x198   :  { %1954 = vst.msk [vmem:[#allocation3 + $0x70] sm:$0xf] %vm378_vm0, %v1938_v30  ;;  %1724 = vst.msk [vmem:[#allocation3 + $0x8] sm:$0xf] %vm378_vm0, %v1497_v21  ;;  %v4017_v33 = vrot.slane %v1219_v36, 9  ;;  %v1307_v20 = vsel %vm5174_vm12, %v4015_v7, %v1306_v61  ;;  %v1314_v17 = vrot.slane %v1220_v0, 5 }
 0x199   :  { %1439 = vst.msk [vmem:[#allocation3 + $0x40] sm:$0xf] %vm1176_vm13, %v1395_v16  ;;  %v1458_v59 = vld [vmem:[#allocation2 + $0x20] sm:$0xf]  ;;  %v1459_v26 = vld [vmem:[#allocation2 + $0x24] sm:$0x1]  ;;  %v1311_v18 = vsel %vm5174_vm12, %v4016_v27, %v1310_v8  ;;  %v1135_v8 = vpop.permute.xlu1 %1134 }
 0x19a   :  { %1350 = vst.msk [vmem:[#allocation3 + $0xcc] sm:$0xf] %vm378_vm0, %v1303_v60  ;;  %v4018_v39 = vrot.slane %v1221_v58, 9  ;;  %v1318_v29 = vrot.slane %v1222_v4, 5  ;;  %v5725_v50 = vrot.slane %v2217_v1, 5  ;;  %v4019_v5 = vrot.slane %v1223_v54, 9 }
 0x19b   :  { %1351 = vst.msk [vmem:[#allocation3 + $0xe0] sm:$0xf] %vm378_vm0, %v1307_v20  ;;  %v1322_v48 = vrot.slane %v1224_v25, 5  ;;  %v2285_v43 = vld [vmem:[#allocation2 + $0x10] sm:$0xe]  ;;  %v1315_v63 = vsel %vm5174_vm12, %v4017_v33, %v1314_v17  ;;  %v1513_v36 = vshrl.u32 %v1456_v40, 16  ;;  %v2178_v1 = vsel %vm4876_vm8, %v5612_v19, %v5594_v57 }
 0x19c   :  { %1185 = vst.msk [vmem:[#allocation3 + $0xa0] sm:$0xf] %vm1176_vm13, %v1145_v52  ;;  %v1319_v45 = vsel %vm5174_vm12, %v4018_v39, %v1318_v29  ;;  %v1516_v12 = vshll.u32 %v1456_v40, 16  ;;  %v2286_v44 = vld [vmem:[#allocation2 + $0x14] sm:$0x1]  ;;  %v1522_v0 = vshll.u32 %v1457_v10, 16  ;;  %2245 = vrot.lane.b32.xlu0 %v2178_v1, %s4620_s24 }
 0x19d   :  { %1352 = vst.msk [vmem:[#allocation3 + $0xf4] sm:$0xf] %vm378_vm0, %v1311_v18  ;;  %v2287_v51 = vld [vmem:[#allocation2 + $0x18] sm:$0xe]  ;;  %v2288_v55 = vld [vmem:[#allocation2 + $0x1c] sm:$0x1]  ;;  %v1323_v31 = vsel %vm5174_vm12, %v4019_v5, %v1322_v48 }
 0x19e   :  { %1353 = vst.msk [vmem:[#allocation3 + $0x108] sm:$0xf] %vm378_vm0, %v1315_v63  ;;  %1354 = vst.msk [vmem:[#allocation3 + $0x11c] sm:$0xf] %vm378_vm0, %v1319_v45  ;;  %v1527_v58 = vshrl.u32 %v1458_v59, 16  ;;  %v1530_v4 = vshll.u32 %v1458_v59, 16  ;;  %v2206_v45 = vsel %vm4876_vm8, %v5674_v14, %v5657_v6  ;;  %v1399_v14 = vpop.permute.xlu1 %1398 }
 0x19f   :  { %v1460_v11 = vld [vmem:[#allocation2 + $0x28] sm:$0xf]  ;;  %v5744_v9 = vrot.slane %v2214_v2, 4  ;;  %1355 = vst.msk [vmem:[#allocation3 + $0x130] sm:$0xf] %vm378_vm0, %v1323_v31  ;;  %v1515_v13 = vrot.slane %v1513_v36, 4 }
 0x1a0   :  { %v1518_v42 = vrot.slane %v1516_v12, 5  ;;  %v1536_v54 = vshll.u32 %v1459_v26, 16  ;;  %v5747_v25 = vld [vmem:[#allocation2 + $0x2c] sm:$0x1]  ;;  %v5749_v62 = vld [vmem:[#allocation2 + $0x30] sm:$0xf]  ;;  %1896 = vrot.lane.b32.xlu0 %v5624_v38, %s4620_s24  ;;  %v1867_v38 = vsel %vm5174_vm12, %v4035_v35, %v1866_v3 }
 0x1a1   :  { %v1939_v46 = vld [vmem:[#allocation2 + $0x40] sm:$0xf]  ;;  %v4476_v28 = vld [vmem:[#allocation3 + $0x4] ss:$20 sps:$4 sm:$0xff]   ;;  %v4036_v22 = vrot.slane %v2285_v43, 9  ;;  %v6353_v40 = vrot.slane %v5220_v53, 9  ;;  %1898 = vrot.lane.b32.xlu1 %v1867_v38, %s4620_s24  ;;  %v2220_v6 = vsel %vm4876_vm8, %v5744_v9, %v5725_v50 }
 0x1a2   :  { %v4474_v15 = vld [vmem:[#allocation3] ss:$20 sps:$4 sm:$0xff]   ;;  %1955 = vst.msk [vmem:[#allocation3 + $0x84] sm:$0xf] %vm378_vm0, %v1939_v46  ;;  %v1519_v57 = vor.u32 %v1518_v42, %v1515_v13  ;;  %v1524_v47 = vrot.slane %v1522_v0, 5  ;;  %v1529_v23 = vrot.slane %v1527_v58, 4  ;;  %3038 = vmatprep.mubr.bf16.mxu1 %v4476_v28 }
 0x1a3   :  { %v2364_v30 = vsel %vm5174_vm12, %v6353_v40, %v2363_v24  ;;  %v4486_v19 = vld [vmem:[%s6332_s4 + $0x110] sm:$0xff]   ;;  %v1532_v16 = vrot.slane %v1530_v4, 5  ;;  %v1940_v32 = vld [vmem:[#allocation2 + $0x48] sm:$0xf]  ;;  %v1538_v53 = vrot.slane %v1536_v54, 5  ;;  %v2351_v21 = vrot.slane %v2286_v44, 5  ;;  %3039 = vmatmul.mubr.bf16.vlgmr.msra.gmra.mxu1 %v4474_v15  ;;  %v1133_v40 = vpop.permute.xlu0 %1132 }
 0x1a4   :  { %2432 = vst.msk [vmem:[#allocation3 + $0x4c] sm:$0xf] %vm378_vm0, %v2364_v30  ;;  %v4037_v7 = vrot.slane %v2287_v51, 9  ;;  %v2355_v24 = vrot.slane %v2288_v55, 5  ;;  %1956 = vst.msk [vmem:[#allocation3 + $0x98] sm:$0xf] %vm378_vm0, %v1940_v32  ;;  %2249 = vrot.lane.b32.xlu0 %v2206_v45, %s4620_s24 }
 0x1a5   :  { %v1520_v61 = vrot.slane %v1519_v57, 4  ;;  %v1533_v27 = vor.u32 %v1532_v16, %v1529_v23  ;;  %v1541_v10 = vshrl.u32 %v1460_v11, 16  ;;  %v1544_v2 = vshll.u32 %v1460_v11, 16  ;;  %v5773_v60 = vld [vmem:[#allocation2 + $0x34] sm:$0x1]  ;;  %v4564_v33 = vld [vmem:[%s6332_s4 + $0x118] sm:$0xff]   ;;  %2251 = vrot.lane.b32.xlu1 %v2220_v6, %s4620_s24 }
 0x1a6   :  { %4414 = vmatpush3.bf16.msra.mxu1 %v4564_v33  ;;  %v2352_v59 = vsel %vm5174_vm12, %v4036_v22, %v2351_v21  ;;  %v2356_v26 = vsel %vm5174_vm12, %v4037_v7, %v2355_v24  ;;  %v1550_v20 = vshll.u32 %v5747_v25, 16  ;;  %v1555_v17 = vshrl.u32 %v5749_v62, 16  ;;  %v2293_v39 = vld [vmem:[#allocation2 + $0x30] sm:$0xe]  ;;  %v2294_v29 = vld [vmem:[#allocation2 + $0x34] sm:$0x1] }
 0x1a7   :  { %1180 = vst.msk [vmem:[#allocation3 + $0x3c] sm:$0xf] %vm1176_vm13, %v1135_v8  ;;  %4415 = vmatprep.subr.bf16.mxu1 %v4486_v19  ;;  %v4495_v52 = vld [vmem:[%s6332_s4 + $0x108] sm:$0xff]   ;;  %v1525_v18 = vsel %vm4876_vm8, %v1520_v61, %v1524_v47  ;;  %v1534_v5 = vrot.slane %v1533_v27, 4  ;;  %v1543_v48 = vrot.slane %v1541_v10, 4  ;;  %v1546_v43 = vrot.slane %v1544_v2, 5 }
 0x1a8   :  { %2429 = vst.msk [vmem:[#allocation3 + $0x10] sm:$0xf] %vm378_vm0, %v2352_v59  ;;  %2430 = vst.msk [vmem:[#allocation3 + $0x24] sm:$0xf] %vm378_vm0, %v2356_v26  ;;  %v2295_v63 = vld [vmem:[#allocation2 + $0x38] sm:$0xe] }
 0x1a9   :  { %1726 = vst.msk [vmem:[#allocation3 + $0x30] sm:$0xf] %vm378_vm0, %v1525_v18  ;;  %v1557_v36 = vrot.slane %v1555_v17, 4  ;;  %v1558_v12 = vshll.u32 %v5749_v62, 16  ;;  %v2296_v44 = vld [vmem:[#allocation2 + $0x3c] sm:$0x1]  ;;  %v1539_v34 = vsel %vm4876_vm8, %v1534_v5, %v1538_v53  ;;  %v1547_v49 = vor.u32 %v1546_v43, %v1543_v48 }
 0x1aa   :  { %v1464_v51 = vld [vmem:[#allocation2 + $0x38] sm:$0xf]  ;;  %v4040_v55 = vrot.slane %v2293_v39, 9  ;;  %v2367_v35 = vrot.slane %v2294_v29, 5  ;;  %v1465_v3 = vld [vmem:[#allocation2 + $0x3c] sm:$0x1]  ;;  %4416 = vmatpush3.bf16.msra.mxu1 %v4486_v19 }
 0x1ab   :  { %v1466_v31 = vld [vmem:[#allocation2 + $0x40] sm:$0xf]  ;;  %1727 = vst.msk [vmem:[#allocation3 + $0x44] sm:$0xf] %vm378_vm0, %v1539_v34  ;;  %v1552_v0 = vrot.slane %v1550_v20, 5  ;;  %v1560_v58 = vrot.slane %v1558_v12, 5  ;;  %4417 = vmatprep.subr.bf16.mxu1 %v4495_v52  ;;  %v1397_v20 = vpop.permute.xlu0 %1396 }
 0x1ac   :  { %v1564_v4 = vshll.u32 %v5773_v60, 16  ;;  %1441 = vst.msk [vmem:[#allocation3 + $0x68] sm:$0xf] %vm1176_vm13, %v1399_v14  ;;  %v4504_v11 = vld [vmem:[%s6332_s4 + $0x100] sm:$0xff]   ;;  %v1548_v13 = vrot.slane %v1547_v49, 4  ;;  %v2368_v50 = vsel %vm5174_vm12, %v4040_v55, %v2367_v35  ;;  %v4041_v9 = vrot.slane %v2295_v63, 9  ;;  %v1139_v35 = vpop.permute.xlu1 %1138 }
 0x1ad   :  { %v2371_v42 = vrot.slane %v2296_v44, 5  ;;  %v1467_v54 = vld [vmem:[#allocation2 + $0x44] sm:$0x1]  ;;  %v2297_v25 = vld [vmem:[#allocation2 + $0x40] sm:$0xe]  ;;  %v1561_v62 = vor.u32 %v1560_v58, %v1557_v36  ;;  %v1569_v46 = vshrl.u32 %v1464_v51, 16 }
 0x1ae   :  { %2433 = vst.msk [vmem:[#allocation3 + $0x60] sm:$0xf] %vm378_vm0, %v2368_v50  ;;  %v1572_v1 = vshll.u32 %v1464_v51, 16  ;;  %v1578_v56 = vshll.u32 %v1465_v3, 16  ;;  %v2298_v15 = vld [vmem:[#allocation2 + $0x44] sm:$0x1]  ;;  %v1553_v30 = vsel %vm4876_vm8, %v1548_v13, %v1552_v0  ;;  %4418 = vmatpush3.bf16.msra.mxu1 %v4495_v52 }
 0x1af   :  { %v2299_v28 = vld [vmem:[#allocation2 + $0x48] sm:$0xe]  ;;  %v2300_v22 = vld [vmem:[#allocation2 + $0x4c] sm:$0x1]  ;;  %v2372_v19 = vsel %vm5174_vm12, %v4041_v9, %v2371_v42  ;;  %v1583_v57 = vshrl.u32 %v1466_v31, 16  ;;  %v1586_v47 = vshll.u32 %v1466_v31, 16  ;;  %4419 = vmatprep.subr.bf16.mxu1 %v4504_v11 }
 0x1b0   :  { %v2301_v23 = vld [vmem:[#allocation2 + $0x60] sm:$0xe]  ;;  %v2302_v16 = vld [vmem:[#allocation2 + $0x64] sm:$0x1]  ;;  %1179 = vst.msk [vmem:[#allocation3 + $0x28] sm:$0xf] %vm1176_vm13, %v1133_v40  ;;  %v1403_v40 = vpop.permute.xlu1 %1402 }
 0x1b1   :  { %1728 = vst.msk [vmem:[#allocation3 + $0x58] sm:$0xf] %vm378_vm0, %v1553_v30  ;;  %v1562_v32 = vrot.slane %v1561_v62, 4  ;;  %v1566_v53 = vrot.slane %v1564_v4, 5  ;;  %2434 = vst.msk [vmem:[#allocation3 + $0x74] sm:$0xf] %vm378_vm0, %v2372_v19 }
 0x1b2   :  { %v2303_v21 = vld [vmem:[#allocation2 + $0x68] sm:$0xe]  ;;  %v1571_v7 = vrot.slane %v1569_v46, 4  ;;  %v1574_v24 = vrot.slane %v1572_v1, 5  ;;  %v1580_v61 = vrot.slane %v1578_v56, 5  ;;  %v1585_v27 = vrot.slane %v1583_v57, 4  ;;  %4420 = vmatpush3.bf16.msra.mxu1 %v4504_v11 }
 0x1b3   :  { %v2304_v10 = vld [vmem:[#allocation2 + $0x6c] sm:$0x1]  ;;  %v1468_v2 = vld [vmem:[#allocation2 + $0x58] sm:$0xf]  ;;  %v1567_v60 = vsel %vm4876_vm8, %v1562_v32, %v1566_v53  ;;  %v1588_v8 = vrot.slane %v1586_v47, 5  ;;  %v1592_v33 = vshll.u32 %v1467_v54, 16 }
 0x1b4   :  { %v4042_v59 = vrot.slane %v2297_v25, 9  ;;  %v1941_v26 = vld [vmem:[#allocation2 + $0x60] sm:$0xf]  ;;  %1729 = vst.msk [vmem:[#allocation3 + $0x6c] sm:$0xf] %vm378_vm0, %v1567_v60  ;;  %v1575_v17 = vor.u32 %v1574_v24, %v1571_v7  ;;  %v2375_v39 = vrot.slane %v2298_v15, 5 }
 0x1b5   :  { %v4043_v29 = vrot.slane %v2299_v28, 9  ;;  %v2379_v52 = vrot.slane %v2300_v22, 5  ;;  %1957 = vst.msk [vmem:[#allocation3 + $0xac] sm:$0xf] %vm378_vm0, %v1941_v26  ;;  %v1942_v18 = vld [vmem:[#allocation2 + $0x68] sm:$0xf]  ;;  %v1589_v5 = vor.u32 %v1588_v8, %v1585_v27  ;;  %v1137_v22 = vpop.permute.xlu0 %1136 }
 0x1b6   :  { %1440 = vst.msk [vmem:[#allocation3 + $0x54] sm:$0xf] %vm1176_vm13, %v1397_v20  ;;  %v1594_v48 = vrot.slane %v1592_v33, 5  ;;  %v4044_v43 = vrot.slane %v2301_v23, 9  ;;  %v2383_v63 = vrot.slane %v2302_v16, 5  ;;  %v1576_v36 = vrot.slane %v1575_v17, 4  ;;  %v1871_v33 = vpop.permute.xlu1 %1870 }
 0x1b7   :  { %v1469_v38 = vld [vmem:[#allocation2 + $0x5c] sm:$0x1]  ;;  %v1470_v45 = vld [vmem:[#allocation2 + $0x60] sm:$0xf]  ;;  %1958 = vst.msk [vmem:[#allocation3 + $0xc0] sm:$0xf] %vm378_vm0, %v1942_v18  ;;  %v2376_v12 = vsel %vm5174_vm12, %v4042_v59, %v2375_v39  ;;  %v2380_v44 = vsel %vm5174_vm12, %v4043_v29, %v2379_v52 }
 0x1b8   :  { %v4045_v51 = vrot.slane %v2303_v21, 9  ;;  %v1471_v34 = vld [vmem:[#allocation2 + $0x64] sm:$0x1]  ;;  %v2305_v49 = vld [vmem:[#allocation2 + $0x70] sm:$0xe]  ;;  %v2454_v3 = vld [vmem:[#allocation3 + $0x3c] sm:$0xff]  ;;  %v2384_v6 = vsel %vm5174_vm12, %v4044_v43, %v2383_v63  ;;  %v1581_v13 = vsel %vm4876_vm8, %v1576_v36, %v1580_v61 }
 0x1b9   :  { %v2306_v55 = vld [vmem:[#allocation2 + $0x74] sm:$0x1]  ;;  %v1590_v31 = vrot.slane %v1589_v5, 4  ;;  %2435 = vst.msk [vmem:[#allocation3 + $0x88] sm:$0xf] %vm378_vm0, %v2376_v12  ;;  %v2387_v14 = vrot.slane %v2304_v10, 5  ;;  %v1401_v8 = vpop.permute.xlu0 %1400 }
 0x1ba   :  { %2436 = vst.msk [vmem:[#allocation3 + $0x9c] sm:$0xf] %vm378_vm0, %v2380_v44  ;;  %v1597_v0 = vshrl.u32 %v1468_v2, 16  ;;  %v2307_v58 = vld [vmem:[#allocation2 + $0x78] sm:$0xe]  ;;  %v2451_v4 = vld [vmem:[#allocation3 + $0x28] sm:$0xff] }
 0x1bb   :  { %1182 = vst.msk [vmem:[#allocation3 + $0x64] sm:$0xf] %vm1176_vm13, %v1139_v35  ;;  %v4480_v11 = vld [vmem:[#allocation3 + $0x2c] ss:$20 sps:$4 sm:$0xff]   ;;  %v1600_v50 = vshll.u32 %v1468_v2, 16  ;;  %v4057_v9 = vcombine.low %v2451_v4, %v2454_v3  ;;  %v1595_v42 = vsel %vm4876_vm8, %v1590_v31, %v1594_v48  ;;  %v2388_v54 = vsel %vm5174_vm12, %v4045_v51, %v2387_v14 }
 0x1bc   :  { %2437 = vst.msk [vmem:[#allocation3 + $0xb0] sm:$0xf] %vm378_vm0, %v2384_v6  ;;  %1730 = vst.msk [vmem:[#allocation3 + $0x80] sm:$0xf] %vm378_vm0, %v1581_v13  ;;  %v1599_v25 = vrot.slane %v1597_v0, 4  ;;  %3046 = vmatprep.mubr.bf16.mxu1 %v4480_v11  ;;  %v1606_v1 = vshll.u32 %v1469_v38, 16  ;;  %v1143_v13 = vpop.permute.xlu1 %1142 }
 0x1bd   :  { %v2308_v62 = vld [vmem:[#allocation2 + $0x7c] sm:$0x1]  ;;  %1731 = vst.msk [vmem:[#allocation3 + $0x94] sm:$0xf] %vm378_vm0, %v1595_v42  ;;  %2438 = vst.msk [vmem:[#allocation3 + $0xc4] sm:$0xf] %vm378_vm0, %v2388_v54  ;;  %3047 = vmatmul.mubr.bf16.gmra.mxu1 %v4057_v9  ;;  %v1141_v31 = vpop.permute.xlu0 %1140 }
 0x1be   :  { %v1602_v46 = vrot.slane %v1600_v50, 5  ;;  %v1611_v56 = vshrl.u32 %v1470_v45, 16  ;;  %v1614_v15 = vshll.u32 %v1470_v45, 16  ;;  %v2309_v28 = vld [vmem:[#allocation2 + $0x80] sm:$0xe]  ;;  %v1620_v30 = vshll.u32 %v1471_v34, 16 }
 0x1bf   :  { %v4046_v19 = vrot.slane %v2305_v49, 9  ;;  %v2391_v57 = vrot.slane %v2306_v55, 5  ;;  %v4047_v47 = vrot.slane %v2307_v58, 9  ;;  %1181 = vst.msk [vmem:[#allocation3 + $0x50] sm:$0xf] %vm1176_vm13, %v1137_v22  ;;  %v2395_v24 = vrot.slane %v2308_v62, 5 }
 0x1c0   :  { %1443 = vst.msk [vmem:[#allocation3 + $0x90] sm:$0xf] %vm1176_vm13, %v1403_v40  ;;  %v1603_v23 = vor.u32 %v1602_v46, %v1599_v25  ;;  %v1613_v16 = vrot.slane %v1611_v56, 4  ;;  %v1616_v32 = vrot.slane %v1614_v15, 5  ;;  %v2310_v53 = vld [vmem:[#allocation2 + $0x84] sm:$0x1] }
 0x1c1   :  { %v2311_v21 = vld [vmem:[#allocation2 + $0x88] sm:$0xe]  ;;  %v2392_v7 = vsel %vm5174_vm12, %v4046_v19, %v2391_v57  ;;  %v2312_v61 = vld [vmem:[#allocation2 + $0x8c] sm:$0x1]  ;;  %v4048_v27 = vrot.slane %v2309_v28, 9  ;;  %v1608_v10 = vrot.slane %v1606_v1, 5  ;;  %v2396_v26 = vsel %vm5174_vm12, %v4047_v47, %v2395_v24  ;;  %v1869_v1 = vpop.permute.xlu0 %1868  ;;  %v1407_v47 = vpop.permute.xlu1 %1406 }
 0x1c2   :  { %v1617_v2 = vor.u32 %v1616_v32, %v1613_v16  ;;  %v1622_v60 = vrot.slane %v1620_v30, 5  ;;  %2439 = vst.msk [vmem:[#allocation3 + $0xd8] sm:$0xf] %vm378_vm0, %v2392_v7  ;;  %v1604_v59 = vrot.slane %v1603_v23, 4  ;;  %v2399_v20 = vrot.slane %v2310_v53, 5  ;;  %v2460_v38 = vld [vmem:[#allocation3 + $0x64] sm:$0xff] }
 0x1c3   :  { %v4049_v17 = vrot.slane %v2311_v21, 9  ;;  %1442 = vst.msk [vmem:[#allocation3 + $0x7c] sm:$0xf] %vm1176_vm13, %v1401_v8  ;;  %1917 = vst.msk [vmem:[#allocation3 + $0x1c] sm:$0xf] %vm1176_vm13, %v1871_v33  ;;  %v2403_v29 = vrot.slane %v2312_v61, 5 }
 0x1c4   :  { %v1618_v39 = vrot.slane %v1617_v2, 4  ;;  %2440 = vst.msk [vmem:[#allocation3 + $0xec] sm:$0xf] %vm378_vm0, %v2396_v26  ;;  %v1472_v52 = vld [vmem:[#allocation2 + $0x68] sm:$0xf]  ;;  %v1609_v5 = vsel %vm4876_vm8, %v1604_v59, %v1608_v10  ;;  %v2400_v48 = vsel %vm5174_vm12, %v4048_v27, %v2399_v20 }
 0x1c5   :  { %v1473_v18 = vld [vmem:[#allocation2 + $0x6c] sm:$0x1]  ;;  %v1625_v43 = vshrl.u32 %v1472_v52, 16  ;;  %v1628_v63 = vshll.u32 %v1472_v52, 16  ;;  %1732 = vst.msk [vmem:[#allocation3 + $0xa8] sm:$0xf] %vm378_vm0, %v1609_v5  ;;  %v2404_v36 = vsel %vm5174_vm12, %v4049_v17, %v2403_v29  ;;  %v1405_v27 = vpop.permute.xlu0 %1404  ;;  %v1147_v17 = vpop.permute.xlu1 %1146 }
 0x1c6   :  { %v1623_v45 = vsel %vm4876_vm8, %v1618_v39, %v1622_v60  ;;  %2441 = vst.msk [vmem:[#allocation3 + $0x100] sm:$0xf] %vm378_vm0, %v2400_v48  ;;  %v1634_v12 = vshll.u32 %v1473_v18, 16  ;;  %v1474_v44 = vld [vmem:[#allocation2 + $0x70] sm:$0xf] }
 0x1c7   :  { %v1475_v51 = vld [vmem:[#allocation2 + $0x74] sm:$0x1]  ;;  %1733 = vst.msk [vmem:[#allocation3 + $0xbc] sm:$0xf] %vm378_vm0, %v1623_v45  ;;  %2442 = vst.msk [vmem:[#allocation3 + $0x114] sm:$0xf] %vm378_vm0, %v2404_v36 }
 0x1c8   :  { %v2457_v34 = vld [vmem:[#allocation3 + $0x50] sm:$0xff]  ;;  %v1627_v55 = vrot.slane %v1625_v43, 4  ;;  %v1630_v35 = vrot.slane %v1628_v63, 5  ;;  %v1639_v3 = vshrl.u32 %v1474_v44, 16  ;;  %v1642_v14 = vshll.u32 %v1474_v44, 16 }
 0x1c9   :  { %v4484_v49 = vld [vmem:[#allocation3 + $0x54] ss:$20 sps:$4 sm:$0xff]   ;;  %v4062_v6 = vcombine.low %v2457_v34, %v2460_v38  ;;  %v1943_v0 = vld [vmem:[#allocation2 + $0x70] sm:$0xf]  ;;  %1183 = vst.msk [vmem:[#allocation3 + $0x78] sm:$0xf] %vm1176_vm13, %v1141_v31  ;;  %v1409_v45 = vpop.permute.xlu0 %1408  ;;  %v1411_v31 = vpop.permute.xlu1 %1410 }
 0x1ca   :  { %3054 = vmatprep.mubr.bf16.mxu1 %v4484_v49  ;;  %v1631_v58 = vor.u32 %v1630_v35, %v1627_v55  ;;  %v1641_v4 = vrot.slane %v1639_v3, 4  ;;  %1959 = vst.msk [vmem:[#allocation3 + $0xd4] sm:$0xf] %vm378_vm0, %v1943_v0  ;;  %v1944_v11 = vld [vmem:[#allocation2 + $0x78] sm:$0xf]  ;;  %v1644_v50 = vrot.slane %v1642_v14, 5 }
 0x1cb   :  { %3055 = vmatmul.mubr.bf16.gmra.mxu1 %v4062_v6  ;;  %v1648_v9 = vshll.u32 %v1475_v51, 16  ;;  %1960 = vst.msk [vmem:[#allocation3 + $0xe8] sm:$0xf] %vm378_vm0, %v1944_v11  ;;  %v2313_v42 = vld [vmem:[#allocation2 + $0x90] sm:$0xe]  ;;  %v1636_v62 = vrot.slane %v1634_v12, 5 }
 0x1cc   :  { %v2314_v54 = vld [vmem:[#allocation2 + $0x94] sm:$0x1]  ;;  %1184 = vst.msk [vmem:[#allocation3 + $0x8c] sm:$0xf] %vm1176_vm13, %v1143_v13  ;;  %v1632_v25 = vrot.slane %v1631_v58, 4  ;;  %v4050_v46 = vrot.slane %v2313_v42, 9  ;;  %v1645_v56 = vor.u32 %v1644_v50, %v1641_v4 }
 0x1cd   :  { %v2315_v15 = vld [vmem:[#allocation2 + $0x98] sm:$0xe]  ;;  %v2316_v28 = vld [vmem:[#allocation2 + $0x9c] sm:$0x1]  ;;  %v2407_v22 = vrot.slane %v2314_v54, 5  ;;  %v1650_v16 = vrot.slane %v1648_v9, 5  ;;  %v1149_v50 = vpop.permute.xlu0 %1148 }
 0x1ce   :  { %1916 = vst.msk [vmem:[#allocation3 + $0x8] sm:$0xf] %vm1176_vm13, %v1869_v1  ;;  %v1637_v40 = vsel %vm4876_vm8, %v1632_v25, %v1636_v62  ;;  %v4051_v30 = vrot.slane %v2315_v15, 9  ;;  %v2411_v19 = vrot.slane %v2316_v28, 5  ;;  %v1476_v57 = vld [vmem:[#allocation2 + $0x78] sm:$0xf]  ;;  %v1151_v15 = vpop.permute.xlu1 %1150 }
 0x1cf   :  { %1734 = vst.msk [vmem:[#allocation3 + $0xd0] sm:$0xf] %vm378_vm0, %v1637_v40  ;;  %v1646_v23 = vrot.slane %v1645_v56, 4  ;;  %v2408_v32 = vsel %vm5174_vm12, %v4050_v46, %v2407_v22  ;;  %v1653_v53 = vshrl.u32 %v1476_v57, 16  ;;  %v1477_v7 = vld [vmem:[#allocation2 + $0x7c] sm:$0x1] }
 0x1d0   :  { %1445 = vst.msk [vmem:[#allocation3 + $0xb8] sm:$0xf] %vm1176_vm13, %v1407_v47  ;;  %v2412_v21 = vsel %vm5174_vm12, %v4051_v30, %v2411_v19  ;;  %v1656_v24 = vshll.u32 %v1476_v57, 16  ;;  %v1478_v61 = vld [vmem:[#allocation2 + $0x80] sm:$0xf]  ;;  %v2463_v10 = vld [vmem:[#allocation3 + $0x78] sm:$0xff] }
 0x1d1   :  { %2443 = vst.msk [vmem:[#allocation3 + $0x128] sm:$0xf] %vm378_vm0, %v2408_v32  ;;  %v1651_v2 = vsel %vm4876_vm8, %v1646_v23, %v1650_v16  ;;  %2444 = vst.msk [vmem:[#allocation3 + $0x13c] sm:$0xf] %vm378_vm0, %v2412_v21  ;;  %v1655_v60 = vrot.slane %v1653_v53, 4  ;;  %v1667_v33 = vshrl.u32 %v1478_v61, 16  ;;  %v1413_v47 = vpop.permute.xlu0 %1412 }
 0x1d2   :  { %v1479_v8 = vld [vmem:[#allocation2 + $0x84] sm:$0x1]  ;;  %1444 = vst.msk [vmem:[#allocation3 + $0xa4] sm:$0xf] %vm1176_vm13, %v1405_v27  ;;  %v1658_v41 = vrot.slane %v1656_v24, 5  ;;  %v1662_v59 = vshll.u32 %v1477_v7, 16  ;;  %v1415_v53 = vpop.permute.xlu1 %1414 }
 0x1d3   :  { %1735 = vst.msk [vmem:[#allocation3 + $0xe4] sm:$0xf] %vm378_vm0, %v1651_v2  ;;  %v1670_v26 = vshll.u32 %v1478_v61, 16  ;;  %v1945_v20 = vld [vmem:[#allocation2 + $0x80] sm:$0xf]  ;;  %v2466_v39 = vld [vmem:[#allocation3 + $0x8c] sm:$0xff] }
 0x1d4   :  { %v4489_v29 = vld [vmem:[#allocation3 + $0x7c] ss:$20 sps:$4 sm:$0xff]   ;;  %v1669_v52 = vrot.slane %v1667_v33, 4  ;;  %1961 = vst.msk [vmem:[#allocation3 + $0xfc] sm:$0xf] %vm378_vm0, %v1945_v20  ;;  %v4067_v18 = vcombine.low %v2463_v10, %v2466_v39  ;;  %v1659_v5 = vor.u32 %v1658_v41, %v1655_v60  ;;  %v1676_v43 = vshll.u32 %v1479_v8, 16 }
 0x1d5   :  { %1186 = vst.msk [vmem:[#allocation3 + $0xb4] sm:$0xf] %vm1176_vm13, %v1147_v17  ;;  %v1672_v48 = vrot.slane %v1670_v26, 5  ;;  %v1946_v63 = vld [vmem:[#allocation2 + $0x88] sm:$0xf]  ;;  %3062 = vmatprep.mubr.bf16.mxu1 %v4489_v29  ;;  %v1664_v49 = vrot.slane %v1662_v59, 5  ;;  %v1153_v7 = vpop.permute.xlu0 %1152 }
 0x1d6   :  { %v1480_v38 = vld [vmem:[#allocation2 + $0x88] sm:$0xf]  ;;  %1962 = vst.msk [vmem:[#allocation3 + $0x110] sm:$0xf] %vm378_vm0, %v1946_v63  ;;  %v1481_v36 = vld [vmem:[#allocation2 + $0x8c] sm:$0x1]  ;;  %3063 = vmatmul.mubr.bf16.gmra.mxu1 %v4067_v18  ;;  %v1155_v61 = vpop.permute.xlu1 %1154 }
 0x1d7   :  { %v1681_v12 = vshrl.u32 %v1480_v38, 16  ;;  %v1684_v44 = vshll.u32 %v1480_v38, 16  ;;  %v1482_v51 = vld [vmem:[#allocation2 + $0x90] sm:$0xf]  ;;  %1446 = vst.msk [vmem:[#allocation3 + $0xcc] sm:$0xf] %vm1176_vm13, %v1409_v45  ;;  %v1673_v55 = vor.u32 %v1672_v48, %v1669_v52 }
 0x1d8   :  { %v1660_v34 = vrot.slane %v1659_v5, 4  ;;  %v1483_v35 = vld [vmem:[#allocation2 + $0x94] sm:$0x1]  ;;  %v1695_v3 = vshrl.u32 %v1482_v51, 16  ;;  %v1690_v0 = vshll.u32 %v1481_v36, 16  ;;  %v1698_v58 = vshll.u32 %v1482_v51, 16 }
 0x1d9   :  { %v1683_v6 = vrot.slane %v1681_v12, 4  ;;  %v1686_v14 = vrot.slane %v1684_v44, 5  ;;  %1447 = vst.msk [vmem:[#allocation3 + $0xe0] sm:$0xf] %vm1176_vm13, %v1411_v31  ;;  %v1674_v11 = vrot.slane %v1673_v55, 4  ;;  %v1678_v13 = vrot.slane %v1676_v43, 5  ;;  %v1417_v60 = vpop.permute.xlu0 %1416 }
 0x1da   :  { %v1665_v4 = vsel %vm4876_vm8, %v1660_v34, %v1664_v49  ;;  %v2469_v9 = vld [vmem:[#allocation3 + $0xa0] sm:$0xff]  ;;  %v1697_v54 = vrot.slane %v1695_v3, 4  ;;  %v1700_v25 = vrot.slane %v1698_v58, 5  ;;  %v1704_v62 = vshll.u32 %v1483_v35, 16  ;;  %v1947_v46 = vld [vmem:[#allocation2 + $0x90] sm:$0xf]  ;;  %v1419_v37 = vpop.permute.xlu1 %1418 }
 0x1db   :  { %1736 = vst.msk [vmem:[#allocation3 + $0xf8] sm:$0xf] %vm378_vm0, %v1665_v4  ;;  %v1687_v42 = vor.u32 %v1686_v14, %v1683_v6  ;;  %v1679_v1 = vsel %vm4876_vm8, %v1674_v11, %v1678_v13  ;;  %1963 = vst.msk [vmem:[#allocation3 + $0x124] sm:$0xf] %vm378_vm0, %v1947_v46  ;;  %v1948_v56 = vld [vmem:[#allocation2 + $0x98] sm:$0xf] }
 0x1dc   :  { %1187 = vst.msk [vmem:[#allocation3 + $0xc8] sm:$0xf] %vm1176_vm13, %v1149_v50  ;;  %v2472_v28 = vld [vmem:[#allocation3 + $0xb4] sm:$0xff]  ;;  %v1692_v30 = vrot.slane %v1690_v0, 5  ;;  %v1701_v19 = vor.u32 %v1700_v25, %v1697_v54  ;;  %1188 = vst.msk [vmem:[#allocation3 + $0xdc] sm:$0xf] %vm1176_vm13, %v1151_v15 }
 0x1dd   :  { %v4493_v22 = vld [vmem:[#allocation3 + $0xa4] ss:$20 sps:$4 sm:$0xff]   ;;  %1737 = vst.msk [vmem:[#allocation3 + $0x10c] sm:$0xf] %vm378_vm0, %v1679_v1  ;;  %v1688_v40 = vrot.slane %v1687_v42, 4  ;;  %v4072_v57 = vcombine.low %v2469_v9, %v2472_v28  ;;  %v1706_v32 = vrot.slane %v1704_v62, 5  ;;  %v1157_v8 = vpop.permute.xlu0 %1156 }
 0x1de   :  { %1964 = vst.msk [vmem:[#allocation3 + $0x138] sm:$0xf] %vm378_vm0, %v1948_v56  ;;  %3070 = vmatprep.mubr.bf16.mxu1 %v4493_v22  ;;  %v1702_v16 = vrot.slane %v1701_v19, 4  ;;  %v1159_v41 = vpop.permute.xlu1 %1158  ;;  %v4509_v38 = vld [vmem:[#allocation3 + $0x10] ss:$20 sps:$4 sm:$0xff]  }
 0x1df   :  { %v1693_v23 = vsel %vm4876_vm8, %v1688_v40, %v1692_v30  ;;  %1448 = vst.msk [vmem:[#allocation3 + $0xf4] sm:$0xf] %vm1176_vm13, %v1413_v47  ;;  %3071 = vmatmul.mubr.bf16.gmra.mxu1 %v4072_v57  ;;  %1449 = vst.msk [vmem:[#allocation3 + $0x108] sm:$0xf] %vm1176_vm13, %v1415_v53  ;;  %v4510_v36 = vld [vmem:[#allocation3 + $0x8] ss:$20 sps:$4 sm:$0xff]  }
 0x1e0   :  { %1738 = vst.msk [vmem:[#allocation3 + $0x120] sm:$0xf] %vm378_vm0, %v1693_v23  ;;  %v1707_v21 = vsel %vm4876_vm8, %v1702_v16, %v1706_v32  ;;  %v4498_v10 = vld [vmem:[#allocation3 + $0xcc] ss:$20 sps:$4 sm:$0xff]   ;;  %v4517_v4 = vld [vmem:[#allocation3 + $0x88] ss:$20 sps:$4 sm:$0xff]  }
 0x1e1   :  { %1739 = vst.msk [vmem:[#allocation3 + $0x134] sm:$0xf] %vm378_vm0, %v1707_v21  ;;  %3078 = vmatprep.mubr.bf16.mxu1 %v4498_v10  ;;  %v2222_v17 = vpop.permute.xlu0 %2221  ;;  %v4513_v34 = vld [vmem:[#allocation3 + $0x38] ss:$20 sps:$4 sm:$0xff]   ;;  %v4514_v55 = vld [vmem:[#allocation3 + $0x60] ss:$20 sps:$4 sm:$0xff]  }
 0x1e2   :  { %1189 = vst.msk [vmem:[#allocation3 + $0xf0] sm:$0xf] %vm1176_vm13, %v1153_v7  ;;  %1190 = vst.msk [vmem:[#allocation3 + $0x104] sm:$0xf] %vm1176_vm13, %v1155_v61  ;;  %v2224_v39 = vpop.permute.xlu1 %2223  ;;  %v4518_v13 = vld [vmem:[#allocation3 + $0xb0] ss:$20 sps:$4 sm:$0xff]  }
 0x1e3   :  { %v2475_v24 = vld [vmem:[#allocation3 + $0xc8] sm:$0xff]  ;;  %v2478_v27 = vld [vmem:[#allocation3 + $0xdc] sm:$0xff]  ;;  %1450 = vst.msk [vmem:[#allocation3 + $0x11c] sm:$0xf] %vm1176_vm13, %v1417_v60  ;;  %1451 = vst.msk [vmem:[#allocation3 + $0x130] sm:$0xf] %vm1176_vm13, %v1419_v37 }
 0x1e4   :  { %v4077_v2 = vcombine.low %v2475_v24, %v2478_v27  ;;  %1191 = vst.msk [vmem:[#allocation3 + $0x118] sm:$0xf] %vm1176_vm13, %v1157_v8  ;;  %1192 = vst.msk [vmem:[#allocation3 + $0x12c] sm:$0xf] %vm1176_vm13, %v1159_v41  ;;  %v4521_v1 = vld [vmem:[#allocation3 + $0xd8] ss:$20 sps:$4 sm:$0xff]  }
 0x1e5   :  { %2269 = vst.msk [vmem:[#allocation3 + $0xc] sm:$0xf] %vm1176_vm13, %v2222_v17  ;;  %2270 = vst.msk [vmem:[#allocation3 + $0x20] sm:$0xf] %vm1176_vm13, %v2224_v39  ;;  %v1873_v29 = vpop.permute.xlu0 %1872  ;;  %v4522_v15 = vld [vmem:[#allocation3 + $0x100] ss:$20 sps:$4 sm:$0xff]  }
 0x1e6   :  { %v4502_v26 = vld [vmem:[#allocation3 + $0xf4] ss:$20 sps:$4 sm:$0xff]   ;;  %1918 = vst.msk [vmem:[#allocation3 + $0x30] sm:$0xf] %vm1176_vm13, %v1873_v29  ;;  %v1875_v18 = vpop.permute.xlu1 %1874  ;;  %v6354_v24 = vmov 0  }
 0x1e7   :  { %3079 = vmatmul.mubr.bf16.gmra.mxu1 %v4077_v2  ;;  %1919 = vst.msk [vmem:[#allocation3 + $0x44] sm:$0xf] %vm1176_vm13, %v1875_v18  ;;  %v4525_v23 = vld [vmem:[#allocation3 + $0x128] ss:$20 sps:$4 sm:$0xff]  }
 0x1e8   :  { %3086 = vmatprep.mubr.bf16.mxu1 %v4502_v26  ;;  %v4538_v18 = vld [vmem:[%s6335_s7 + $0x34] ss:$8 sps:$4 sm:$0xff]  }
 0x1e9   :  { %v2481_v33 = vld [vmem:[#allocation3 + $0xf0] sm:$0xff]  ;;  %v2484_v59 = vld [vmem:[#allocation3 + $0x104] sm:$0xff]  ;;  %v2226_v63 = vpop.permute.xlu0 %2225  ;;  %3447 = vmatprep.subr.bf16.mxu1 %v4538_v18 }
 0x1ea   :  { %v4082_v20 = vcombine.low %v2481_v33, %v2484_v59  ;;  %v4507_v48 = vld [vmem:[#allocation3 + $0x11c] ss:$20 sps:$4 sm:$0xff]   ;;  %2271 = vst.msk [vmem:[#allocation3 + $0x34] sm:$0xf] %vm1176_vm13, %v2226_v63  ;;  %v2228_v45 = vpop.permute.xlu1 %2227  ;;  %v4541_v63 = vld [vmem:[%s6335_s7 + $0x24] ss:$8 sps:$4 sm:$0xff]  }
 0x1eb   :  { %v2487_v52 = vld [vmem:[#allocation3 + $0x118] sm:$0xff]  ;;  %v2490_v5 = vld [vmem:[#allocation3 + $0x12c] sm:$0xff]  ;;  %2272 = vst.msk [vmem:[#allocation3 + $0x48] sm:$0xf] %vm1176_vm13, %v2228_v45 }
 0x1ec   :  { %v4087_v43 = vcombine.low %v2487_v52, %v2490_v5  ;;  %v4512_v12 = vld [vmem:[#allocation3 + $0xc] ss:$20 sps:$4 sm:$0xff]   ;;  %v4536_v52 = vld [vmem:[%s6335_s7 + $0x30] ss:$8 sps:$4 sm:$0xff]   ;;  %v4544_v45 = vld [vmem:[%s6335_s7 + $0x14] ss:$8 sps:$4 sm:$0xff]  }
 0x1ed   :  { %3135 = vmatprep.mubr.bf16.mxu0 %v4512_v12  ;;  %v1877_v44 = vpop.permute.xlu0 %1876  ;;  %v4547_v12 = vld [vmem:[%s6335_s7 + $0x4] ss:$8 sps:$4 sm:$0xff]  }
 0x1ee   :  { %1920 = vst.msk [vmem:[#allocation3 + $0x58] sm:$0xf] %vm1176_vm13, %v1877_v44  ;;  %3136 = vmatmul.mubr.bf16.vlgmr.msra.gmra.mxu0 %v4510_v36  ;;  %v1879_v51 = vpop.permute.xlu1 %1878  ;;  %v4545_v36 = vld [vmem:[%s6335_s7] ss:$8 sps:$4 sm:$0xff]  }
 0x1ef   :  { %3087 = vmatmul.mubr.bf16.gmra.mxu1 %v4082_v20  ;;  %1921 = vst.msk [vmem:[#allocation3 + $0x6c] sm:$0xf] %vm1176_vm13, %v1879_v51 }
 0x1f0   :  { %3094 = vmatprep.mubr.bf16.mxu1 %v4507_v48 }
 0x1f1   :  { %v2230_v49 = vpop.permute.xlu0 %2229  ;;  %v2452_v35 = vld [vmem:[#allocation3 + $0x30] sm:$0xff] }
 0x1f2   :  { %2273 = vst.msk [vmem:[#allocation3 + $0x5c] sm:$0xf] %vm1176_vm13, %v2230_v49  ;;  %v2232_v3 = vpop.permute.xlu1 %2231  ;;  %v2455_v31 = vld [vmem:[#allocation3 + $0x44] sm:$0xff] }
 0x1f3   :  { %v4515_v6 = vld [vmem:[#allocation3 + $0x34] ss:$20 sps:$4 sm:$0xff]   ;;  %2274 = vst.msk [vmem:[#allocation3 + $0x70] sm:$0xf] %vm1176_vm13, %v2232_v3  ;;  %v4059_v14 = vcombine.low %v2452_v35, %v2455_v31 }
 0x1f4   :  { %3143 = vmatprep.mubr.bf16.mxu0 %v4515_v6 }
 0x1f5   :  { %v1881_v0 = vpop.permute.xlu0 %1880 }
 0x1f6   :  { %1922 = vst.msk [vmem:[#allocation3 + $0x80] sm:$0xf] %vm1176_vm13, %v1881_v0  ;;  %3144 = vmatmul.mubr.bf16.gmra.mxu0 %v4059_v14  ;;  %v1883_v58 = vpop.permute.xlu1 %1882 }
 0x1f7   :  { %3095 = vmatmul.mubr.bf16.gmra.mxu1 %v4087_v43  ;;  %1923 = vst.msk [vmem:[#allocation3 + $0x94] sm:$0xf] %vm1176_vm13, %v1883_v58  ;;  %v4539_v43 = vld [vmem:[%s6335_s7 + $0x20] ss:$8 sps:$4 sm:$0xff]  }
 0x1f8   :  { %4421 = vmatprep.mubr.msk.bf16.mxu1 %vm2981_vm14, %v4509_v38  ;;  %v4542_v38 = vld [vmem:[%s6335_s7 + $0x10] ss:$8 sps:$4 sm:$0xff]  }
 0x1f9   :  { %v2234_v11 = vpop.permute.xlu0 %2233  ;;  %v2458_v50 = vld [vmem:[#allocation3 + $0x58] sm:$0xff] }
 0x1fa   :  { %2275 = vst.msk [vmem:[#allocation3 + $0x84] sm:$0xf] %vm1176_vm13, %v2234_v11  ;;  %v2236_v9 = vpop.permute.xlu1 %2235  ;;  %v2461_v42 = vld [vmem:[#allocation3 + $0x6c] sm:$0xff] }
 0x1fb   :  { %v4519_v54 = vld [vmem:[#allocation3 + $0x5c] ss:$20 sps:$4 sm:$0xff]   ;;  %2276 = vst.msk [vmem:[#allocation3 + $0x98] sm:$0xf] %vm1176_vm13, %v2236_v9  ;;  %v4064_v25 = vcombine.low %v2458_v50, %v2461_v42 }
 0x1fc   :  { %3151 = vmatprep.mubr.bf16.mxu0 %v4519_v54 }
 0x1fd   :  { %v1885_v62 = vpop.permute.xlu0 %1884 }
 0x1fe   :  { %1924 = vst.msk [vmem:[#allocation3 + $0xa8] sm:$0xf] %vm1176_vm13, %v1885_v62  ;;  %3152 = vmatmul.mubr.bf16.gmra.mxu0 %v4064_v25  ;;  %v1887_v46 = vpop.permute.xlu1 %1886 }
 0x1ff   :  { %4422 = vmatmul.mubr.msk.bf16.vlgmr.msra.gmra.mxu1 %vm2981_vm14, %v4513_v34  ;;  %1925 = vst.msk [vmem:[#allocation3 + $0xbc] sm:$0xf] %vm1176_vm13, %v1887_v46 }
 0x200   :  { %4425 = vmatprep.mubr.msk.bf16.mxu1 %vm2981_vm14, %v4514_v55  ;;  %3448 = vmatpush1.bf16.msra.mxu1 %v4536_v52 }
 0x201   :  { %v2238_v56 = vpop.permute.xlu0 %2237  ;;  %v2464_v28 = vld [vmem:[#allocation3 + $0x80] sm:$0xff]  ;;  %3449 = vmatprep.subr.bf16.mxu1 %v4541_v63 }
 0x202   :  { %2277 = vst.msk [vmem:[#allocation3 + $0xac] sm:$0xf] %vm1176_vm13, %v2238_v56  ;;  %v2240_v22 = vpop.permute.xlu1 %2239  ;;  %v2467_v40 = vld [vmem:[#allocation3 + $0x94] sm:$0xff] }
 0x203   :  { %v4523_v30 = vld [vmem:[#allocation3 + $0x84] ss:$20 sps:$4 sm:$0xff]   ;;  %2278 = vst.msk [vmem:[#allocation3 + $0xc0] sm:$0xf] %vm1176_vm13, %v2240_v22  ;;  %v4069_v19 = vcombine.low %v2464_v28, %v2467_v40 }
 0x204   :  { %3159 = vmatprep.mubr.bf16.mxu0 %v4523_v30  ;;  %3450 = vmatpush1.bf16.msra.mxu1 %v4539_v43 }
 0x205   :  { %v1889_v57 = vpop.permute.xlu0 %1888  ;;  %3451 = vmatprep.subr.bf16.mxu1 %v4544_v45 }
 0x206   :  { %1926 = vst.msk [vmem:[#allocation3 + $0xd0] sm:$0xf] %vm1176_vm13, %v1889_v57  ;;  %3160 = vmatmul.mubr.bf16.gmra.mxu0 %v4069_v19  ;;  %v1891_v47 = vpop.permute.xlu1 %1890 }
 0x207   :  { %4426 = vmatmul.mubr.msk.bf16.gmra.mxu1 %vm2981_vm14, %v4517_v4  ;;  %1927 = vst.msk [vmem:[#allocation3 + $0xe4] sm:$0xf] %vm1176_vm13, %v1891_v47 }
 0x208   :  { %4429 = vmatprep.mubr.msk.bf16.mxu1 %vm2981_vm14, %v4518_v13  ;;  %3452 = vmatpush1.bf16.msra.mxu1 %v4542_v38 }
 0x209   :  { %v2242_v16 = vpop.permute.xlu0 %2241  ;;  %v2470_v32 = vld [vmem:[#allocation3 + $0xa8] sm:$0xff]  ;;  %3453 = vmatprep.subr.bf16.mxu1 %v4547_v12 }
 0x20a   :  { %2279 = vst.msk [vmem:[#allocation3 + $0xd4] sm:$0xf] %vm1176_vm13, %v2242_v16  ;;  %v2244_v53 = vpop.permute.xlu1 %2243  ;;  %v2473_v21 = vld [vmem:[#allocation3 + $0xbc] sm:$0xff] }
 0x20b   :  { %v4526_v7 = vld [vmem:[#allocation3 + $0xac] ss:$20 sps:$4 sm:$0xff]   ;;  %2280 = vst.msk [vmem:[#allocation3 + $0xe8] sm:$0xf] %vm1176_vm13, %v2244_v53  ;;  %v4074_v61 = vcombine.low %v2470_v32, %v2473_v21 }
 0x20c   :  { %3167 = vmatprep.mubr.bf16.mxu0 %v4526_v7  ;;  %3454 = vmatpush1.bf16.msra.mxu1 %v4545_v36 }
 0x20d   :  { %v1893_v27 = vpop.permute.xlu0 %1892 }
 0x20e   :  { %1928 = vst.msk [vmem:[#allocation3 + $0xf8] sm:$0xf] %vm1176_vm13, %v1893_v27  ;;  %3168 = vmatmul.mubr.bf16.gmra.mxu0 %v4074_v61  ;;  %v1895_v10 = vpop.permute.xlu1 %1894 }
 0x20f   :  { %4430 = vmatmul.mubr.msk.bf16.gmra.mxu1 %vm2981_vm14, %v4521_v1  ;;  %1929 = vst.msk [vmem:[#allocation3 + $0x10c] sm:$0xf] %vm1176_vm13, %v1895_v10 }
 0x210   :  { %4433 = vmatprep.mubr.msk.bf16.mxu1 %vm2981_vm14, %v4522_v15 }
 0x211   :  { %v2246_v2 = vpop.permute.xlu0 %2245  ;;  %v2476_v60 = vld [vmem:[#allocation3 + $0xd0] sm:$0xff] }
 0x212   :  { %2281 = vst.msk [vmem:[#allocation3 + $0xfc] sm:$0xf] %vm1176_vm13, %v2246_v2  ;;  %v2248_v37 = vpop.permute.xlu1 %2247  ;;  %v2479_v8 = vld [vmem:[#allocation3 + $0xe4] sm:$0xff] }
 0x213   :  { %v4528_v33 = vld [vmem:[#allocation3 + $0xd4] ss:$20 sps:$4 sm:$0xff]   ;;  %2282 = vst.msk [vmem:[#allocation3 + $0x110] sm:$0xf] %vm1176_vm13, %v2248_v37  ;;  %v4079_v41 = vcombine.low %v2476_v60, %v2479_v8 }
 0x214   :  { %3175 = vmatprep.mubr.bf16.mxu0 %v4528_v33 }
 0x215   :  { %v1897_v59 = vpop.permute.xlu0 %1896 }
 0x216   :  { %1930 = vst.msk [vmem:[#allocation3 + $0x120] sm:$0xf] %vm1176_vm13, %v1897_v59  ;;  %3176 = vmatmul.mubr.bf16.gmra.mxu0 %v4079_v41  ;;  %v1899_v26 = vpop.permute.xlu1 %1898  ;;  %v4532_v29 = vld [vmem:[#allocation3 + $0xf8] ss:$20 sps:$4 sm:$0xff]  }
 0x217   :  { %4434 = vmatmul.mubr.msk.bf16.gmra.mxu1 %vm2981_vm14, %v4525_v23  ;;  %1931 = vst.msk [vmem:[#allocation3 + $0x134] sm:$0xf] %vm1176_vm13, %v1899_v26  ;;  %v6028_v26 = vld [vmem:[%s6333_s5] ss:$0 sm:$0xff] }
 0x218   :  { %3471 = vmatprep.mubr.bf16.mxu1 %v6354_v24 }
 0x219   :  { %v2250_v20 = vpop.permute.xlu0 %2249 }
 0x21a   :  { %2283 = vst.msk [vmem:[#allocation3 + $0x124] sm:$0xf] %vm1176_vm13, %v2250_v20  ;;  %v2252_v17 = vpop.permute.xlu1 %2251  ;;  %v4530_v39 = vld [vmem:[#allocation3 + $0xfc] ss:$20 sps:$4 sm:$0xff]  }
 0x21b   :  { %2284 = vst.msk [vmem:[#allocation3 + $0x138] sm:$0xf] %vm1176_vm13, %v2252_v17  ;;  %3183 = vmatprep.mubr.bf16.mxu0 %v4530_v39 }
 0x21e   :  { %3184 = vmatmul.mubr.bf16.gmra.mxu0 %v4532_v29  ;;  %v4535_v48 = vld [vmem:[#allocation3 + $0x120] ss:$20 sps:$4 sm:$0xff]  }
 0x222   :  { %v4533_v5 = vld [vmem:[#allocation3 + $0x124] ss:$20 sps:$4 sm:$0xff]  }
 0x223   :  { %3191 = vmatprep.mubr.bf16.mxu0 %v4533_v5 }
 0x226   :  { %3192 = vmatmul.mubr.bf16.gmra.mxu0 %v4535_v48  ;;  %v6034_v48 = vld [vmem:[%s6334_s6] ss:$0 sm:$0xff] }
 0x263   :  { %v4267_v44 = vpop.f32.mrf.mxu1 }
 0x265   :  { %v4268_v51 = vpop.f32.mrf.mxu1 }
 0x266   :  { %v4269_v34 = vadd.f32 %v4268_v51, %v4267_v44 }
 0x267   :  { %v4270_v49 = vpop.f32.mrf.mxu1 }
 0x269   :  { %v4271_v55 = vpop.f32.mrf.mxu1 }
 0x26a   :  { %v4272_v20 = vadd.f32 %v4271_v55, %v4270_v49 }
 0x27d   :  { %v4273_v35 = vpop.f32.mrf.mxu1 }
 0x27f   :  { %v4274_v3 = vpop.f32.mrf.mxu1 }
 0x280   :  { %v4275_v31 = vadd.f32 %v4274_v3, %v4273_v35 }
 0x281   :  { %v4276_v6 = vpop.f32.mrf.mxu1 }
 0x283   :  { %v4277_v14 = vpop.f32.mrf.mxu1 }
 0x284   :  { %v4278_v55 = vadd.f32 %v4277_v14, %v4276_v6 }
 0x28b   :  { %v4279_v0 = vpop.f32.mrf.mxu1 }
 0x28d   :  { %v4280_v58 = vpop.f32.mrf.mxu1 }
 0x28e   :  { %v5989_v4 = vadd.f32 %v4280_v58, %v4279_v0 }
 0x28f   :  { %v5991_v11 = vpop.f32.mrf.mxu1 }
 0x291   :  { %v5993_v13 = vpop.f32.mrf.mxu1 }
 0x296   :  { %v4285_v50 = vpop.f32.mrf.mxu1 }
 0x298   :  { %v4286_v9 = vpop.f32.mrf.mxu1 }
 0x299   :  { %v5995_v42 = vadd.f32 %v4286_v9, %v4285_v50 }
 0x29a   :  { %v5997_v54 = vpop.f32.mrf.mxu1 }
 0x29c   :  { %v5999_v25 = vpop.f32.mrf.mxu1 }
 0x29f   :  { %v4291_v62 = vpop.f32.mrf.mxu1 }
 0x2a1   :  { %v4292_v46 = vpop.f32.mrf.mxu1 }
 0x2a2   :  { %v6001_v1 = vadd.f32 %v4292_v46, %v4291_v62 }
 0x2a3   :  { %v6003_v56 = vpop.f32.mrf.mxu1 }
 0x2a5   :  { %v6005_v15 = vpop.f32.mrf.mxu1 }
 0x2a7   :  { %v4297_v28 = vpop.f32.mrf.mxu1 }
 0x2a9   :  { %v4298_v22 = vpop.f32.mrf.mxu1 }
 0x2aa   :  { %v6007_v40 = vadd.f32 %v4298_v22, %v4297_v28 }
 0x2ab   :  { %v6009_v30 = vpop.f32.mrf.mxu1 }
 0x2ad   :  { %v6011_v19 = vpop.f32.mrf.mxu1 }
 0x2ae   :  { %v4331_v27 = vpop.f32.mrf.mxu0 }
 0x2af   :  { %v4303_v57 = vpop.f32.mrf.mxu1 }
 0x2b0   :  { %v4332_v2 = vpop.f32.mrf.mxu0 }
 0x2b1   :  { %v4304_v47 = vpop.f32.mrf.mxu1  ;;  %v4333_v60 = vadd.f32 %v4332_v2, %v4331_v27 }
 0x2b2   :  { %v6013_v23 = vadd.f32 %v4304_v47, %v4303_v57  ;;  %v4334_v37 = vpop.f32.mrf.mxu0 }
 0x2b3   :  { %v6015_v16 = vpop.f32.mrf.mxu1  ;;  %v3138_v33 = vadd.f32 %v4333_v60, %v4269_v34  ;;  %v4284_v60 = vadd.f32 %v5993_v13, %v5991_v11 }
 0x2b4   :  { %v4335_v41 = vpop.f32.mrf.mxu0 }
 0x2b5   :  { %v6017_v32 = vpop.f32.mrf.mxu1  ;;  %v4336_v17 = vadd.f32 %v4335_v41, %v4334_v37 }
 0x2b6   :  { %v4337_v29 = vpop.f32.mrf.mxu0 }
 0x2b7   :  { %v4309_v53 = vpop.f32.mrf.mxu1  ;;  %v3141_v5 = vadd.f32 %v4336_v17, %v4272_v20 }
 0x2b8   :  { %v4338_v43 = vpop.f32.mrf.mxu0 }
 0x2b9   :  { %v4310_v21 = vpop.f32.mrf.mxu1  ;;  %v4339_v38 = vadd.f32 %v4338_v43, %v4337_v29 }
 0x2ba   :  { %v6019_v7 = vadd.f32 %v4310_v21, %v4309_v53  ;;  %v4340_v36 = vpop.f32.mrf.mxu0 }
 0x2bb   :  { %v6021_v61 = vpop.f32.mrf.mxu1  ;;  %v3146_v44 = vadd.f32 %v4339_v38, %v4275_v31 }
 0x2bc   :  { %v4341_v49 = vpop.f32.mrf.mxu0 }
 0x2bd   :  { %v6023_v10 = vpop.f32.mrf.mxu1  ;;  %v4342_v0 = vadd.f32 %v4341_v49, %v4340_v36  ;;  %v4290_v36 = vadd.f32 %v5999_v25, %v5997_v54 }
 0x2be   :  { %v4343_v58 = vpop.f32.mrf.mxu0 }
 0x2bf   :  { %v4423_v8 = vpop.f32.mrf.mxu1  ;;  %v3149_v46 = vadd.f32 %v4342_v0, %v4278_v55 }
 0x2c0   :  { %v3243_v35 = vadd.f32 %v4423_v8, %v3146_v44  ;;  %v4344_v22 = vpop.f32.mrf.mxu0 }
 0x2c1   :  { %v3234_v59 = vpop.f32.mrf.mxu1  ;;  %v4345_v31 = vadd.f32 %v4344_v22, %v4343_v58 }
 0x2c2   :  { %v3235_v39 = vadd.f32 %v3234_v59, %v3138_v33  ;;  %v3306_v9 = vmul.f32 %v6028_v26, %v3243_v35  ;;  %v4346_v53 = vpop.f32.mrf.mxu0 }
 0x2c3   :  { %v4424_v52 = vpop.f32.mrf.mxu1  ;;  %v3154_v14 = vadd.f32 %v4345_v31, %v5989_v4 }
 0x2c4   :  { %v3304_v18 = vmul.f32 %v6028_v26, %v3235_v39  ;;  %v3246_v47 = vadd.f32 %v4424_v52, %v3149_v46  ;;  %v3329_v21 = vadd.f32 %v6034_v48, %v3306_v9  ;;  %v4347_v2 = vpop.f32.mrf.mxu0 }
 0x2c5   :  { %v3237_v63 = vpop.f32.mrf.mxu1  ;;  %v4348_v33 = vadd.f32 %v4347_v2, %v4346_v53 }
 0x2c6   :  { %v3238_v45 = vadd.f32 %v3237_v63, %v3141_v5  ;;  %v3327_v12 = vadd.f32 %v6034_v48, %v3304_v18  ;;  %v3307_v6 = vmul.f32 %v6028_v26, %v3246_v47  ;;  %v4349_v41 = vpop.f32.mrf.mxu0  ;;  %v3345_v59 = vmax.f32 %v3329_v21, 0.0 }
 0x2c7   :  { %v4427_v34 = vpop.f32.mrf.mxu1  ;;  %v3157_v39 = vadd.f32 %v4348_v33, %v4284_v60 }
 0x2c8   :  { %v3305_v51 = vmul.f32 %v6028_v26, %v3238_v45  ;;  %v3343_v50 = vmax.f32 %v3327_v12, 0.0  ;;  %v3330_v37 = vadd.f32 %v6034_v48, %v3307_v6  ;;  %v4350_v29 = vpop.f32.mrf.mxu0 }
 0x2c9   :  { %v3250_v28 = vpop.f32.mrf.mxu1  ;;  %v4351_v18 = vadd.f32 %v4350_v29, %v4349_v41 }
 0x2ca   :  { %v3328_v3 = vadd.f32 %v6034_v48, %v3305_v51  ;;  %v3251_v8 = vadd.f32 %v3250_v28, %v3154_v14  ;;  %v3346_v20 = vmax.f32 %v3330_v37, 0.0  ;;  %v4352_v43 = vpop.f32.mrf.mxu0 }
 0x2cb   :  { %v4428_v27 = vpop.f32.mrf.mxu1  ;;  %v3162_v13 = vadd.f32 %v4351_v18, %v5995_v42 }
 0x2cc   :  { %v3344_v62 = vmax.f32 %v3328_v3, 0.0  ;;  %v3308_v17 = vmul.f32 %v6028_v26, %v3251_v8  ;;  %v3360_v5 = vpack.c.bf16 %v3346_v20, %v3345_v59  ;;  %v4353_v45 = vpop.f32.mrf.mxu0 }
 0x2cd   :  { %v3253_v4 = vpop.f32.mrf.mxu1  ;;  %v3259_v44 = vadd.f32 %v4427_v34, %v3162_v13  ;;  %v4354_v51 = vadd.f32 %v4353_v45, %v4352_v43 }
 0x2ce   :  { %v3359_v57 = vpack.c.bf16 %v3344_v62, %v3343_v50  ;;  %v3254_v52 = vadd.f32 %v3253_v4, %v3157_v39  ;;  %v3331_v63 = vadd.f32 %v6034_v48, %v3308_v17  ;;  %v4355_v49 = vpop.f32.mrf.mxu0  ;;  %v4302_v39 = vadd.f32 %v6011_v19, %v6009_v30 }
 0x2cf   :  { %v4431_v38 = vpop.f32.mrf.mxu1  ;;  %v3310_v3 = vmul.f32 %v6028_v26, %v3259_v44  ;;  %v3165_v0 = vadd.f32 %v4354_v51, %v4290_v36 }
 0x2d0   :  { %4146 = vmatmul.mubr.msk.bf16.vlgmr.msra.gmra.mxu1 %vm2981_vm14, %v3359_v57  ;;  %v3309_v11 = vmul.f32 %v6028_v26, %v3254_v52  ;;  %v3347_v55 = vmax.f32 %v3331_v63, 0.0  ;;  %v4356_v58 = vpop.f32.mrf.mxu0  ;;  %v4296_v57 = vadd.f32 %v6005_v15, %v6003_v56 }
 0x2d1   :  { %3481 = vmatprep.mubr.bf16.mxu1 %v6354_v24  ;;  %v3266_v42 = vpop.f32.mrf.mxu1  ;;  %v3262_v50 = vadd.f32 %v4428_v27, %v3165_v0  ;;  %v4357_v9 = vadd.f32 %v4356_v58, %v4355_v49  ;;  %v3333_v28 = vadd.f32 %v6034_v48, %v3310_v3 }
 0x2d2   :  { %v3332_v12 = vadd.f32 %v6034_v48, %v3309_v11  ;;  %v4358_v46 = vpop.f32.mrf.mxu0 }
 0x2d3   :  { %v3311_v54 = vmul.f32 %v6028_v26, %v3262_v50  ;;  %v3170_v25 = vadd.f32 %v4357_v9, %v6001_v1  ;;  %v4432_v34 = vpop.f32.mrf.mxu1  ;;  %v3349_v6 = vmax.f32 %v3333_v28, 0.0 }
 0x2d4   :  { %v3348_v35 = vmax.f32 %v3332_v12, 0.0  ;;  %v4359_v22 = vpop.f32.mrf.mxu0 }
 0x2d5   :  { %v3334_v47 = vadd.f32 %v6034_v48, %v3311_v54  ;;  %v3267_v31 = vadd.f32 %v3266_v42, %v3170_v25  ;;  %v4360_v53 = vadd.f32 %v4359_v22, %v4358_v46  ;;  %v3269_v1 = vpop.f32.mrf.mxu1 }
 0x2d6   :  { %v3361_v62 = vpack.c.bf16 %v3348_v35, %v3347_v55  ;;  %v4361_v21 = vpop.f32.mrf.mxu0  ;;  %v4308_v55 = vadd.f32 %v6017_v32, %v6015_v16 }
 0x2d7   :  { %v3350_v14 = vmax.f32 %v3334_v47, 0.0  ;;  %v3312_v27 = vmul.f32 %v6028_v26, %v3267_v31  ;;  %v3173_v2 = vadd.f32 %v4360_v53, %v4296_v57  ;;  %v4435_v20 = vpop.f32.mrf.mxu1  ;;  %v4314_v47 = vadd.f32 %v6023_v10, %v6021_v61 }
 0x2d8   :  { %4147 = vmatmul.mubr.msk.bf16.gmra.mxu1 %vm2981_vm14, %v3360_v5  ;;  %v4362_v60 = vpop.f32.mrf.mxu0 }
 0x2d9   :  { %3491 = vmatprep.mubr.bf16.mxu1 %v6354_v24  ;;  %v3270_v37 = vadd.f32 %v3269_v1, %v3173_v2  ;;  %v4363_v8 = vadd.f32 %v4362_v60, %v4361_v21  ;;  %v3362_v33 = vpack.c.bf16 %v3350_v14, %v3349_v6  ;;  %v3335_v59 = vadd.f32 %v6034_v48, %v3312_v27 }
 0x2da   :  { %v4364_v41 = vpop.f32.mrf.mxu0 }
 0x2db   :  { %v3313_v56 = vmul.f32 %v6028_v26, %v3270_v37  ;;  %v3178_v15 = vadd.f32 %v4363_v8, %v6007_v40  ;;  %v3351_v5 = vmax.f32 %v3335_v59, 0.0  ;;  %v3282_v40 = vpop.f32.mrf.mxu1  ;;  %v4549_v59 = vld [vmem:[%s6338_s10 + $0x38] sm:$0xff]  }
 0x2dc   :  { %v4365_v17 = vpop.f32.mrf.mxu0 }
 0x2dd   :  { %v3336_v4 = vadd.f32 %v6034_v48, %v3313_v56  ;;  %v3275_v29 = vadd.f32 %v4431_v38, %v3178_v15  ;;  %v4366_v52 = vadd.f32 %v4365_v17, %v4364_v41  ;;  %v4436_v38 = vpop.f32.mrf.mxu1  ;;  %v4548_v41 = vld [vmem:[%s6338_s10 + $0x78] sm:$0xff]   ;;  %v4553_v56 = vld [vmem:[%s6338_s10 + $0x28] sm:$0xff]   ;;  %v4554_v15 = vld [vmem:[%s6338_s10 + $0x60] sm:$0xff]  }
 0x2de   :  { %v4367_v18 = vpop.f32.mrf.mxu0  ;;  %4391 = vmatprep.subr.bf16.mxu0 %v4548_v41  ;;  %v4556_v17 = vld [vmem:[%s6338_s10 + $0x58] sm:$0xff]  }
 0x2df   :  { %v3352_v43 = vmax.f32 %v3336_v4, 0.0  ;;  %v3314_v63 = vmul.f32 %v6028_v26, %v3275_v29  ;;  %v3181_v11 = vadd.f32 %v4366_v52, %v4302_v39  ;;  %4392 = vmatpush3.bf16.msra.mxu0 %v4549_v59  ;;  %v4557_v39 = vld [vmem:[%s6338_s10 + $0x18] sm:$0xff]   ;;  %v4558_v4 = vld [vmem:[%s6338_s10 + $0x50] sm:$0xff]   ;;  %v4560_v52 = vld [vmem:[%s6338_s10 + $0x48] sm:$0xff]  }
 0x2e0   :  { %4148 = vmatmul.mubr.msk.bf16.gmra.mxu1 %vm2981_vm14, %v3361_v62  ;;  %v4368_v13 = vpop.f32.mrf.mxu0  ;;  %v4559_v29 = vld [vmem:[%s6338_s10 + $0x10] sm:$0xff]  }
 0x2e1   :  { %3501 = vmatprep.mubr.bf16.mxu1 %v6354_v24  ;;  %v3278_v45 = vadd.f32 %v4432_v34, %v3181_v11  ;;  %v4369_v36 = vadd.f32 %v4368_v13, %v4367_v18  ;;  %v3363_v12 = vpack.c.bf16 %v3352_v43, %v3351_v5  ;;  %v3337_v51 = vadd.f32 %v6034_v48, %v3314_v63  ;;  %v4561_v18 = vld [vmem:[%s6338_s10 + $0x8] sm:$0xff]   ;;  %v4562_v5 = vld [vmem:[%s6338_s10 + $0x40] sm:$0xff]  }
 0x2e2   :  { %v4370_v44 = vpop.f32.mrf.mxu0  ;;  %v4563_v43 = vld [vmem:[%s6338_s10] sm:$0xff]   ;;  %v3554_v13 = vlaneseq }
 0x2e3   :  { %v3315_v30 = vmul.f32 %v6028_v26, %v3278_v45  ;;  %v3186_v19 = vadd.f32 %v4369_v36, %v6013_v23  ;;  %v3353_v58 = vmax.f32 %v3337_v51, 0.0  ;;  %v3285_v23 = vpop.f32.mrf.mxu1 }
 0x2e4   :  { %v4371_v49 = vpop.f32.mrf.mxu0 }
 0x2e5   :  { %v3338_v35 = vadd.f32 %v6034_v48, %v3315_v30  ;;  %v3283_v3 = vadd.f32 %v3282_v40, %v3186_v19  ;;  %v4372_v0 = vadd.f32 %v4371_v49, %v4370_v44 }
 0x2e6   :  { %v4373_v42 = vpop.f32.mrf.mxu0 }
 0x2e7   :  { %v3354_v50 = vmax.f32 %v3338_v35, 0.0  ;;  %v3316_v9 = vmul.f32 %v6028_v26, %v3283_v3  ;;  %v3189_v62 = vadd.f32 %v4372_v0, %v4308_v55  ;;  %v3596_v0 = vld [vmem:[%s6337_s9] sm:$0x3] }
 0x2e8   :  { %4149 = vmatmul.mubr.msk.bf16.gmra.mxu1 %vm2981_vm14, %v3362_v33  ;;  %v4374_v46 = vpop.f32.mrf.mxu0 }
 0x2e9   :  { %3511 = vmatprep.mubr.bf16.mxu1 %v6354_v24  ;;  %v3286_v28 = vadd.f32 %v3285_v23, %v3189_v62  ;;  %v4375_v54 = vadd.f32 %v4374_v46, %v4373_v42  ;;  %v3364_v25 = vpack.c.bf16 %v3354_v50, %v3353_v58  ;;  %v3339_v22 = vadd.f32 %v6034_v48, %v3316_v9 }
 0x2ea   :  { %v4376_v34 = vpop.f32.mrf.mxu0 }
 0x2eb   :  { %v3317_v16 = vmul.f32 %v6028_v26, %v3286_v28  ;;  %v3194_v32 = vadd.f32 %v4375_v54, %v6019_v7  ;;  %v3355_v6 = vmax.f32 %v3339_v22, 0.0 }
 0x2ec   :  { %v4377_v57 = vpop.f32.mrf.mxu0 }
 0x2ed   :  { %v3340_v31 = vadd.f32 %v6034_v48, %v3317_v16  ;;  %v3291_v53 = vadd.f32 %v4435_v20, %v3194_v32  ;;  %v4378_v21 = vadd.f32 %v4377_v57, %v4376_v34  ;;  %v4555_v20 = vld [vmem:[%s6338_s10 + $0x20] sm:$0xff]  }
 0x2ef   :  { %v3356_v14 = vmax.f32 %v3340_v31, 0.0  ;;  %v3318_v27 = vmul.f32 %v6028_v26, %v3291_v53  ;;  %v3197_v2 = vadd.f32 %v4378_v21, %v4314_v47 }
 0x2f0   :  { %4150 = vmatmul.mubr.msk.bf16.gmra.mxu1 %vm2981_vm14, %v3363_v12  ;;  %v3555_v12 = vshrl.u32 %v3554_v13, 7 }
 0x2f1   :  { %3521 = vmatprep.mubr.bf16.mxu1 %v6354_v24  ;;  %v3294_v1 = vadd.f32 %v4436_v38, %v3197_v2  ;;  %v3365_v60 = vpack.c.bf16 %v3356_v14, %v3355_v6  ;;  %v3341_v7 = vadd.f32 %v6034_v48, %v3318_v27  ;;  %v3552_v38 = vld [vmem:[%s6336_s8] sm:$0x3]  ;;  %v4565_v27 = vld [vmem:[%s6328_s0 + $0x10] sm:$0xff] }
 0x2f2   :  { %v3556_v30 = vsub.s32 0, %v3555_v12  ;;  %v3560_v49 = vsub.s32 1, %v3555_v12  ;;  %v4572_v12 = vld [vmem:[%s6328_s0 + $0x38] sm:$0xff] }
 0x2f3   :  { %v3319_v37 = vmul.f32 %v6028_v26, %v3294_v1  ;;  %v3357_v10 = vmax.f32 %v3341_v7, 0.0  ;;  %v4550_v26 = vld [vmem:[%s6338_s10 + $0x70] sm:$0xff]  }
 0x2f4   :  { %4393 = vmatprep.subr.bf16.mxu0 %v4550_v26  ;;  %v6151_v35 = vrot.slane %v3552_v38, %v3556_v30  ;;  %v6156_v42 = vrot.slane %v3552_v38, %v3560_v49  ;;  %v6160_v62 = vrot.slane %v3596_v0, %v3556_v30  ;;  %v4573_v38 = vld [vmem:[%s6328_s0 + $0x40] sm:$0xff] }
 0x2f5   :  { %v3342_v61 = vadd.f32 %v6034_v48, %v3319_v37  ;;  %v4552_v48 = vld [vmem:[%s6338_s10 + $0x68] sm:$0xff]  }
 0x2f7   :  { %v3358_v8 = vmax.f32 %v3342_v61, 0.0 }
 0x2f8   :  { %4151 = vmatmul.mubr.msk.bf16.gmra.mxu1 %vm2981_vm14, %v3364_v25  ;;  %v6165_v25 = vrot.slane %v3596_v0, %v3560_v49 }
 0x2f9   :  { %3531 = vmatprep.mubr.bf16.mxu1 %v6354_v24  ;;  %v3366_v33 = vpack.c.bf16 %v3358_v8, %v3357_v10  ;;  %v4566_v10 = vld [vmem:[%s6328_s0] sm:$0xff] }
 0x300   :  { %4152 = vmatmul.mubr.msk.bf16.gmra.mxu1 %vm2981_vm14, %v3365_v60 }
 0x301   :  { %3541 = vmatprep.mubr.bf16.mxu1 %v6354_v24  ;;  %v4551_v24 = vld [vmem:[%s6338_s10 + $0x30] sm:$0xff]  }
 0x302   :  { %4394 = vmatpush3.bf16.msra.mxu0 %v4551_v24 }
 0x303   :  { %4395 = vmatprep.subr.bf16.mxu0 %v4552_v48  ;;  %v4568_v48 = vld [vmem:[%s6328_s0 + $0x20] sm:$0xff] }
 0x306   :  { %4396 = vmatpush3.bf16.msra.mxu0 %v4553_v56 }
 0x307   :  { %4397 = vmatprep.subr.bf16.mxu0 %v4554_v15 }
 0x308   :  { %4153 = vmatmul.mubr.msk.bf16.gmra.mxu1 %vm2981_vm14, %v3366_v33  ;;  %v4567_v33 = vld [vmem:[%s6328_s0 + $0x18] sm:$0xff] }
 0x30a   :  { %4398 = vmatpush3.bf16.msra.mxu0 %v4555_v20 }
 0x30b   :  { %4399 = vmatprep.subr.bf16.mxu0 %v4556_v17  ;;  %v4569_v17 = vld [vmem:[%s6328_s0 + $0x8] sm:$0xff] }
 0x30e   :  { %4400 = vmatpush3.bf16.msra.mxu0 %v4557_v39 }
 0x30f   :  { %4401 = vmatprep.subr.bf16.mxu0 %v4558_v4 }
 0x312   :  { %4402 = vmatpush3.bf16.msra.mxu0 %v4559_v29  ;;  %v4570_v29 = vld [vmem:[%s6328_s0 + $0x28] sm:$0xff] }
 0x313   :  { %4403 = vmatprep.subr.bf16.mxu0 %v4560_v52 }
 0x316   :  { %4404 = vmatpush3.bf16.msra.mxu0 %v4561_v18 }
 0x317   :  { %4405 = vmatprep.subr.bf16.mxu0 %v4562_v5 }
 0x31a   :  { %4406 = vmatpush3.bf16.msra.mxu0 %v4563_v43  ;;  %v4571_v43 = vld [vmem:[%s6328_s0 + $0x30] sm:$0xff] }
 0x390   :  { %v3473_v63 = vpop.f32.mrf.mxu1 }
 0x391   :  { %v3564_v9 = vmul.f32 %v6151_v35, %v3473_v63 }
 0x392   :  { %v3475_v11 = vpop.f32.mrf.mxu1 }
 0x393   :  { %v3565_v54 = vmul.f32 %v6156_v42, %v3475_v11  ;;  %v3608_v57 = vadd.f32 %v6160_v62, %v3564_v9  ;;  %v4574_v9 = vld [vmem:[%s6328_s0 + $0x48] sm:$0xff] }
 0x394   :  { %v3477_v40 = vpop.f32.mrf.mxu1 }
 0x395   :  { %v3566_v58 = vmul.f32 %v6151_v35, %v3477_v40  ;;  %v3609_v14 = vadd.f32 %v6165_v25, %v3565_v54  ;;  %v3640_v8 = vadd.f32 %v4566_v10, %v3608_v57  ;;  %v4575_v54 = vld [vmem:[%s6328_s0 + $0x50] sm:$0xff]  ;;  %v4578_v10 = vld [vmem:[%s6328_s0 + $0x68] sm:$0xff] }
 0x396   :  { %v3479_v45 = vpop.f32.mrf.mxu1 }
 0x397   :  { %v3567_v23 = vmul.f32 %v6156_v42, %v3479_v45  ;;  %v3610_v34 = vadd.f32 %v6160_v62, %v3566_v58  ;;  %v3641_v39 = vadd.f32 %v4569_v17, %v3609_v14  ;;  %v3672_v45 = vmax.f32 %v3640_v8, 0.0  ;;  %v4577_v14 = vld [vmem:[%s6328_s0 + $0x60] sm:$0xff]  ;;  %v4580_v17 = vld [vmem:[%s6328_s0 + $0x78] sm:$0xff] }
 0x398   :  { %v3483_v36 = vpop.f32.mrf.mxu1 }
 0x399   :  { %v3568_v28 = vmul.f32 %v6151_v35, %v3483_v36  ;;  %v3611_v47 = vadd.f32 %v6165_v25, %v3567_v23  ;;  %v3642_v2 = vadd.f32 %v4565_v27, %v3610_v34  ;;  %v3673_v0 = vmax.f32 %v3641_v39, 0.0 }
 0x39a   :  { %v3485_v44 = vpop.f32.mrf.mxu1 }
 0x39b   :  { %v3569_v22 = vmul.f32 %v6156_v42, %v3485_v44  ;;  %v3612_v21 = vadd.f32 %v6160_v62, %v3568_v28  ;;  %v3643_v41 = vadd.f32 %v4567_v33, %v3611_v47  ;;  %v3674_v4 = vmax.f32 %v3642_v2, 0.0  ;;  %v4576_v47 = vld [vmem:[%s6328_s0 + $0x58] sm:$0xff]  ;;  %v4579_v33 = vld [vmem:[%s6328_s0 + $0x70] sm:$0xff] }
 0x39c   :  { %v3487_v51 = vpop.f32.mrf.mxu1 }
 0x39d   :  { %v3570_v32 = vmul.f32 %v6151_v35, %v3487_v51  ;;  %v3613_v1 = vadd.f32 %v6165_v25, %v3569_v22  ;;  %v3644_v56 = vadd.f32 %v4568_v48, %v3612_v21  ;;  %v3675_v36 = vmax.f32 %v3643_v41, 0.0 }
 0x39e   :  { %v3489_v19 = vpop.f32.mrf.mxu1  ;;  %v3704_v58 = vadd.f32 %v3674_v4, %v3672_v45 }
 0x39f   :  { %v3571_v31 = vmul.f32 %v6156_v42, %v3489_v19  ;;  %v3614_v37 = vadd.f32 %v6160_v62, %v3570_v32  ;;  %v3645_v52 = vadd.f32 %v4570_v29, %v3613_v1  ;;  %v3676_v19 = vmax.f32 %v3644_v56, 0.0 }
 0x3a0   :  { %v3493_v55 = vpop.f32.mrf.mxu1  ;;  %v3717_v32 = vadd.f32 %v3675_v36, %v3673_v0 }
 0x3a1   :  { %v3572_v6 = vmul.f32 %v6151_v35, %v3493_v55  ;;  %v3615_v59 = vadd.f32 %v6165_v25, %v3571_v31  ;;  %v3646_v63 = vadd.f32 %v4571_v43, %v3614_v37  ;;  %v3705_v21 = vadd.f32 %v3704_v58, %v3676_v19 }
 0x3a2   :  { %v3495_v3 = vpop.f32.mrf.mxu1 }
 0x3a3   :  { %v3573_v60 = vmul.f32 %v6156_v42, %v3495_v3  ;;  %v3616_v15 = vadd.f32 %v6160_v62, %v3572_v6  ;;  %v3647_v44 = vadd.f32 %v4572_v12, %v3615_v59  ;;  %v3678_v28 = vmax.f32 %v3646_v63, 0.0 }
 0x3a4   :  { %v3497_v50 = vpop.f32.mrf.mxu1 }
 0x3a5   :  { %v3574_v61 = vmul.f32 %v6151_v35, %v3497_v50  ;;  %v3617_v18 = vadd.f32 %v6165_v25, %v3573_v60  ;;  %v3648_v49 = vadd.f32 %v4573_v38, %v3616_v15  ;;  %v3677_v50 = vmax.f32 %v3645_v52, 0.0 }
 0x3a6   :  { %v3499_v46 = vpop.f32.mrf.mxu1  ;;  %v3679_v57 = vmax.f32 %v3647_v44, 0.0  ;;  %v3706_v37 = vadd.f32 %v3705_v21, %v3678_v28  ;;  %v4582_v28 = vld [vmem:[%s6328_s0 + $0x98] sm:$0xff]  ;;  %v4585_v21 = vld [vmem:[%s6328_s0 + $0xa0] sm:$0xff] }
 0x3a7   :  { %v3575_v26 = vmul.f32 %v6156_v42, %v3499_v46  ;;  %v3618_v11 = vadd.f32 %v6160_v62, %v3574_v61  ;;  %v3649_v23 = vadd.f32 %v4574_v9, %v3617_v18  ;;  %v3680_v6 = vmax.f32 %v3648_v49, 0.0 }
 0x3a8   :  { %v3503_v16 = vpop.f32.mrf.mxu1  ;;  %v3718_v1 = vadd.f32 %v3717_v32, %v3677_v50  ;;  %v4583_v32 = vld [vmem:[%s6328_s0 + $0x80] sm:$0xff] }
 0x3a9   :  { %v3576_v20 = vmul.f32 %v6151_v35, %v3503_v16  ;;  %v3619_v51 = vadd.f32 %v6165_v25, %v3575_v26  ;;  %v3650_v34 = vadd.f32 %v4575_v54, %v3618_v11  ;;  %v3681_v60 = vmax.f32 %v3649_v23, 0.0  ;;  %v4581_v23 = vld [vmem:[%s6328_s0 + $0x90] sm:$0xff] }
 0x3aa   :  { %v3505_v53 = vpop.f32.mrf.mxu1  ;;  %v3719_v59 = vadd.f32 %v3718_v1, %v3679_v57  ;;  %v3707_v15 = vadd.f32 %v3706_v37, %v3680_v6 }
 0x3ab   :  { %v3577_v40 = vmul.f32 %v6156_v42, %v3505_v53  ;;  %v3620_v55 = vadd.f32 %v6160_v62, %v3576_v20  ;;  %v3651_v31 = vadd.f32 %v4576_v47, %v3619_v51  ;;  %v3682_v61 = vmax.f32 %v3650_v34, 0.0 }
 0x3ac   :  { %v3507_v7 = vpop.f32.mrf.mxu1  ;;  %v3720_v29 = vadd.f32 %v3719_v59, %v3681_v60  ;;  %v4586_v60 = vld [vmem:[%s6328_s0 + $0xa8] sm:$0xff] }
 0x3ad   :  { %v3578_v13 = vmul.f32 %v6151_v35, %v3507_v7  ;;  %v3621_v22 = vadd.f32 %v6165_v25, %v3577_v40  ;;  %v3652_v27 = vadd.f32 %v4577_v14, %v3620_v55  ;;  %v3683_v26 = vmax.f32 %v3651_v31, 0.0  ;;  %v4584_v31 = vld [vmem:[%s6328_s0 + $0x88] sm:$0xff] }
 0x3ae   :  { %v3509_v24 = vpop.f32.mrf.mxu1  ;;  %v3708_v63 = vadd.f32 %v3707_v15, %v3682_v61 }
 0x3af   :  { %v3579_v3 = vmul.f32 %v6156_v42, %v3509_v24  ;;  %v3622_v16 = vadd.f32 %v6160_v62, %v3578_v13  ;;  %v3653_v8 = vadd.f32 %v4578_v10, %v3621_v22  ;;  %v3684_v20 = vmax.f32 %v3652_v27, 0.0 }
 0x3b0   :  { %v3513_v5 = vpop.f32.mrf.mxu1  ;;  %v3721_v45 = vadd.f32 %v3720_v29, %v3683_v26 }
 0x3b1   :  { %v3623_v2 = vadd.f32 %v6165_v25, %v3579_v3  ;;  %v3654_v41 = vadd.f32 %v4579_v33, %v3622_v16  ;;  %v3580_v4 = vmul.f32 %v6151_v35, %v3513_v5  ;;  %v3685_v11 = vmax.f32 %v3653_v8, 0.0  ;;  %v4587_v8 = vld [vmem:[%s6328_s0 + $0xb0] sm:$0xff] }
 0x3b2   :  { %v3515_v30 = vpop.f32.mrf.mxu1  ;;  %v3709_v5 = vadd.f32 %v3708_v63, %v3684_v20 }
 0x3b3   :  { %v3655_v39 = vadd.f32 %v4580_v17, %v3623_v2  ;;  %v3581_v52 = vmul.f32 %v6156_v42, %v3515_v30  ;;  %v3686_v40 = vmax.f32 %v3654_v41, 0.0  ;;  %v3624_v30 = vadd.f32 %v6160_v62, %v3580_v4  ;;  %v4589_v4 = vld [vmem:[%s6328_s0 + $0xc0] sm:$0xff] }
 0x3b4   :  { %v3517_v46 = vpop.f32.mrf.mxu1  ;;  %v3722_v0 = vadd.f32 %v3721_v45, %v3685_v11 }
 0x3b5   :  { %v3582_v24 = vmul.f32 %v6151_v35, %v3517_v46  ;;  %v3687_v19 = vmax.f32 %v3655_v39, 0.0  ;;  %v3625_v49 = vadd.f32 %v6165_v25, %v3581_v52  ;;  %v3710_v58 = vadd.f32 %v3709_v5, %v3686_v40 }
 0x3b6   :  { %v3519_v53 = vpop.f32.mrf.mxu1  ;;  %v3656_v57 = vadd.f32 %v4583_v32, %v3624_v30 }
 0x3b7   :  { %v3583_v48 = vmul.f32 %v6156_v42, %v3519_v53  ;;  %v3626_v36 = vadd.f32 %v6160_v62, %v3582_v24  ;;  %v3723_v16 = vadd.f32 %v3722_v0, %v3687_v19  ;;  %v3657_v53 = vadd.f32 %v4584_v31, %v3625_v49  ;;  %v4588_v24 = vld [vmem:[%s6328_s0 + $0xb8] sm:$0xff] }
 0x3b8   :  { %v3523_v7 = vpop.f32.mrf.mxu1  ;;  %v3711_v1 = vrot.slane %v3710_v58, 4  ;;  %v3688_v26 = vmax.f32 %v3656_v57, 0.0  ;;  %v4592_v19 = vld [vmem:[%s6328_s0 + $0xd8] sm:$0xff] }
 0x3b9   :  { %v3584_v18 = vmul.f32 %v6151_v35, %v3523_v7  ;;  %v3627_v12 = vadd.f32 %v6165_v25, %v3583_v48  ;;  %v3658_v46 = vadd.f32 %v4581_v23, %v3626_v36  ;;  %v3724_v20 = vrot.slane %v3723_v16, 4 }
 0x3ba   :  { %v3525_v56 = vpop.f32.mrf.mxu1  ;;  %v3689_v17 = vmax.f32 %v3657_v53, 0.0 }
 0x3bb   :  { %v3585_v13 = vmul.f32 %v6156_v42, %v3525_v56  ;;  %v3628_v55 = vadd.f32 %v6160_v62, %v3584_v18  ;;  %v3659_v54 = vadd.f32 %v4582_v28, %v3627_v12  ;;  %v3690_v61 = vmax.f32 %v3658_v46, 0.0  ;;  %v4591_v12 = vld [vmem:[%s6328_s0 + $0xd0] sm:$0xff]  ;;  %v4593_v28 = vld [vmem:[%s6328_s0 + $0xe0] sm:$0xff] }
 0x3bc   :  { %v3527_v43 = vpop.f32.mrf.mxu1 }
 0x3bd   :  { %v3586_v44 = vmul.f32 %v6151_v35, %v3527_v43  ;;  %v3629_v50 = vadd.f32 %v6165_v25, %v3585_v13  ;;  %v3660_v6 = vadd.f32 %v4585_v21, %v3628_v55  ;;  %v3691_v10 = vmax.f32 %v3659_v54, 0.0  ;;  %v4590_v43 = vld [vmem:[%s6328_s0 + $0xc8] sm:$0xff] }
 0x3be   :  { %v3529_v51 = vpop.f32.mrf.mxu1  ;;  %v3730_v13 = vadd.f32 %v3690_v61, %v3688_v26  ;;  %v3712_v55 = vadd.f32 %v3711_v1, %v3710_v58  ;;  %v4595_v61 = vld [vmem:[%s6328_s0 + $0xf0] sm:$0xff] }
 0x3bf   :  { %v3587_v38 = vmul.f32 %v6156_v42, %v3529_v51  ;;  %v3630_v34 = vadd.f32 %v6160_v62, %v3586_v44  ;;  %v3661_v7 = vadd.f32 %v4586_v60, %v3629_v50  ;;  %v3692_v39 = vmax.f32 %v3660_v6, 0.0 }
 0x3c0   :  { %v3533_v3 = vpop.f32.mrf.mxu1  ;;  %v3743_v45 = vadd.f32 %v3691_v10, %v3689_v17  ;;  %v3713_v6 = vrot.slane %v3712_v55, 2 }
 0x3c1   :  { %v3588_v9 = vmul.f32 %v6151_v35, %v3533_v3  ;;  %v3631_v47 = vadd.f32 %v6165_v25, %v3587_v38  ;;  %v3662_v33 = vadd.f32 %v4587_v8, %v3630_v34  ;;  %v3693_v18 = vmax.f32 %v3661_v7, 0.0 }
 0x3c2   :  { %v3535_v22 = vpop.f32.mrf.mxu1  ;;  %v3725_v3 = vadd.f32 %v3724_v20, %v3723_v16  ;;  %v3731_v0 = vadd.f32 %v3730_v13, %v3692_v39  ;;  %v4594_v16 = vld [vmem:[%s6328_s0 + $0xe8] sm:$0xff] }
 0x3c3   :  { %v3632_v14 = vadd.f32 %v6160_v62, %v3588_v9  ;;  %v3589_v27 = vmul.f32 %v6156_v42, %v3535_v22  ;;  %v3663_v48 = vadd.f32 %v4588_v24, %v3631_v47  ;;  %v3694_v36 = vmax.f32 %v3662_v33, 0.0 }
 0x3c4   :  { %v3537_v2 = vpop.f32.mrf.mxu1  ;;  %v3744_v23 = vadd.f32 %v3743_v45, %v3693_v18  ;;  %v3726_v1 = vrot.slane %v3725_v3, 2 }
 0x3c5   :  { %v3590_v37 = vmul.f32 %v6151_v35, %v3537_v2  ;;  %v3633_v41 = vadd.f32 %v6165_v25, %v3589_v27  ;;  %v3664_v29 = vadd.f32 %v4589_v4, %v3632_v14  ;;  %v3695_v5 = vmax.f32 %v3663_v48, 0.0 }
 0x3c6   :  { %v3539_v59 = vpop.f32.mrf.mxu1  ;;  %v3732_v22 = vadd.f32 %v3731_v0, %v3694_v36  ;;  %v3727_v26 = vadd.f32 %v3726_v1, %v3725_v3 }
 0x3c7   :  { %v3634_v56 = vadd.f32 %v6160_v62, %v3590_v37  ;;  %v3591_v15 = vmul.f32 %v6156_v42, %v3539_v59  ;;  %v3665_v63 = vadd.f32 %v4590_v43, %v3633_v41  ;;  %v3696_v50 = vmax.f32 %v3664_v29, 0.0 }
 0x3c8   :  { %v3543_v52 = vpop.f32.mrf.mxu1  ;;  %v3745_v31 = vadd.f32 %v3744_v23, %v3695_v5  ;;  %v3714_v41 = vadd.f32 %v3713_v6, %v3712_v55  ;;  %v3728_v39 = vrot.slane %v3727_v26, 1 }
 0x3c9   :  { %v3635_v11 = vadd.f32 %v6165_v25, %v3591_v15  ;;  %v3592_v40 = vmul.f32 %v6151_v35, %v3543_v52  ;;  %v3666_v44 = vadd.f32 %v4591_v12, %v3634_v56  ;;  %v3697_v46 = vmax.f32 %v3665_v63, 0.0 }
 0x3ca   :  { %v3545_v51 = vpop.f32.mrf.mxu1  ;;  %v3733_v14 = vadd.f32 %v3732_v22, %v3696_v50  ;;  %v3715_v15 = vrot.slane %v3714_v41, 1  ;;  %v3729_v63 = vadd.f32 %v3728_v39, %v3727_v26 }
 0x3cb   :  { %v3667_v30 = vadd.f32 %v4592_v19, %v3635_v11  ;;  %v3636_v38 = vadd.f32 %v6160_v62, %v3592_v40  ;;  %v3593_v49 = vmul.f32 %v6156_v42, %v3545_v51  ;;  %v3698_v32 = vmax.f32 %v3666_v44, 0.0 }
 0x3cc   :  { %v3547_v9 = vpop.f32.mrf.mxu1  ;;  %v3746_v60 = vadd.f32 %v3745_v31, %v3697_v46  ;;  %v3716_v52 = vadd.f32 %v3715_v15, %v3714_v41  ;;  %v3758_v12 = vmul.f32 0.015625, %v3729_v63 }
 0x3cd   :  { %v3668_v54 = vadd.f32 %v4593_v28, %v3636_v38  ;;  %v3637_v34 = vadd.f32 %v6165_v25, %v3593_v49  ;;  %v3594_v57 = vmul.f32 %v6151_v35, %v3547_v9  ;;  %v3699_v58 = vmax.f32 %v3667_v30, 0.0 }
 0x3ce   :  { %v3549_v47 = vpop.f32.mrf.mxu1  ;;  %v3734_v37 = vadd.f32 %v3733_v14, %v3698_v32  ;;  %v3757_v13 = vmul.f32 0.015625, %v3716_v52  ;;  %v3762_v38 = vpack.c.bf16 %v3758_v12, %v3758_v12  ;;  %v4154_v32 = vld [vmem:[%s6339_s11] ss:$0 sm:$0xff] }
 0x3cf   :  { %v3669_v53 = vadd.f32 %v4594_v16, %v3637_v34  ;;  %v3595_v21 = vmul.f32 %v6156_v42, %v3549_v47  ;;  %v3700_v27 = vmax.f32 %v3668_v54, 0.0  ;;  %v3638_v2 = vadd.f32 %v6160_v62, %v3594_v57  ;;  %v4596_v42 = vld [vmem:[%s6328_s0 + $0xf8] sm:$0xff] }
 0x3d0   :  { %v3747_v8 = vadd.f32 %v3746_v60, %v3699_v58  ;;  %v3761_v19 = vpack.c.bf16 %v3757_v13, %v3757_v13  ;;  %v3809_v50 = vunpack.c.l.b16 %v3762_v38 }
 0x3d1   :  { %v3701_v7 = vmax.f32 %v3669_v53, 0.0  ;;  %v3639_v35 = vadd.f32 %v6165_v25, %v3595_v21  ;;  %v3670_v10 = vadd.f32 %v4595_v61, %v3638_v2  ;;  %v3735_v59 = vadd.f32 %v3734_v37, %v3700_v27 }
 0x3d2   :  { %v3808_v3 = vunpack.c.l.b16 %v3761_v19 }
 0x3d3   :  { %v3671_v33 = vadd.f32 %v4596_v42, %v3639_v35  ;;  %v3702_v62 = vmax.f32 %v3670_v10, 0.0  ;;  %v3748_v24 = vadd.f32 %v3747_v8, %v3701_v7 }
 0x3d5   :  { %v3703_v48 = vmax.f32 %v3671_v33, 0.0  ;;  %v3736_v56 = vadd.f32 %v3735_v59, %v3702_v62 }
 0x3d7   :  { %v3749_v25 = vadd.f32 %v3748_v24, %v3703_v48  ;;  %v3737_v20 = vrot.slane %v3736_v56, 4 }
 0x3d9   :  { %v3750_v17 = vrot.slane %v3749_v25, 4  ;;  %v3738_v4 = vadd.f32 %v3737_v20, %v3736_v56 }
 0x3db   :  { %v3751_v29 = vadd.f32 %v3750_v17, %v3749_v25  ;;  %v3739_v18 = vrot.slane %v3738_v4, 2 }
 0x3dd   :  { %v3752_v43 = vrot.slane %v3751_v29, 2  ;;  %v3740_v11 = vadd.f32 %v3739_v18, %v3738_v4 }
 0x3df   :  { %v3753_v40 = vadd.f32 %v3752_v43, %v3751_v29  ;;  %v3741_v45 = vrot.slane %v3740_v11, 1 }
 0x3e1   :  { %v3754_v36 = vrot.slane %v3753_v40, 1  ;;  %v3742_v44 = vadd.f32 %v3741_v45, %v3740_v11 }
 0x3e3   :  { %v3755_v51 = vadd.f32 %v3754_v36, %v3753_v40  ;;  %v3759_v5 = vmul.f32 0.015625, %v3742_v44 }
 0x3e5   :  { %v3760_v30 = vmul.f32 0.015625, %v3755_v51  ;;  %v3763_v49 = vpack.c.bf16 %v3759_v5, %v3759_v5 }
 0x3e7   :  { %v3764_v55 = vpack.c.bf16 %v3760_v30, %v3760_v30  ;;  %v3810_v0 = vunpack.c.l.b16 %v3763_v49 }
 0x3e9   :  { %v3811_v9 = vunpack.c.l.b16 %v3764_v55  ;;  %v3813_v23 = vsel %vm3812_vm15, %v3810_v0, %v3808_v3 }
 0x3ea   :  { %v3815_v54 = vpack.c.b16 %v3813_v23, %v3813_v23 }
 0x3eb   :  { %v3814_v46 = vsel %vm3812_vm15, %v3811_v9, %v3809_v50 }
 0x3ec   :  { %v3816_v28 = vpack.c.b16 %v3814_v46, %v3814_v46 }
 0x3ee   :  { %3947 = vmatprep.mubr.bf16.mxu0 %v3816_v28 }
 0x3ef   :  { %3948 = vmatmul.mubr.bf16.vlgmr.msra.gmra.mxu0 %v3815_v54 }
 0x4af   :  { %v4407_v34 = vpop.f32.mrf.mxu0 }
 0x4b1   :  { %v4408_v22 = vpop.f32.mrf.mxu0 }
 0x4b2   :  { %v4409_v57 = vadd.f32 %v4408_v22, %v4407_v34 }
 0x4b3   :  { %v4410_v47 = vpop.f32.mrf.mxu0 }
 0x4b4   :  { %v3950_v31 = vadd.f32 %v4409_v57, %v4154_v32 }
 0x4b5   :  { %v4411_v58 = vpop.f32.mrf.mxu0 }
 0x4b6   :  { %3955 = vst [vmem:[#allocation4] sm:$0x3] %v3950_v31 }
 0x4b7   :  { %4608 = shalt.err (!%p4605_p4)
}
 0x4b8   :  { %3965 = dma.vmem_to_hbm [thread:$0]  %s3963_s13, 32, %s6340_s12, [#allocation5]  }
 0x4b9   :  { %4617 = dma.done.wait [#allocation5], 32  }
 0x4ba   :  { %4618 = vsyncadd [#allocation5], 4294967264 }
 0x4bb   :  { %3969 = vsyncpa [#allocation5], 1 }

</bundles_post_ra>
